<compile_context>
chip_gen: v7x
topology: tpu7x:2x2x1
jax: 0.10.0
libtpu: 0.0.40
codegen_flags: <defaults>
</compile_context>

<pallas_src>
import functools

import jax
import jax.numpy as jnp
from jax import lax
from jax.experimental import pallas as pl
from jax.experimental.pallas import tpu as pltpu


# ------------------------------ Pallas kernel -------------------------------

def _fused_layer_kernel(p_ref, w_ref, b_ref, g_ref, be_ref, o_ref, *,
                        n_par, use_bn, activation, eps):
    """One fused generator block.

    p_ref : (P, M, K) bf16  im2col patches (P = # output parities in this block)
    w_ref : (P, K, C) bf16  per-parity weight matrices
    b_ref : (1, C)    f32   ConvTranspose2d bias
    g_ref : (1, C)    f32   BatchNorm2d gamma   (unused when use_bn=False)
    be_ref: (1, C)    f32   BatchNorm2d beta    (unused when use_bn=False)
    o_ref : (P, M, C) f32   per-parity output
    """
    bias = b_ref[...]

    # MXU matmuls (bf16 operands, f32 accumulation); keep every parity's
    # accumulator resident so BN statistics cover the full (N, H, W) extent.
    ys = []
    for p in range(n_par):
        acc = jnp.dot(p_ref[p], w_ref[p], preferred_element_type=jnp.float32)
        ys.append(acc + bias)

    if use_bn:
        # PyTorch BatchNorm2d forward, training mode: per-channel batch mean and
        # *biased* variance over (N, H, W) == all parities x all rows. f32 math.
        cnt = float(n_par * ys[0].shape[0])
        total = ys[0]
        for y in ys[1:]:
            total = total + y
        mean = jnp.sum(total, axis=0, keepdims=True) / cnt
        ssq = None
        for y in ys:
            d = y - mean
            part = jnp.sum(d * d, axis=0, keepdims=True)
            ssq = part if ssq is None else ssq + part
        var = ssq / cnt
        scale = g_ref[...] * lax.rsqrt(var + eps)
        shift = be_ref[...] - mean * scale
        for p in range(n_par):
            o_ref[p] = jnp.maximum(ys[p] * scale + shift, 0.0)
    else:
        for p in range(n_par):
            y = ys[p]
            if activation == "tanh":
                y = jnp.tanh(y)
            o_ref[p] = y


def fused_layer(patches, weights, bias, gamma, beta, *, use_bn,
                activation="none", eps=1e-5):
    """conv-as-matmul (+bias) [+BN+ReLU | +tanh]: one pallas_call per block."""
    P, M, K = patches.shape
    C = weights.shape[-1]

    if use_bn:
        # BN statistics couple all parities and rows -> single grid step with
        # the whole (tiny, <=256 KB) block resident in VMEM. No M padding.
        grid = (1,)
        semantics = ("arbitrary",)
        kernel = functools.partial(_fused_layer_kernel, n_par=P, use_bn=True,
                                   activation=activation, eps=eps)
        pat_spec = pl.BlockSpec((P, M, K), lambda i: (0, 0, 0))
        w_spec = pl.BlockSpec((P, K, C), lambda i: (0, 0, 0))
        vec_spec = pl.BlockSpec((1, C), lambda i: (0, 0))
        out_spec = pl.BlockSpec((P, M, C), lambda i: (0, 0, 0))
    else:
        # No cross-parity coupling (final Tanh layer): shard parities over a
        # "parallel" grid so both TensorCores get used on v7x.
        grid = (P,)
        semantics = ("parallel",)
        kernel = functools.partial(_fused_layer_kernel, n_par=1, use_bn=False,
                                   activation=activation, eps=eps)
        pat_spec = pl.BlockSpec((1, M, K), lambda p: (p, 0, 0))
        w_spec = pl.BlockSpec((1, K, C), lambda p: (p, 0, 0))
        vec_spec = pl.BlockSpec((1, C), lambda p: (0, 0))
        out_spec = pl.BlockSpec((1, M, C), lambda p: (p, 0, 0))

    return pl.pallas_call(
        kernel,
        out_shape=jax.ShapeDtypeStruct((P, M, C), jnp.float32),
        grid=grid,
        in_specs=[pat_spec, w_spec, vec_spec, vec_spec, vec_spec],
        out_specs=out_spec,
        compiler_params=pltpu.CompilerParams(dimension_semantics=semantics),
    )(patches, weights, bias, gamma, beta)


# --------------------------- XLA-side layout glue ----------------------------

def _first_layer_patches(x_flat, k=4):
    """(N, Cin) latent -> (1, N*k*k, k*k*Cin) bf16.

    One-hot expansion over the k*k output pixels of the k=4, s=1, p=0
    transposed conv on a 1x1 input, so the matmul rows are already the
    channels-last output pixels (n, ky, kx)."""
    N, Cin = x_flat.shape
    eye = jnp.eye(k * k, dtype=x_flat.dtype)
    lhs = x_flat[:, None, None, :] * eye[None, :, :, None]      # (N, kk, kk, Cin)
    return lhs.reshape(1, N * k * k, k * k * Cin).astype(jnp.bfloat16)


def _s2_patches(x_nhwc):
    """(N, H, W, C) -> (4, N*H*W, 4*C) bf16 parity-grouped im2col patches for a
    k=4, s=2, p=1 transposed conv (parity index p = ry*2 + rx)."""
    N, H, W, C = x_nhwc.shape
    xp = jnp.pad(x_nhwc, ((0, 0), (1, 1), (1, 1), (0, 0)))
    pats = []
    for ry in (0, 1):
        for rx in (0, 1):
            pieces = [xp[:, ry + dy:ry + dy + H, rx + dx:rx + dx + W, :]
                      for dy in (0, 1) for dx in (0, 1)]
            p = jnp.stack(pieces, axis=3)                        # (N, H, W, 4, C)
            pats.append(p.reshape(N * H * W, 4 * C))
    return jnp.stack(pats, axis=0).astype(jnp.bfloat16)


def _interleave_parities(y, N, H, W):
    """(4, N*H*W, C) parity-major kernel output -> (N, 2H, 2W, C) NHWC."""
    C = y.shape[-1]
    y = y.reshape(2, 2, N, H, W, C).transpose(2, 3, 0, 4, 1, 5)  # (n,a,ry,b,rx,c)
    return y.reshape(N, 2 * H, 2 * W, C)


# -------------------------- parameter preparation ---------------------------

def _prep_w_first(W):
    """(Cin, Cout, k, k) -> (1, k*k*Cin, Cout) bf16, rows ordered (ky, kx, ci)."""
    Cin, Cout, k, _ = W.shape
    return W.transpose(2, 3, 0, 1).reshape(1, k * k * Cin, Cout).astype(jnp.bfloat16)


def _prep_w_s2(W):
    """(Cin, Cout, 4, 4) -> (4, 4*Cin, Cout) bf16 per-output-parity sub-kernels."""
    Cin, Cout = W.shape[:2]
    mats = []
    for ry in (0, 1):
        for rx in (0, 1):
            cols = [W[:, :, 3 - ry - 2 * dy, 3 - rx - 2 * dx]
                    for dy in (0, 1) for dx in (0, 1)]
            mats.append(jnp.stack(cols, axis=0).reshape(4 * Cin, Cout))
    return jnp.stack(mats, axis=0).astype(jnp.bfloat16)


def prepare_kernel_params(raw, n_hidden):
    """Convert PyTorch-layout params to matmul-ready kernel params (done once)."""
    kp = {"w0": _prep_w_first(raw["w0"]),
          "b0": raw["b0"].reshape(1, -1).astype(jnp.float32),
          "g0": raw["g0"].reshape(1, -1).astype(jnp.float32),
          "be0": raw["be0"].reshape(1, -1).astype(jnp.float32)}
    for i in range(1, n_hidden + 1):
        kp[f"w{i}"] = _prep_w_s2(raw[f"w{i}"])
        kp[f"b{i}"] = raw[f"b{i}"].reshape(1, -1).astype(jnp.float32)
        c = raw[f"b{i}"].shape[0]
        if f"g{i}" in raw:
            kp[f"g{i}"] = raw[f"g{i}"].reshape(1, -1).astype(jnp.float32)
            kp[f"be{i}"] = raw[f"be{i}"].reshape(1, -1).astype(jnp.float32)
        else:  # final layer has no BN; placeholders keep the kernel signature uniform
            kp[f"g{i}"] = jnp.ones((1, c), jnp.float32)
            kp[f"be{i}"] = jnp.zeros((1, c), jnp.float32)
    return kp


# --------------------------------- forward ----------------------------------

def generator_forward(x, kparams, n_hidden, k=4):
    N = x.shape[0]
    x_flat = x.reshape(N, x.shape[1])

    # block 0: ConvT(k4, s1, p0) on the 1x1 latent + BN + ReLU (one fused kernel)
    pat = _first_layer_patches(x_flat, k)
    y = fused_layer(pat, kparams["w0"], kparams["b0"],
                    kparams["g0"], kparams["be0"], use_bn=True)
    act = y.reshape(N, k, k, y.shape[-1])                     # NHWC

    # blocks 1..n_hidden-1: ConvT(k4, s2, p1) + BN + ReLU (one fused kernel each)
    for i in range(1, n_hidden):
        Nb, H, W, _ = act.shape
        pat = _s2_patches(act)
        y = fused_layer(pat, kparams[f"w{i}"], kparams[f"b{i}"],
                        kparams[f"g{i}"], kparams[f"be{i}"], use_bn=True)
        act = _interleave_parities(y, Nb, H, W)

    # final block: ConvT(k4, s2, p1) + Tanh (one fused kernel, parity-parallel grid)
    Nb, H, W, _ = act.shape
    pat = _s2_patches(act)
    i = n_hidden
    y = fused_layer(pat, kparams[f"w{i}"], kparams[f"b{i}"],
                    kparams[f"g{i}"], kparams[f"be{i}"],
                    use_bn=False, activation="tanh")
    act = _interleave_parities(y, Nb, H, W)
    return act.transpose(0, 3, 1, 2)                          # single NHWC -> NCHW


# ------------------------------ parameter init -------------------------------

def init_params(key, latent_dim, h_channels, channels, k=4):
    dims = [latent_dim] + list(h_channels)
    n_layers = len(h_channels) + 1
    keys = jax.random.split(key, 2 * n_layers)
    params = {}
    ki = 0
    for idx, (cin, cout) in enumerate(zip(dims[:-1], dims[1:])):
        scale = 1.0 / jnp.sqrt(float(cin * k * k))
        params[f"w{idx}"] = scale * jax.random.normal(keys[ki], (cin, cout, k, k), jnp.float32); ki += 1
        params[f"b{idx}"] = scale * jax.random.normal(keys[ki], (cout,), jnp.float32); ki += 1
        params[f"g{idx}"] = jnp.ones((cout,), jnp.float32)    # BN gamma (PyTorch init)
        params[f"be{idx}"] = jnp.zeros((cout,), jnp.float32)  # BN beta  (PyTorch init)
    cin, i = h_channels[-1], len(h_channels)
    scale = 1.0 / jnp.sqrt(float(cin * k * k))
    params[f"w{i}"] = scale * jax.random.normal(keys[ki], (cin, channels, k, k), jnp.float32); ki += 1
    params[f"b{i}"] = scale * jax.random.normal(keys[ki], (channels,), jnp.float32); ki += 1
    return params


# ----------------------------------- main ------------------------------------

if __name__ == "__main__":
    # Small, forward-consistent sizes (scaled-down DCGAN generator).
    latent_dim = 32
    h_channels = [64, 32, 16]
    channels = 3
    batch = 2

    key = jax.random.PRNGKey(0)
    kx, kp = jax.random.split(key)
    raw_params = init_params(kp, latent_dim, h_channels, channels)
    kparams = prepare_kernel_params(raw_params, n_hidden=len(h_channels))
    x = jax.random.normal(kx, (batch, latent_dim, 1, 1), jnp.float32)

    fwd = jax.jit(functools.partial(generator_forward,
                                    kparams=kparams, n_hidden=len(h_channels)))
    out = jax.block_until_ready(fwd(x))

    # 1x1 -> 4x4 -> 8x8 -> 16x16 -> 32x32
    assert out.shape == (batch, channels, 32, 32), out.shape
    assert bool(jnp.all(jnp.isfinite(out)))
    assert bool(jnp.all(jnp.abs(out) <= 1.0 + 1e-6))  # tanh range
    print("KERNEL_OK")
</pallas_src>

<mosaic_0001>
module attributes {stable_mosaic.version = 11 : i64} {
  func.func @_fused_layer_kernel(%arg0: i32, %arg1: memref<1x32x512xbf16, #tpu.memory_space<vmem>>, %arg2: memref<1x512x64xbf16, #tpu.memory_space<vmem>>, %arg3: memref<1x64xf32, #tpu.memory_space<vmem>>, %arg4: memref<1x64xf32, #tpu.memory_space<vmem>>, %arg5: memref<1x64xf32, #tpu.memory_space<vmem>>, %arg6: memref<1x32x64xf32, #tpu.memory_space<vmem>>) attributes {dimension_semantics = [#tpu.dimension_semantics<arbitrary>], iteration_bounds = array<i64: 1>, scalar_prefetch = 0 : i64, scratch_operands = 0 : i64, tpu.core_type = #tpu.core_type<tc>, window_params = [{pipeline_mode = #tpu.pipeline_mode<synchronous>, transform_indices = @transform_0, window_bounds = array<i64: 1, 32, 512>}, {pipeline_mode = #tpu.pipeline_mode<synchronous>, transform_indices = @transform_1, window_bounds = array<i64: 1, 512, 64>}, {pipeline_mode = #tpu.pipeline_mode<synchronous>, transform_indices = @transform_2, window_bounds = array<i64: 1, 64>}, {pipeline_mode = #tpu.pipeline_mode<synchronous>, transform_indices = @transform_3, window_bounds = array<i64: 1, 64>}, {pipeline_mode = #tpu.pipeline_mode<synchronous>, transform_indices = @transform_4, window_bounds = array<i64: 1, 64>}, {pipeline_mode = #tpu.pipeline_mode<synchronous>, transform_indices = @transform_5, window_bounds = array<i64: 1, 32, 64>}]} {
    %c0 = arith.constant 0 : index
    %c0_0 = arith.constant 0 : index
    %0 = vector.load %arg3[%c0, %c0_0] : memref<1x64xf32, #tpu.memory_space<vmem>>, vector<1x64xf32>
    %c0_1 = arith.constant 0 : index
    %c0_2 = arith.constant 0 : index
    %c0_3 = arith.constant 0 : index
    %1 = vector.load %arg1[%c0_1, %c0_2, %c0_3] : memref<1x32x512xbf16, #tpu.memory_space<vmem>>, vector<1x32x512xbf16>
    %2 = vector.shape_cast %1 : vector<1x32x512xbf16> to vector<32x512xbf16>
    %c0_4 = arith.constant 0 : index
    %c0_5 = arith.constant 0 : index
    %c0_6 = arith.constant 0 : index
    %3 = vector.load %arg2[%c0_4, %c0_5, %c0_6] : memref<1x512x64xbf16, #tpu.memory_space<vmem>>, vector<1x512x64xbf16>
    %4 = vector.shape_cast %3 : vector<1x512x64xbf16> to vector<512x64xbf16>
    %cst = arith.constant dense<0.000000e+00> : vector<32x64xf32>
    %5 = tpu.matmul %2, %4, %cst {dimension_numbers = #tpu.dot_dimension_numbers<[1], [0], [0], [1], [0, 0, 1, 1], [], []>} : vector<32x512xbf16>, vector<512x64xbf16>, vector<32x64xf32> -> vector<32x64xf32>
    %6 = vector.broadcast %0 : vector<1x64xf32> to vector<32x64xf32>
    %7 = arith.addf %5, %6 : vector<32x64xf32>
    %cst_7 = arith.constant dense<0.000000e+00> : vector<64xf32>
    %8 = vector.multi_reduction <add>, %7, %cst_7 [0] : vector<32x64xf32> to vector<64xf32>
    %9 = vector.shape_cast %8 : vector<64xf32> to vector<1x64xf32>
    %cst_8 = arith.constant 3.200000e+01 : f32
    %10 = vector.broadcast %cst_8 : f32 to vector<1x64xf32>
    %11 = arith.divf %9, %10 : vector<1x64xf32>
    %12 = vector.broadcast %11 : vector<1x64xf32> to vector<32x64xf32>
    %13 = arith.subf %7, %12 : vector<32x64xf32>
    %14 = arith.mulf %13, %13 : vector<32x64xf32>
    %cst_9 = arith.constant dense<0.000000e+00> : vector<64xf32>
    %15 = vector.multi_reduction <add>, %14, %cst_9 [0] : vector<32x64xf32> to vector<64xf32>
    %16 = vector.shape_cast %15 : vector<64xf32> to vector<1x64xf32>
    %cst_10 = arith.constant 3.200000e+01 : f32
    %17 = vector.broadcast %cst_10 : f32 to vector<1x64xf32>
    %18 = arith.divf %16, %17 : vector<1x64xf32>
    %c0_11 = arith.constant 0 : index
    %c0_12 = arith.constant 0 : index
    %19 = vector.load %arg4[%c0_11, %c0_12] : memref<1x64xf32, #tpu.memory_space<vmem>>, vector<1x64xf32>
    %cst_13 = arith.constant 9.99999974E-6 : f32
    %20 = vector.broadcast %cst_13 : f32 to vector<1x64xf32>
    %21 = arith.addf %18, %20 : vector<1x64xf32>
    %22 = math.rsqrt %21 : vector<1x64xf32>
    %23 = arith.mulf %19, %22 : vector<1x64xf32>
    %c0_14 = arith.constant 0 : index
    %c0_15 = arith.constant 0 : index
    %24 = vector.load %arg5[%c0_14, %c0_15] : memref<1x64xf32, #tpu.memory_space<vmem>>, vector<1x64xf32>
    %25 = arith.mulf %11, %23 : vector<1x64xf32>
    %26 = arith.subf %24, %25 : vector<1x64xf32>
    %27 = vector.broadcast %23 : vector<1x64xf32> to vector<32x64xf32>
    %28 = arith.mulf %7, %27 : vector<32x64xf32>
    %29 = vector.broadcast %26 : vector<1x64xf32> to vector<32x64xf32>
    %30 = arith.addf %28, %29 : vector<32x64xf32>
    %cst_16 = arith.constant 0.000000e+00 : f32
    %31 = vector.broadcast %cst_16 : f32 to vector<32x64xf32>
    %32 = arith.maximumf %30, %31 : vector<32x64xf32>
    %c0_17 = arith.constant 0 : index
    %c0_18 = arith.constant 0 : index
    %c0_19 = arith.constant 0 : index
    %33 = vector.load %arg6[%c0_17, %c0_18, %c0_19] : memref<1x32x64xf32, #tpu.memory_space<vmem>>, vector<1x32x64xf32>
    %34 = vector.shape_cast %33 : vector<1x32x64xf32> to vector<32x64xf32>
    %35 = vector.shape_cast %32 : vector<32x64xf32> to vector<1x32x64xf32>
    tpu.vector_store %arg6[%c0_17, %c0_18, %c0_19], %35 {strides = array<i32>} : memref<1x32x64xf32, #tpu.memory_space<vmem>>, vector<1x32x64xf32>,
    return
  }
  func.func @transform_0(%arg0: i32) -> (i32, i32, i32) {
    %c0_i32 = arith.constant 0 : i32
    %c0_i32_0 = arith.constant 0 : i32
    %c0_i32_1 = arith.constant 0 : i32
    %c0_i32_2 = arith.constant 0 : i32
    return %c0_i32, %c0_i32_0, %c0_i32_1 : i32, i32, i32
  }
  func.func @transform_1(%arg0: i32) -> (i32, i32, i32) {
    %c0_i32 = arith.constant 0 : i32
    %c0_i32_0 = arith.constant 0 : i32
    %c0_i32_1 = arith.constant 0 : i32
    %c0_i32_2 = arith.constant 0 : i32
    return %c0_i32, %c0_i32_0, %c0_i32_1 : i32, i32, i32
  }
  func.func @transform_2(%arg0: i32) -> (i32, i32) {
    %c0_i32 = arith.constant 0 : i32
    %c0_i32_0 = arith.constant 0 : i32
    %c0_i32_1 = arith.constant 0 : i32
    return %c0_i32, %c0_i32_0 : i32, i32
  }
  func.func @transform_3(%arg0: i32) -> (i32, i32) {
    %c0_i32 = arith.constant 0 : i32
    %c0_i32_0 = arith.constant 0 : i32
    %c0_i32_1 = arith.constant 0 : i32
    return %c0_i32, %c0_i32_0 : i32, i32
  }
  func.func @transform_4(%arg0: i32) -> (i32, i32) {
    %c0_i32 = arith.constant 0 : i32
    %c0_i32_0 = arith.constant 0 : i32
    %c0_i32_1 = arith.constant 0 : i32
    return %c0_i32, %c0_i32_0 : i32, i32
  }
  func.func @transform_5(%arg0: i32) -> (i32, i32, i32) {
    %c0_i32 = arith.constant 0 : i32
    %c0_i32_0 = arith.constant 0 : i32
    %c0_i32_1 = arith.constant 0 : i32
    %c0_i32_2 = arith.constant 0 : i32
    return %c0_i32, %c0_i32_0, %c0_i32_1 : i32, i32, i32
  }
}

module attributes {stable_mosaic.version = 11 : i64} {
  func.func @_fused_layer_kernel(%arg0: i32, %arg1: memref<4x32x256xbf16, #tpu.memory_space<vmem>>, %arg2: memref<4x256x32xbf16, #tpu.memory_space<vmem>>, %arg3: memref<1x32xf32, #tpu.memory_space<vmem>>, %arg4: memref<1x32xf32, #tpu.memory_space<vmem>>, %arg5: memref<1x32xf32, #tpu.memory_space<vmem>>, %arg6: memref<4x32x32xf32, #tpu.memory_space<vmem>>) attributes {dimension_semantics = [#tpu.dimension_semantics<arbitrary>], iteration_bounds = array<i64: 1>, scalar_prefetch = 0 : i64, scratch_operands = 0 : i64, tpu.core_type = #tpu.core_type<tc>, window_params = [{pipeline_mode = #tpu.pipeline_mode<synchronous>, transform_indices = @transform_0, window_bounds = array<i64: 4, 32, 256>}, {pipeline_mode = #tpu.pipeline_mode<synchronous>, transform_indices = @transform_1, window_bounds = array<i64: 4, 256, 32>}, {pipeline_mode = #tpu.pipeline_mode<synchronous>, transform_indices = @transform_2, window_bounds = array<i64: 1, 32>}, {pipeline_mode = #tpu.pipeline_mode<synchronous>, transform_indices = @transform_3, window_bounds = array<i64: 1, 32>}, {pipeline_mode = #tpu.pipeline_mode<synchronous>, transform_indices = @transform_4, window_bounds = array<i64: 1, 32>}, {pipeline_mode = #tpu.pipeline_mode<synchronous>, transform_indices = @transform_5, window_bounds = array<i64: 4, 32, 32>}]} {
    %c0 = arith.constant 0 : index
    %c0_0 = arith.constant 0 : index
    %0 = vector.load %arg3[%c0, %c0_0] : memref<1x32xf32, #tpu.memory_space<vmem>>, vector<1x32xf32>
    %c0_1 = arith.constant 0 : index
    %c0_2 = arith.constant 0 : index
    %c0_3 = arith.constant 0 : index
    %1 = vector.load %arg1[%c0_1, %c0_2, %c0_3] : memref<4x32x256xbf16, #tpu.memory_space<vmem>>, vector<1x32x256xbf16>
    %2 = vector.shape_cast %1 : vector<1x32x256xbf16> to vector<32x256xbf16>
    %c0_4 = arith.constant 0 : index
    %c0_5 = arith.constant 0 : index
    %c0_6 = arith.constant 0 : index
    %3 = vector.load %arg2[%c0_4, %c0_5, %c0_6] : memref<4x256x32xbf16, #tpu.memory_space<vmem>>, vector<1x256x32xbf16>
    %4 = vector.shape_cast %3 : vector<1x256x32xbf16> to vector<256x32xbf16>
    %cst = arith.constant dense<0.000000e+00> : vector<32x32xf32>
    %5 = tpu.matmul %2, %4, %cst {dimension_numbers = #tpu.dot_dimension_numbers<[1], [0], [0], [1], [0, 0, 1, 1], [], []>} : vector<32x256xbf16>, vector<256x32xbf16>, vector<32x32xf32> -> vector<32x32xf32>
    %6 = vector.broadcast %0 : vector<1x32xf32> to vector<32x32xf32>
    %7 = arith.addf %5, %6 : vector<32x32xf32>
    %c1 = arith.constant 1 : index
    %c0_7 = arith.constant 0 : index
    %c0_8 = arith.constant 0 : index
    %8 = vector.load %arg1[%c1, %c0_7, %c0_8] : memref<4x32x256xbf16, #tpu.memory_space<vmem>>, vector<1x32x256xbf16>
    %9 = vector.shape_cast %8 : vector<1x32x256xbf16> to vector<32x256xbf16>
    %c1_9 = arith.constant 1 : index
    %c0_10 = arith.constant 0 : index
    %c0_11 = arith.constant 0 : index
    %10 = vector.load %arg2[%c1_9, %c0_10, %c0_11] : memref<4x256x32xbf16, #tpu.memory_space<vmem>>, vector<1x256x32xbf16>
    %11 = vector.shape_cast %10 : vector<1x256x32xbf16> to vector<256x32xbf16>
    %cst_12 = arith.constant dense<0.000000e+00> : vector<32x32xf32>
    %12 = tpu.matmul %9, %11, %cst_12 {dimension_numbers = #tpu.dot_dimension_numbers<[1], [0], [0], [1], [0, 0, 1, 1], [], []>} : vector<32x256xbf16>, vector<256x32xbf16>, vector<32x32xf32> -> vector<32x32xf32>
    %13 = vector.broadcast %0 : vector<1x32xf32> to vector<32x32xf32>
    %14 = arith.addf %12, %13 : vector<32x32xf32>
    %c2 = arith.constant 2 : index
    %c0_13 = arith.constant 0 : index
    %c0_14 = arith.constant 0 : index
    %15 = vector.load %arg1[%c2, %c0_13, %c0_14] : memref<4x32x256xbf16, #tpu.memory_space<vmem>>, vector<1x32x256xbf16>
    %16 = vector.shape_cast %15 : vector<1x32x256xbf16> to vector<32x256xbf16>
    %c2_15 = arith.constant 2 : index
    %c0_16 = arith.constant 0 : index
    %c0_17 = arith.constant 0 : index
    %17 = vector.load %arg2[%c2_15, %c0_16, %c0_17] : memref<4x256x32xbf16, #tpu.memory_space<vmem>>, vector<1x256x32xbf16>
    %18 = vector.shape_cast %17 : vector<1x256x32xbf16> to vector<256x32xbf16>
    %cst_18 = arith.constant dense<0.000000e+00> : vector<32x32xf32>
    %19 = tpu.matmul %16, %18, %cst_18 {dimension_numbers = #tpu.dot_dimension_numbers<[1], [0], [0], [1], [0, 0, 1, 1], [], []>} : vector<32x256xbf16>, vector<256x32xbf16>, vector<32x32xf32> -> vector<32x32xf32>
    %20 = vector.broadcast %0 : vector<1x32xf32> to vector<32x32xf32>
    %21 = arith.addf %19, %20 : vector<32x32xf32>
    %c3 = arith.constant 3 : index
    %c0_19 = arith.constant 0 : index
    %c0_20 = arith.constant 0 : index
    %22 = vector.load %arg1[%c3, %c0_19, %c0_20] : memref<4x32x256xbf16, #tpu.memory_space<vmem>>, vector<1x32x256xbf16>
    %23 = vector.shape_cast %22 : vector<1x32x256xbf16> to vector<32x256xbf16>
    %c3_21 = arith.constant 3 : index
    %c0_22 = arith.constant 0 : index
    %c0_23 = arith.constant 0 : index
    %24 = vector.load %arg2[%c3_21, %c0_22, %c0_23] : memref<4x256x32xbf16, #tpu.memory_space<vmem>>, vector<1x256x32xbf16>
    %25 = vector.shape_cast %24 : vector<1x256x32xbf16> to vector<256x32xbf16>
    %cst_24 = arith.constant dense<0.000000e+00> : vector<32x32xf32>
    %26 = tpu.matmul %23, %25, %cst_24 {dimension_numbers = #tpu.dot_dimension_numbers<[1], [0], [0], [1], [0, 0, 1, 1], [], []>} : vector<32x256xbf16>, vector<256x32xbf16>, vector<32x32xf32> -> vector<32x32xf32>
    %27 = vector.broadcast %0 : vector<1x32xf32> to vector<32x32xf32>
    %28 = arith.addf %26, %27 : vector<32x32xf32>
    %29 = arith.addf %7, %14 : vector<32x32xf32>
    %30 = arith.addf %29, %21 : vector<32x32xf32>
    %31 = arith.addf %30, %28 : vector<32x32xf32>
    %cst_25 = arith.constant dense<0.000000e+00> : vector<32xf32>
    %32 = vector.multi_reduction <add>, %31, %cst_25 [0] : vector<32x32xf32> to vector<32xf32>
    %33 = vector.shape_cast %32 : vector<32xf32> to vector<1x32xf32>
    %cst_26 = arith.constant 1.280000e+02 : f32
    %34 = vector.broadcast %cst_26 : f32 to vector<1x32xf32>
    %35 = arith.divf %33, %34 : vector<1x32xf32>
    %36 = vector.broadcast %35 : vector<1x32xf32> to vector<32x32xf32>
    %37 = arith.subf %7, %36 : vector<32x32xf32>
    %38 = arith.mulf %37, %37 : vector<32x32xf32>
    %cst_27 = arith.constant dense<0.000000e+00> : vector<32xf32>
    %39 = vector.multi_reduction <add>, %38, %cst_27 [0] : vector<32x32xf32> to vector<32xf32>
    %40 = vector.shape_cast %39 : vector<32xf32> to vector<1x32xf32>
    %41 = vector.broadcast %35 : vector<1x32xf32> to vector<32x32xf32>
    %42 = arith.subf %14, %41 : vector<32x32xf32>
    %43 = arith.mulf %42, %42 : vector<32x32xf32>
    %cst_28 = arith.constant dense<0.000000e+00> : vector<32xf32>
    %44 = vector.multi_reduction <add>, %43, %cst_28 [0] : vector<32x32xf32> to vector<32xf32>
    %45 = vector.shape_cast %44 : vector<32xf32> to vector<1x32xf32>
    %46 = arith.addf %40, %45 : vector<1x32xf32>
    %47 = vector.broadcast %35 : vector<1x32xf32> to vector<32x32xf32>
    %48 = arith.subf %21, %47 : vector<32x32xf32>
    %49 = arith.mulf %48, %48 : vector<32x32xf32>
    %cst_29 = arith.constant dense<0.000000e+00> : vector<32xf32>
    %50 = vector.multi_reduction <add>, %49, %cst_29 [0] : vector<32x32xf32> to vector<32xf32>
    %51 = vector.shape_cast %50 : vector<32xf32> to vector<1x32xf32>
    %52 = arith.addf %46, %51 : vector<1x32xf32>
    %53 = vector.broadcast %35 : vector<1x32xf32> to vector<32x32xf32>
    %54 = arith.subf %28, %53 : vector<32x32xf32>
    %55 = arith.mulf %54, %54 : vector<32x32xf32>
    %cst_30 = arith.constant dense<0.000000e+00> : vector<32xf32>
    %56 = vector.multi_reduction <add>, %55, %cst_30 [0] : vector<32x32xf32> to vector<32xf32>
    %57 = vector.shape_cast %56 : vector<32xf32> to vector<1x32xf32>
    %58 = arith.addf %52, %57 : vector<1x32xf32>
    %cst_31 = arith.constant 1.280000e+02 : f32
    %59 = vector.broadcast %cst_31 : f32 to vector<1x32xf32>
    %60 = arith.divf %58, %59 : vector<1x32xf32>
    %c0_32 = arith.constant 0 : index
    %c0_33 = arith.constant 0 : index
    %61 = vector.load %arg4[%c0_32, %c0_33] : memref<1x32xf32, #tpu.memory_space<vmem>>, vector<1x32xf32>
    %cst_34 = arith.constant 9.99999974E-6 : f32
    %62 = vector.broadcast %cst_34 : f32 to vector<1x32xf32>
    %63 = arith.addf %60, %62 : vector<1x32xf32>
    %64 = math.rsqrt %63 : vector<1x32xf32>
    %65 = arith.mulf %61, %64 : vector<1x32xf32>
    %c0_35 = arith.constant 0 : index
    %c0_36 = arith.constant 0 : index
    %66 = vector.load %arg5[%c0_35, %c0_36] : memref<1x32xf32, #tpu.memory_space<vmem>>, vector<1x32xf32>
    %67 = arith.mulf %35, %65 : vector<1x32xf32>
    %68 = arith.subf %66, %67 : vector<1x32xf32>
    %69 = vector.broadcast %65 : vector<1x32xf32> to vector<32x32xf32>
    %70 = arith.mulf %7, %69 : vector<32x32xf32>
    %71 = vector.broadcast %68 : vector<1x32xf32> to vector<32x32xf32>
    %72 = arith.addf %70, %71 : vector<32x32xf32>
    %cst_37 = arith.constant 0.000000e+00 : f32
    %73 = vector.broadcast %cst_37 : f32 to vector<32x32xf32>
    %74 = arith.maximumf %72, %73 : vector<32x32xf32>
    %c0_38 = arith.constant 0 : index
    %c0_39 = arith.constant 0 : index
    %c0_40 = arith.constant 0 : index
    %75 = vector.load %arg6[%c0_38, %c0_39, %c0_40] : memref<4x32x32xf32, #tpu.memory_space<vmem>>, vector<1x32x32xf32>
    %76 = vector.shape_cast %75 : vector<1x32x32xf32> to vector<32x32xf32>
    %77 = vector.shape_cast %74 : vector<32x32xf32> to vector<1x32x32xf32>
    tpu.vector_store %arg6[%c0_38, %c0_39, %c0_40], %77 {strides = array<i32>} : memref<4x32x32xf32, #tpu.memory_space<vmem>>, vector<1x32x32xf32>,
    %78 = vector.broadcast %65 : vector<1x32xf32> to vector<32x32xf32>
    %79 = arith.mulf %14, %78 : vector<32x32xf32>
    %80 = vector.broadcast %68 : vector<1x32xf32> to vector<32x32xf32>
    %81 = arith.addf %79, %80 : vector<32x32xf32>
    %cst_41 = arith.constant 0.000000e+00 : f32
    %82 = vector.broadcast %cst_41 : f32 to vector<32x32xf32>
    %83 = arith.maximumf %81, %82 : vector<32x32xf32>
    %c1_42 = arith.constant 1 : index
    %c0_43 = arith.constant 0 : index
    %c0_44 = arith.constant 0 : index
    %84 = vector.load %arg6[%c1_42, %c0_43, %c0_44] : memref<4x32x32xf32, #tpu.memory_space<vmem>>, vector<1x32x32xf32>
    %85 = vector.shape_cast %84 : vector<1x32x32xf32> to vector<32x32xf32>
    %86 = vector.shape_cast %83 : vector<32x32xf32> to vector<1x32x32xf32>
    tpu.vector_store %arg6[%c1_42, %c0_43, %c0_44], %86 {strides = array<i32>} : memref<4x32x32xf32, #tpu.memory_space<vmem>>, vector<1x32x32xf32>,
    %87 = vector.broadcast %65 : vector<1x32xf32> to vector<32x32xf32>
    %88 = arith.mulf %21, %87 : vector<32x32xf32>
    %89 = vector.broadcast %68 : vector<1x32xf32> to vector<32x32xf32>
    %90 = arith.addf %88, %89 : vector<32x32xf32>
    %cst_45 = arith.constant 0.000000e+00 : f32
    %91 = vector.broadcast %cst_45 : f32 to vector<32x32xf32>
    %92 = arith.maximumf %90, %91 : vector<32x32xf32>
    %c2_46 = arith.constant 2 : index
    %c0_47 = arith.constant 0 : index
    %c0_48 = arith.constant 0 : index
    %93 = vector.load %arg6[%c2_46, %c0_47, %c0_48] : memref<4x32x32xf32, #tpu.memory_space<vmem>>, vector<1x32x32xf32>
    %94 = vector.shape_cast %93 : vector<1x32x32xf32> to vector<32x32xf32>
    %95 = vector.shape_cast %92 : vector<32x32xf32> to vector<1x32x32xf32>
    tpu.vector_store %arg6[%c2_46, %c0_47, %c0_48], %95 {strides = array<i32>} : memref<4x32x32xf32, #tpu.memory_space<vmem>>, vector<1x32x32xf32>,
    %96 = vector.broadcast %65 : vector<1x32xf32> to vector<32x32xf32>
    %97 = arith.mulf %28, %96 : vector<32x32xf32>
    %98 = vector.broadcast %68 : vector<1x32xf32> to vector<32x32xf32>
    %99 = arith.addf %97, %98 : vector<32x32xf32>
    %cst_49 = arith.constant 0.000000e+00 : f32
    %100 = vector.broadcast %cst_49 : f32 to vector<32x32xf32>
    %101 = arith.maximumf %99, %100 : vector<32x32xf32>
    %c3_50 = arith.constant 3 : index
    %c0_51 = arith.constant 0 : index
    %c0_52 = arith.constant 0 : index
    %102 = vector.load %arg6[%c3_50, %c0_51, %c0_52] : memref<4x32x32xf32, #tpu.memory_space<vmem>>, vector<1x32x32xf32>
    %103 = vector.shape_cast %102 : vector<1x32x32xf32> to vector<32x32xf32>
    %104 = vector.shape_cast %101 : vector<32x32xf32> to vector<1x32x32xf32>
    tpu.vector_store %arg6[%c3_50, %c0_51, %c0_52], %104 {strides = array<i32>} : memref<4x32x32xf32, #tpu.memory_space<vmem>>, vector<1x32x32xf32>,
    return
  }
  func.func @transform_0(%arg0: i32) -> (i32, i32, i32) {
    %c0_i32 = arith.constant 0 : i32
    %c0_i32_0 = arith.constant 0 : i32
    %c0_i32_1 = arith.constant 0 : i32
    %c0_i32_2 = arith.constant 0 : i32
    return %c0_i32, %c0_i32_0, %c0_i32_1 : i32, i32, i32
  }
  func.func @transform_1(%arg0: i32) -> (i32, i32, i32) {
    %c0_i32 = arith.constant 0 : i32
    %c0_i32_0 = arith.constant 0 : i32
    %c0_i32_1 = arith.constant 0 : i32
    %c0_i32_2 = arith.constant 0 : i32
    return %c0_i32, %c0_i32_0, %c0_i32_1 : i32, i32, i32
  }
  func.func @transform_2(%arg0: i32) -> (i32, i32) {
    %c0_i32 = arith.constant 0 : i32
    %c0_i32_0 = arith.constant 0 : i32
    %c0_i32_1 = arith.constant 0 : i32
    return %c0_i32, %c0_i32_0 : i32, i32
  }
  func.func @transform_3(%arg0: i32) -> (i32, i32) {
    %c0_i32 = arith.constant 0 : i32
    %c0_i32_0 = arith.constant 0 : i32
    %c0_i32_1 = arith.constant 0 : i32
    return %c0_i32, %c0_i32_0 : i32, i32
  }
  func.func @transform_4(%arg0: i32) -> (i32, i32) {
    %c0_i32 = arith.constant 0 : i32
    %c0_i32_0 = arith.constant 0 : i32
    %c0_i32_1 = arith.constant 0 : i32
    return %c0_i32, %c0_i32_0 : i32, i32
  }
  func.func @transform_5(%arg0: i32) -> (i32, i32, i32) {
    %c0_i32 = arith.constant 0 : i32
    %c0_i32_0 = arith.constant 0 : i32
    %c0_i32_1 = arith.constant 0 : i32
    %c0_i32_2 = arith.constant 0 : i32
    return %c0_i32, %c0_i32_0, %c0_i32_1 : i32, i32, i32
  }
}

module attributes {stable_mosaic.version = 11 : i64} {
  func.func @_fused_layer_kernel(%arg0: i32, %arg1: memref<4x128x128xbf16, #tpu.memory_space<vmem>>, %arg2: memref<4x128x16xbf16, #tpu.memory_space<vmem>>, %arg3: memref<1x16xf32, #tpu.memory_space<vmem>>, %arg4: memref<1x16xf32, #tpu.memory_space<vmem>>, %arg5: memref<1x16xf32, #tpu.memory_space<vmem>>, %arg6: memref<4x128x16xf32, #tpu.memory_space<vmem>>) attributes {dimension_semantics = [#tpu.dimension_semantics<arbitrary>], iteration_bounds = array<i64: 1>, scalar_prefetch = 0 : i64, scratch_operands = 0 : i64, tpu.core_type = #tpu.core_type<tc>, window_params = [{pipeline_mode = #tpu.pipeline_mode<synchronous>, transform_indices = @transform_0, window_bounds = array<i64: 4, 128, 128>}, {pipeline_mode = #tpu.pipeline_mode<synchronous>, transform_indices = @transform_1, window_bounds = array<i64: 4, 128, 16>}, {pipeline_mode = #tpu.pipeline_mode<synchronous>, transform_indices = @transform_2, window_bounds = array<i64: 1, 16>}, {pipeline_mode = #tpu.pipeline_mode<synchronous>, transform_indices = @transform_3, window_bounds = array<i64: 1, 16>}, {pipeline_mode = #tpu.pipeline_mode<synchronous>, transform_indices = @transform_4, window_bounds = array<i64: 1, 16>}, {pipeline_mode = #tpu.pipeline_mode<synchronous>, transform_indices = @transform_5, window_bounds = array<i64: 4, 128, 16>}]} {
    %c0 = arith.constant 0 : index
    %c0_0 = arith.constant 0 : index
    %0 = vector.load %arg3[%c0, %c0_0] : memref<1x16xf32, #tpu.memory_space<vmem>>, vector<1x16xf32>
    %c0_1 = arith.constant 0 : index
    %c0_2 = arith.constant 0 : index
    %c0_3 = arith.constant 0 : index
    %1 = vector.load %arg1[%c0_1, %c0_2, %c0_3] : memref<4x128x128xbf16, #tpu.memory_space<vmem>>, vector<1x128x128xbf16>
    %2 = vector.shape_cast %1 : vector<1x128x128xbf16> to vector<128x128xbf16>
    %c0_4 = arith.constant 0 : index
    %c0_5 = arith.constant 0 : index
    %c0_6 = arith.constant 0 : index
    %3 = vector.load %arg2[%c0_4, %c0_5, %c0_6] : memref<4x128x16xbf16, #tpu.memory_space<vmem>>, vector<1x128x16xbf16>
    %4 = vector.shape_cast %3 : vector<1x128x16xbf16> to vector<128x16xbf16>
    %cst = arith.constant dense<0.000000e+00> : vector<128x16xf32>
    %5 = tpu.matmul %2, %4, %cst {dimension_numbers = #tpu.dot_dimension_numbers<[1], [0], [0], [1], [0, 0, 1, 1], [], []>} : vector<128x128xbf16>, vector<128x16xbf16>, vector<128x16xf32> -> vector<128x16xf32>
    %6 = vector.broadcast %0 : vector<1x16xf32> to vector<128x16xf32>
    %7 = arith.addf %5, %6 : vector<128x16xf32>
    %c1 = arith.constant 1 : index
    %c0_7 = arith.constant 0 : index
    %c0_8 = arith.constant 0 : index
    %8 = vector.load %arg1[%c1, %c0_7, %c0_8] : memref<4x128x128xbf16, #tpu.memory_space<vmem>>, vector<1x128x128xbf16>
    %9 = vector.shape_cast %8 : vector<1x128x128xbf16> to vector<128x128xbf16>
    %c1_9 = arith.constant 1 : index
    %c0_10 = arith.constant 0 : index
    %c0_11 = arith.constant 0 : index
    %10 = vector.load %arg2[%c1_9, %c0_10, %c0_11] : memref<4x128x16xbf16, #tpu.memory_space<vmem>>, vector<1x128x16xbf16>
    %11 = vector.shape_cast %10 : vector<1x128x16xbf16> to vector<128x16xbf16>
    %cst_12 = arith.constant dense<0.000000e+00> : vector<128x16xf32>
    %12 = tpu.matmul %9, %11, %cst_12 {dimension_numbers = #tpu.dot_dimension_numbers<[1], [0], [0], [1], [0, 0, 1, 1], [], []>} : vector<128x128xbf16>, vector<128x16xbf16>, vector<128x16xf32> -> vector<128x16xf32>
    %13 = vector.broadcast %0 : vector<1x16xf32> to vector<128x16xf32>
    %14 = arith.addf %12, %13 : vector<128x16xf32>
    %c2 = arith.constant 2 : index
    %c0_13 = arith.constant 0 : index
    %c0_14 = arith.constant 0 : index
    %15 = vector.load %arg1[%c2, %c0_13, %c0_14] : memref<4x128x128xbf16, #tpu.memory_space<vmem>>, vector<1x128x128xbf16>
    %16 = vector.shape_cast %15 : vector<1x128x128xbf16> to vector<128x128xbf16>
    %c2_15 = arith.constant 2 : index
    %c0_16 = arith.constant 0 : index
    %c0_17 = arith.constant 0 : index
    %17 = vector.load %arg2[%c2_15, %c0_16, %c0_17] : memref<4x128x16xbf16, #tpu.memory_space<vmem>>, vector<1x128x16xbf16>
    %18 = vector.shape_cast %17 : vector<1x128x16xbf16> to vector<128x16xbf16>
    %cst_18 = arith.constant dense<0.000000e+00> : vector<128x16xf32>
    %19 = tpu.matmul %16, %18, %cst_18 {dimension_numbers = #tpu.dot_dimension_numbers<[1], [0], [0], [1], [0, 0, 1, 1], [], []>} : vector<128x128xbf16>, vector<128x16xbf16>, vector<128x16xf32> -> vector<128x16xf32>
    %20 = vector.broadcast %0 : vector<1x16xf32> to vector<128x16xf32>
    %21 = arith.addf %19, %20 : vector<128x16xf32>
    %c3 = arith.constant 3 : index
    %c0_19 = arith.constant 0 : index
    %c0_20 = arith.constant 0 : index
    %22 = vector.load %arg1[%c3, %c0_19, %c0_20] : memref<4x128x128xbf16, #tpu.memory_space<vmem>>, vector<1x128x128xbf16>
    %23 = vector.shape_cast %22 : vector<1x128x128xbf16> to vector<128x128xbf16>
    %c3_21 = arith.constant 3 : index
    %c0_22 = arith.constant 0 : index
    %c0_23 = arith.constant 0 : index
    %24 = vector.load %arg2[%c3_21, %c0_22, %c0_23] : memref<4x128x16xbf16, #tpu.memory_space<vmem>>, vector<1x128x16xbf16>
    %25 = vector.shape_cast %24 : vector<1x128x16xbf16> to vector<128x16xbf16>
    %cst_24 = arith.constant dense<0.000000e+00> : vector<128x16xf32>
    %26 = tpu.matmul %23, %25, %cst_24 {dimension_numbers = #tpu.dot_dimension_numbers<[1], [0], [0], [1], [0, 0, 1, 1], [], []>} : vector<128x128xbf16>, vector<128x16xbf16>, vector<128x16xf32> -> vector<128x16xf32>
    %27 = vector.broadcast %0 : vector<1x16xf32> to vector<128x16xf32>
    %28 = arith.addf %26, %27 : vector<128x16xf32>
    %29 = arith.addf %7, %14 : vector<128x16xf32>
    %30 = arith.addf %29, %21 : vector<128x16xf32>
    %31 = arith.addf %30, %28 : vector<128x16xf32>
    %cst_25 = arith.constant dense<0.000000e+00> : vector<16xf32>
    %32 = vector.multi_reduction <add>, %31, %cst_25 [0] : vector<128x16xf32> to vector<16xf32>
    %33 = vector.shape_cast %32 : vector<16xf32> to vector<1x16xf32>
    %cst_26 = arith.constant 5.120000e+02 : f32
    %34 = vector.broadcast %cst_26 : f32 to vector<1x16xf32>
    %35 = arith.divf %33, %34 : vector<1x16xf32>
    %36 = vector.broadcast %35 : vector<1x16xf32> to vector<128x16xf32>
    %37 = arith.subf %7, %36 : vector<128x16xf32>
    %38 = arith.mulf %37, %37 : vector<128x16xf32>
    %cst_27 = arith.constant dense<0.000000e+00> : vector<16xf32>
    %39 = vector.multi_reduction <add>, %38, %cst_27 [0] : vector<128x16xf32> to vector<16xf32>
    %40 = vector.shape_cast %39 : vector<16xf32> to vector<1x16xf32>
    %41 = vector.broadcast %35 : vector<1x16xf32> to vector<128x16xf32>
    %42 = arith.subf %14, %41 : vector<128x16xf32>
    %43 = arith.mulf %42, %42 : vector<128x16xf32>
    %cst_28 = arith.constant dense<0.000000e+00> : vector<16xf32>
    %44 = vector.multi_reduction <add>, %43, %cst_28 [0] : vector<128x16xf32> to vector<16xf32>
    %45 = vector.shape_cast %44 : vector<16xf32> to vector<1x16xf32>
    %46 = arith.addf %40, %45 : vector<1x16xf32>
    %47 = vector.broadcast %35 : vector<1x16xf32> to vector<128x16xf32>
    %48 = arith.subf %21, %47 : vector<128x16xf32>
    %49 = arith.mulf %48, %48 : vector<128x16xf32>
    %cst_29 = arith.constant dense<0.000000e+00> : vector<16xf32>
    %50 = vector.multi_reduction <add>, %49, %cst_29 [0] : vector<128x16xf32> to vector<16xf32>
    %51 = vector.shape_cast %50 : vector<16xf32> to vector<1x16xf32>
    %52 = arith.addf %46, %51 : vector<1x16xf32>
    %53 = vector.broadcast %35 : vector<1x16xf32> to vector<128x16xf32>
    %54 = arith.subf %28, %53 : vector<128x16xf32>
    %55 = arith.mulf %54, %54 : vector<128x16xf32>
    %cst_30 = arith.constant dense<0.000000e+00> : vector<16xf32>
    %56 = vector.multi_reduction <add>, %55, %cst_30 [0] : vector<128x16xf32> to vector<16xf32>
    %57 = vector.shape_cast %56 : vector<16xf32> to vector<1x16xf32>
    %58 = arith.addf %52, %57 : vector<1x16xf32>
    %cst_31 = arith.constant 5.120000e+02 : f32
    %59 = vector.broadcast %cst_31 : f32 to vector<1x16xf32>
    %60 = arith.divf %58, %59 : vector<1x16xf32>
    %c0_32 = arith.constant 0 : index
    %c0_33 = arith.constant 0 : index
    %61 = vector.load %arg4[%c0_32, %c0_33] : memref<1x16xf32, #tpu.memory_space<vmem>>, vector<1x16xf32>
    %cst_34 = arith.constant 9.99999974E-6 : f32
    %62 = vector.broadcast %cst_34 : f32 to vector<1x16xf32>
    %63 = arith.addf %60, %62 : vector<1x16xf32>
    %64 = math.rsqrt %63 : vector<1x16xf32>
    %65 = arith.mulf %61, %64 : vector<1x16xf32>
    %c0_35 = arith.constant 0 : index
    %c0_36 = arith.constant 0 : index
    %66 = vector.load %arg5[%c0_35, %c0_36] : memref<1x16xf32, #tpu.memory_space<vmem>>, vector<1x16xf32>
    %67 = arith.mulf %35, %65 : vector<1x16xf32>
    %68 = arith.subf %66, %67 : vector<1x16xf32>
    %69 = vector.broadcast %65 : vector<1x16xf32> to vector<128x16xf32>
    %70 = arith.mulf %7, %69 : vector<128x16xf32>
    %71 = vector.broadcast %68 : vector<1x16xf32> to vector<128x16xf32>
    %72 = arith.addf %70, %71 : vector<128x16xf32>
    %cst_37 = arith.constant 0.000000e+00 : f32
    %73 = vector.broadcast %cst_37 : f32 to vector<128x16xf32>
    %74 = arith.maximumf %72, %73 : vector<128x16xf32>
    %c0_38 = arith.constant 0 : index
    %c0_39 = arith.constant 0 : index
    %c0_40 = arith.constant 0 : index
    %75 = vector.load %arg6[%c0_38, %c0_39, %c0_40] : memref<4x128x16xf32, #tpu.memory_space<vmem>>, vector<1x128x16xf32>
    %76 = vector.shape_cast %75 : vector<1x128x16xf32> to vector<128x16xf32>
    %77 = vector.shape_cast %74 : vector<128x16xf32> to vector<1x128x16xf32>
    tpu.vector_store %arg6[%c0_38, %c0_39, %c0_40], %77 {strides = array<i32>} : memref<4x128x16xf32, #tpu.memory_space<vmem>>, vector<1x128x16xf32>,
    %78 = vector.broadcast %65 : vector<1x16xf32> to vector<128x16xf32>
    %79 = arith.mulf %14, %78 : vector<128x16xf32>
    %80 = vector.broadcast %68 : vector<1x16xf32> to vector<128x16xf32>
    %81 = arith.addf %79, %80 : vector<128x16xf32>
    %cst_41 = arith.constant 0.000000e+00 : f32
    %82 = vector.broadcast %cst_41 : f32 to vector<128x16xf32>
    %83 = arith.maximumf %81, %82 : vector<128x16xf32>
    %c1_42 = arith.constant 1 : index
    %c0_43 = arith.constant 0 : index
    %c0_44 = arith.constant 0 : index
    %84 = vector.load %arg6[%c1_42, %c0_43, %c0_44] : memref<4x128x16xf32, #tpu.memory_space<vmem>>, vector<1x128x16xf32>
    %85 = vector.shape_cast %84 : vector<1x128x16xf32> to vector<128x16xf32>
    %86 = vector.shape_cast %83 : vector<128x16xf32> to vector<1x128x16xf32>
    tpu.vector_store %arg6[%c1_42, %c0_43, %c0_44], %86 {strides = array<i32>} : memref<4x128x16xf32, #tpu.memory_space<vmem>>, vector<1x128x16xf32>,
    %87 = vector.broadcast %65 : vector<1x16xf32> to vector<128x16xf32>
    %88 = arith.mulf %21, %87 : vector<128x16xf32>
    %89 = vector.broadcast %68 : vector<1x16xf32> to vector<128x16xf32>
    %90 = arith.addf %88, %89 : vector<128x16xf32>
    %cst_45 = arith.constant 0.000000e+00 : f32
    %91 = vector.broadcast %cst_45 : f32 to vector<128x16xf32>
    %92 = arith.maximumf %90, %91 : vector<128x16xf32>
    %c2_46 = arith.constant 2 : index
    %c0_47 = arith.constant 0 : index
    %c0_48 = arith.constant 0 : index
    %93 = vector.load %arg6[%c2_46, %c0_47, %c0_48] : memref<4x128x16xf32, #tpu.memory_space<vmem>>, vector<1x128x16xf32>
    %94 = vector.shape_cast %93 : vector<1x128x16xf32> to vector<128x16xf32>
    %95 = vector.shape_cast %92 : vector<128x16xf32> to vector<1x128x16xf32>
    tpu.vector_store %arg6[%c2_46, %c0_47, %c0_48], %95 {strides = array<i32>} : memref<4x128x16xf32, #tpu.memory_space<vmem>>, vector<1x128x16xf32>,
    %96 = vector.broadcast %65 : vector<1x16xf32> to vector<128x16xf32>
    %97 = arith.mulf %28, %96 : vector<128x16xf32>
    %98 = vector.broadcast %68 : vector<1x16xf32> to vector<128x16xf32>
    %99 = arith.addf %97, %98 : vector<128x16xf32>
    %cst_49 = arith.constant 0.000000e+00 : f32
    %100 = vector.broadcast %cst_49 : f32 to vector<128x16xf32>
    %101 = arith.maximumf %99, %100 : vector<128x16xf32>
    %c3_50 = arith.constant 3 : index
    %c0_51 = arith.constant 0 : index
    %c0_52 = arith.constant 0 : index
    %102 = vector.load %arg6[%c3_50, %c0_51, %c0_52] : memref<4x128x16xf32, #tpu.memory_space<vmem>>, vector<1x128x16xf32>
    %103 = vector.shape_cast %102 : vector<1x128x16xf32> to vector<128x16xf32>
    %104 = vector.shape_cast %101 : vector<128x16xf32> to vector<1x128x16xf32>
    tpu.vector_store %arg6[%c3_50, %c0_51, %c0_52], %104 {strides = array<i32>} : memref<4x128x16xf32, #tpu.memory_space<vmem>>, vector<1x128x16xf32>,
    return
  }
  func.func @transform_0(%arg0: i32) -> (i32, i32, i32) {
    %c0_i32 = arith.constant 0 : i32
    %c0_i32_0 = arith.constant 0 : i32
    %c0_i32_1 = arith.constant 0 : i32
    %c0_i32_2 = arith.constant 0 : i32
    return %c0_i32, %c0_i32_0, %c0_i32_1 : i32, i32, i32
  }
  func.func @transform_1(%arg0: i32) -> (i32, i32, i32) {
    %c0_i32 = arith.constant 0 : i32
    %c0_i32_0 = arith.constant 0 : i32
    %c0_i32_1 = arith.constant 0 : i32
    %c0_i32_2 = arith.constant 0 : i32
    return %c0_i32, %c0_i32_0, %c0_i32_1 : i32, i32, i32
  }
  func.func @transform_2(%arg0: i32) -> (i32, i32) {
    %c0_i32 = arith.constant 0 : i32
    %c0_i32_0 = arith.constant 0 : i32
    %c0_i32_1 = arith.constant 0 : i32
    return %c0_i32, %c0_i32_0 : i32, i32
  }
  func.func @transform_3(%arg0: i32) -> (i32, i32) {
    %c0_i32 = arith.constant 0 : i32
    %c0_i32_0 = arith.constant 0 : i32
    %c0_i32_1 = arith.constant 0 : i32
    return %c0_i32, %c0_i32_0 : i32, i32
  }
  func.func @transform_4(%arg0: i32) -> (i32, i32) {
    %c0_i32 = arith.constant 0 : i32
    %c0_i32_0 = arith.constant 0 : i32
    %c0_i32_1 = arith.constant 0 : i32
    return %c0_i32, %c0_i32_0 : i32, i32
  }
  func.func @transform_5(%arg0: i32) -> (i32, i32, i32) {
    %c0_i32 = arith.constant 0 : i32
    %c0_i32_0 = arith.constant 0 : i32
    %c0_i32_1 = arith.constant 0 : i32
    %c0_i32_2 = arith.constant 0 : i32
    return %c0_i32, %c0_i32_0, %c0_i32_1 : i32, i32, i32
  }
}

module attributes {stable_mosaic.version = 11 : i64} {
  func.func @_fused_layer_kernel(%arg0: i32, %arg1: memref<1x512x64xbf16, #tpu.memory_space<vmem>>, %arg2: memref<1x64x3xbf16, #tpu.memory_space<vmem>>, %arg3: memref<1x3xf32, #tpu.memory_space<vmem>>, %arg4: memref<1x3xf32, #tpu.memory_space<vmem>>, %arg5: memref<1x3xf32, #tpu.memory_space<vmem>>, %arg6: memref<1x512x3xf32, #tpu.memory_space<vmem>>) attributes {dimension_semantics = [#tpu.dimension_semantics<parallel>], iteration_bounds = array<i64: 4>, scalar_prefetch = 0 : i64, scratch_operands = 0 : i64, tpu.core_type = #tpu.core_type<tc>, window_params = [{transform_indices = @transform_0, window_bounds = array<i64: 1, 512, 64>}, {transform_indices = @transform_1, window_bounds = array<i64: 1, 64, 3>}, {pipeline_mode = #tpu.pipeline_mode<synchronous>, transform_indices = @transform_2, window_bounds = array<i64: 1, 3>}, {pipeline_mode = #tpu.pipeline_mode<synchronous>, transform_indices = @transform_3, window_bounds = array<i64: 1, 3>}, {pipeline_mode = #tpu.pipeline_mode<synchronous>, transform_indices = @transform_4, window_bounds = array<i64: 1, 3>}, {transform_indices = @transform_5, window_bounds = array<i64: 1, 512, 3>}]} {
    %c0 = arith.constant 0 : index
    %c0_0 = arith.constant 0 : index
    %0 = vector.load %arg3[%c0, %c0_0] : memref<1x3xf32, #tpu.memory_space<vmem>>, vector<1x3xf32>
    %c0_1 = arith.constant 0 : index
    %c0_2 = arith.constant 0 : index
    %c0_3 = arith.constant 0 : index
    %1 = vector.load %arg1[%c0_1, %c0_2, %c0_3] : memref<1x512x64xbf16, #tpu.memory_space<vmem>>, vector<1x512x64xbf16>
    %2 = vector.shape_cast %1 : vector<1x512x64xbf16> to vector<512x64xbf16>
    %c0_4 = arith.constant 0 : index
    %c0_5 = arith.constant 0 : index
    %c0_6 = arith.constant 0 : index
    %3 = vector.load %arg2[%c0_4, %c0_5, %c0_6] : memref<1x64x3xbf16, #tpu.memory_space<vmem>>, vector<1x64x3xbf16>
    %4 = vector.shape_cast %3 : vector<1x64x3xbf16> to vector<64x3xbf16>
    %cst = arith.constant dense<0.000000e+00> : vector<512x3xf32>
    %5 = tpu.matmul %2, %4, %cst {dimension_numbers = #tpu.dot_dimension_numbers<[1], [0], [0], [1], [0, 0, 1, 1], [], []>} : vector<512x64xbf16>, vector<64x3xbf16>, vector<512x3xf32> -> vector<512x3xf32>
    %6 = vector.broadcast %0 : vector<1x3xf32> to vector<512x3xf32>
    %7 = arith.addf %5, %6 : vector<512x3xf32>
    %8 = math.tanh %7 : vector<512x3xf32>
    %c0_7 = arith.constant 0 : index
    %c0_8 = arith.constant 0 : index
    %c0_9 = arith.constant 0 : index
    %9 = vector.load %arg6[%c0_7, %c0_8, %c0_9] : memref<1x512x3xf32, #tpu.memory_space<vmem>>, vector<1x512x3xf32>
    %10 = vector.shape_cast %9 : vector<1x512x3xf32> to vector<512x3xf32>
    %11 = vector.shape_cast %8 : vector<512x3xf32> to vector<1x512x3xf32>
    tpu.vector_store %arg6[%c0_7, %c0_8, %c0_9], %11 {strides = array<i32>} : memref<1x512x3xf32, #tpu.memory_space<vmem>>, vector<1x512x3xf32>,
    return
  }
  func.func @transform_0(%arg0: i32) -> (i32, i32, i32) {
    %c0_i32 = arith.constant 0 : i32
    %c0_i32_0 = arith.constant 0 : i32
    %c0_i32_1 = arith.constant 0 : i32
    return %arg0, %c0_i32, %c0_i32_0 : i32, i32, i32
  }
  func.func @transform_1(%arg0: i32) -> (i32, i32, i32) {
    %c0_i32 = arith.constant 0 : i32
    %c0_i32_0 = arith.constant 0 : i32
    %c0_i32_1 = arith.constant 0 : i32
    return %arg0, %c0_i32, %c0_i32_0 : i32, i32, i32
  }
  func.func @transform_2(%arg0: i32) -> (i32, i32) {
    %c0_i32 = arith.constant 0 : i32
    %c0_i32_0 = arith.constant 0 : i32
    %c0_i32_1 = arith.constant 0 : i32
    return %c0_i32, %c0_i32_0 : i32, i32
  }
  func.func @transform_3(%arg0: i32) -> (i32, i32) {
    %c0_i32 = arith.constant 0 : i32
    %c0_i32_0 = arith.constant 0 : i32
    %c0_i32_1 = arith.constant 0 : i32
    return %c0_i32, %c0_i32_0 : i32, i32
  }
  func.func @transform_4(%arg0: i32) -> (i32, i32) {
    %c0_i32 = arith.constant 0 : i32
    %c0_i32_0 = arith.constant 0 : i32
    %c0_i32_1 = arith.constant 0 : i32
    return %c0_i32, %c0_i32_0 : i32, i32
  }
  func.func @transform_5(%arg0: i32) -> (i32, i32, i32) {
    %c0_i32 = arith.constant 0 : i32
    %c0_i32_0 = arith.constant 0 : i32
    %c0_i32_1 = arith.constant 0 : i32
    return %arg0, %c0_i32, %c0_i32_0 : i32, i32, i32
  }
}

</mosaic_0001>

<bundles_post_ra>
// kernel: generator_forward.4
= control target key start
LH: loop header
LB: loop body
LE: loop exit
PB: predicated region body
PF: predicated region fallthrough
CT: control target
= control target key end

     0   :  { %10 = vsyncpa [#allocation3], 0  ;;  %s852_s0 = inlined_call_operand.vmem [shape: bf16[1,32,512], index: 0, kind: input, shape index: {}]   ;;  %s853_s1 = inlined_call_operand.hbm [shape: bf16[1,512,64], index: 1, kind: input, shape index: {}]   ;;  %s854_s2 = inlined_call_operand.hbm [shape: f32[1,64], index: 2, kind: input, shape index: {}]   ;;  %s855_s3 = inlined_call_operand.vmem [shape: f32[1,64], index: 3, kind: input, shape index: {}]   ;;  %s856_s4 = inlined_call_operand.vmem [shape: f32[1,64], index: 4, kind: input, shape index: {}]   ;;  %s857_s5 = inlined_call_operand.vmem [shape: f32[1,32,64], index: 5, kind: output, shape index: {}]  }
   0x1   :  { %11 = vsyncpa [#allocation5], 0  ;;  %s730_s18 = smov [#allocation2]   ;;  %s682_s22 = scalar_lea.hbm %s853_s1, 4096 }
   0x2   :  { %s19_s19 = sshll.u32 %s730_s18, 4  ;;  %p683_p0 = scmp.ne.s32.totalorder %s853_s1, %s682_s22  ;;  %s20_s19 = int_to_ptr.vmem [resolvable:$true] %s19_s19 }
   0x3   :  { %p686_p1 = scmp.lt.u32.totalorder %s682_s22, %s853_s1 }
   0x5   :  { %p688_p2 = pnand %p686_p1, %p683_p0 }
   0x7   :  { %691 = shalt.err (!%p688_p2)
}
   0x8   :  { %s692_s27 = scalar_lea.vmem %s20_s19, 4096  ;;  %p697_p4 = scmp.lt.s32.totalorder %s20_s19, %s20_s19 }
   0x9   :  { %p693_p3 = scmp.ne.s32.totalorder %s20_s19, %s692_s27  ;;  %p698_p5 = scmp.lt.s32.totalorder %s692_s27, %s692_s27 }
   0xb   :  { %p699_p6 = por %p698_p5, %p697_p4 }
   0xd   :  { %p700_p7 = pnand %p699_p6, %p693_p3 }
   0xf   :  { %703 = shalt.err (!%p700_p7)
}
  0x10   :  { %s731_s28 = smov 64   ;;  %s732_s29 = smov 4  }
  0x11   :  { %25 = dma.hbm_to_vmem [thread:$0]  %s853_s1, 4096, %s20_s19, [#allocation3], %s731_s28, %s731_s28, %s732_s29  }
  0x12   :  { %s733_s7 = smov [#allocation4]   ;;  %s704_s11 = scalar_lea.hbm %s854_s2, 16 }
  0x13   :  { %s32_s8 = sshll.u32 %s733_s7, 4  ;;  %p705_p8 = scmp.ne.s32.totalorder %s854_s2, %s704_s11  ;;  %s33_s8 = int_to_ptr.vmem [resolvable:$true] %s32_s8 }
  0x14   :  { %p708_p9 = scmp.lt.u32.totalorder %s704_s11, %s854_s2 }
  0x16   :  { %p710_p10 = pnand %p708_p9, %p705_p8 }
  0x18   :  { %713 = shalt.err (!%p710_p10)
}
  0x19   :  { %s714_s16 = scalar_lea.vmem %s33_s8, 16  ;;  %s718_s1 = scalar_lea.vmem %s33_s8, 32 }
  0x1a   :  { %p715_p11 = scmp.ne.s32.totalorder %s33_s8, %s714_s16  ;;  %p719_p12 = scmp.lt.s32.totalorder %s33_s8, %s33_s8 }
  0x1b   :  { %p720_p13 = scmp.lt.s32.totalorder %s718_s1, %s714_s16 }
  0x1d   :  { %p721_p0 = por %p720_p13, %p719_p12 }
  0x1f   :  { %p722_p1 = pnand %p721_p0, %p715_p11 }
  0x21   :  { %725 = shalt.err (!%p722_p1)
}
  0x22   :  { %35 = dma.hbm_to_vmem [thread:$0]  %s854_s2, 16, %s33_s8, [#allocation5]  }
  0x23   :  { %726 = dma.done.wait [#allocation3], 4096  }
  0x24   :  { %727 = vsyncadd [#allocation3], 4294963200 }
  0x25   :  { %728 = dma.done.wait [#allocation5], 16  }
  0x26   :  { %729 = vsyncadd [#allocation5], 4294967280  ;;  %v636_v0 = vld [vmem:[#allocation2 + $0x40] sm:$0xff]   ;;  %v640_v4 = vld [vmem:[#allocation2 + $0x48] sm:$0xff]   ;;  %vm456_vm0 = vcmask 523264  }
  0x27   :  { %v637_v1 = vld [vmem:[#allocation2 + $0xc0] sm:$0xff]   ;;  %576 = vmatprep.subr.bf16.mxu0 %v636_v0  ;;  %v641_v5 = vld [vmem:[#allocation2 + $0xc8] sm:$0xff]   ;;  %v644_v8 = vld [vmem:[#allocation2 + $0x50] sm:$0xff]  }
  0x28   :  { %v638_v2 = vld [vmem:[#allocation2] sm:$0xff]   ;;  %604 = vmatprep.subr.bf16.mxu1 %v637_v1  ;;  %v642_v6 = vld [vmem:[#allocation2 + $0x8] sm:$0xff]   ;;  %v645_v9 = vld [vmem:[#allocation2 + $0xd0] sm:$0xff]  }
  0x29   :  { %v639_v3 = vld [vmem:[#allocation2 + $0x80] sm:$0xff]   ;;  %577 = vmatpush3.bf16.msra.mxu0 %v638_v2  ;;  %v643_v7 = vld [vmem:[#allocation2 + $0x88] sm:$0xff]   ;;  %v646_v10 = vld [vmem:[#allocation2 + $0x10] sm:$0xff]  }
  0x2a   :  { %605 = vmatpush3.bf16.msra.mxu1 %v639_v3  ;;  %578 = vmatprep.subr.bf16.mxu0 %v640_v4  ;;  %v647_v11 = vld [vmem:[#allocation2 + $0x90] sm:$0xff]   ;;  %v648_v12 = vld [vmem:[#allocation2 + $0x58] sm:$0xff]   ;;  %v652_v16 = vld [vmem:[#allocation2 + $0x60] sm:$0xff]  }
  0x2b   :  { %606 = vmatprep.subr.bf16.mxu1 %v641_v5  ;;  %v649_v13 = vld [vmem:[#allocation2 + $0xd8] sm:$0xff]   ;;  %v653_v17 = vld [vmem:[#allocation2 + $0xe0] sm:$0xff]   ;;  %v656_v20 = vld [vmem:[#allocation2 + $0x68] sm:$0xff]  }
  0x2c   :  { %v650_v14 = vld [vmem:[#allocation2 + $0x18] sm:$0xff]   ;;  %v654_v18 = vld [vmem:[#allocation2 + $0x20] sm:$0xff]   ;;  %v657_v21 = vld [vmem:[#allocation2 + $0xe8] sm:$0xff]  }
  0x2d   :  { %579 = vmatpush3.bf16.msra.mxu0 %v642_v6  ;;  %v651_v15 = vld [vmem:[#allocation2 + $0x98] sm:$0xff]   ;;  %v655_v19 = vld [vmem:[#allocation2 + $0xa0] sm:$0xff]   ;;  %v658_v22 = vld [vmem:[#allocation2 + $0x28] sm:$0xff]  }
  0x2e   :  { %607 = vmatpush3.bf16.msra.mxu1 %v643_v7  ;;  %580 = vmatprep.subr.bf16.mxu0 %v644_v8  ;;  %v659_v23 = vld [vmem:[#allocation2 + $0xa8] sm:$0xff]   ;;  %v660_v24 = vld [vmem:[#allocation2 + $0x70] sm:$0xff]   ;;  %v664_v28 = vld [vmem:[#allocation2 + $0x78] sm:$0xff]  }
  0x2f   :  { %608 = vmatprep.subr.bf16.mxu1 %v645_v9  ;;  %v661_v25 = vld [vmem:[#allocation2 + $0xf0] sm:$0xff]   ;;  %v665_v29 = vld [vmem:[#allocation2 + $0xf8] sm:$0xff]   ;;  %v535_v42 = vld [vmem:[#allocation4] ss:$0 sm:$0xff] }
  0x30   :  { %v662_v26 = vld [vmem:[#allocation2 + $0x30] sm:$0xff]   ;;  %v666_v30 = vld [vmem:[#allocation2 + $0x38] sm:$0xff]  }
  0x31   :  { %581 = vmatpush3.bf16.msra.mxu0 %v646_v10  ;;  %v663_v27 = vld [vmem:[#allocation2 + $0xb0] sm:$0xff]   ;;  %v667_v31 = vld [vmem:[#allocation2 + $0xb8] sm:$0xff]  }
  0x32   :  { %609 = vmatpush3.bf16.msra.mxu1 %v647_v11  ;;  %582 = vmatprep.subr.bf16.mxu0 %v648_v12  ;;  %v668_v32 = vld [vmem:[%s852_s0] ss:$16 sps:$4 sm:$0xff]   ;;  %v670_v33 = vld [vmem:[%s852_s0 + $0x4] ss:$16 sps:$4 sm:$0xff]   ;;  %v671_v34 = vld [vmem:[%s852_s0 + $0x8] ss:$16 sps:$4 sm:$0xff]  }
  0x33   :  { %610 = vmatprep.subr.bf16.mxu1 %v649_v13  ;;  %v673_v35 = vld [vmem:[%s852_s0 + $0xc] ss:$16 sps:$4 sm:$0xff]   ;;  %390 = vmatprep.mubr.bf16.mxu0 %v670_v33  ;;  %v674_v36 = vld [vmem:[%s852_s0 + $0x24] ss:$16 sps:$4 sm:$0xff]   ;;  %v678_v38 = vld [vmem:[%s852_s0 + $0x20] ss:$16 sps:$4 sm:$0xff]  }
  0x34   :  { %439 = vmatprep.mubr.bf16.mxu1 %v673_v35  ;;  %v676_v37 = vld [vmem:[%s852_s0 + $0x2c] ss:$16 sps:$4 sm:$0xff]   ;;  %v679_v39 = vld [vmem:[%s852_s0 + $0x28] ss:$16 sps:$4 sm:$0xff]  }
  0x35   :  { %583 = vmatpush3.bf16.msra.mxu0 %v650_v14 }
  0x36   :  { %611 = vmatpush3.bf16.msra.mxu1 %v651_v15  ;;  %584 = vmatprep.subr.bf16.mxu0 %v652_v16 }
  0x37   :  { %612 = vmatprep.subr.bf16.mxu1 %v653_v17 }
  0x39   :  { %585 = vmatpush3.bf16.msra.mxu0 %v654_v18 }
  0x3a   :  { %613 = vmatpush3.bf16.msra.mxu1 %v655_v19  ;;  %586 = vmatprep.subr.bf16.mxu0 %v656_v20 }
  0x3b   :  { %614 = vmatprep.subr.bf16.mxu1 %v657_v21 }
  0x3d   :  { %587 = vmatpush3.bf16.msra.mxu0 %v658_v22 }
  0x3e   :  { %615 = vmatpush3.bf16.msra.mxu1 %v659_v23  ;;  %588 = vmatprep.subr.bf16.mxu0 %v660_v24 }
  0x3f   :  { %616 = vmatprep.subr.bf16.mxu1 %v661_v25 }
  0x41   :  { %589 = vmatpush3.bf16.msra.mxu0 %v662_v26 }
  0x42   :  { %617 = vmatpush3.bf16.msra.mxu1 %v663_v27  ;;  %590 = vmatprep.subr.bf16.mxu0 %v664_v28 }
  0x43   :  { %618 = vmatprep.subr.bf16.mxu1 %v665_v29 }
  0x45   :  { %591 = vmatpush3.bf16.msra.mxu0 %v666_v30 }
  0x46   :  { %619 = vmatpush3.bf16.msra.mxu1 %v667_v31 }
  0x48   :  { %391 = vmatmul.mubr.bf16.vlgmr.msra.gmra.mrb[0].mxu0 %v668_v32 }
  0x49   :  { %440 = vmatmul.mubr.bf16.vlgmr.msra.gmra.mrb[0].mxu1 %v671_v34  ;;  %398 = vmatprep.mubr.bf16.mxu0 %v674_v36 }
  0x4a   :  { %447 = vmatprep.mubr.bf16.mxu1 %v676_v37 }
  0x50   :  { %399 = vmatmul.mubr.bf16.gmra.mrb[4].mxu0 %v678_v38 }
  0x51   :  { %448 = vmatmul.mubr.bf16.gmra.mrb[4].mxu1 %v679_v39 }
 0x11b   :  { %v592_v40 = vpop.f32.mrb[0].mxu0 }
 0x11c   :  { %v620_v41 = vpop.f32.mrb[0].mxu1  ;;  %v593_v43 = vpop.f32.mrb[1].mxu0 }
 0x11d   :  { %v594_v44 = vadd.f32 %v593_v43, %v592_v40  ;;  %v621_v45 = vpop.f32.mrb[1].mxu1  ;;  %v595_v46 = vpop.f32.mrb[2].mxu0 }
 0x11e   :  { %v622_v47 = vadd.f32 %v621_v45, %v620_v41  ;;  %v623_v48 = vpop.f32.mrb[2].mxu1  ;;  %v596_v49 = vpop.f32.mrb[3].mxu0 }
 0x11f   :  { %v393_v50 = vadd.f32 %v594_v44, %v535_v42  ;;  %v597_v51 = vadd.f32 %v596_v49, %v595_v46  ;;  %v624_v52 = vpop.f32.mrb[3].mxu1  ;;  %v502_v46 = vlaneseq }
 0x120   :  { %v625_v53 = vadd.f32 %v624_v52, %v623_v48  ;;  %v494_v48 = vld [vmem:[%s855_s3] sm:$0x1] }
 0x121   :  { %v812_v54 = vadd.f32 %v622_v47, %v393_v50  ;;  %v396_v55 = vadd.f32 %v597_v51, %v535_v42  ;;  %v503_v47 = vshrl.u32 %v502_v46, 7  ;;  %v498_v52 = vld [vmem:[%s856_s4] sm:$0x1] }
 0x123   :  { %v814_v56 = vadd.f32 %v625_v53, %v396_v55  ;;  %v598_v57 = vpop.f32.mrb[4].mxu0  ;;  %v457_v7 = vsel %vm456_vm0, %v812_v54, 0.0  ;;  %v504_v49 = vsub.s32 0, %v503_v47 }
 0x124   :  { %v626_v58 = vpop.f32.mrb[4].mxu1  ;;  %v599_v59 = vpop.f32.mrb[5].mxu0 }
 0x125   :  { %v600_v60 = vadd.f32 %v599_v59, %v598_v57  ;;  %v627_v61 = vpop.f32.mrb[5].mxu1  ;;  %v601_v62 = vpop.f32.mrb[6].mxu0  ;;  %v458_v2 = vsel %vm456_vm0, %v814_v56, 0.0 }
 0x126   :  { %v628_v63 = vadd.f32 %v627_v61, %v626_v58  ;;  %v629_v0 = vpop.f32.mrb[6].mxu1  ;;  %v602_v1 = vpop.f32.mrb[7].mxu0  ;;  %v459_v10 = vadd.f32 %v458_v2, %v457_v7 }
 0x127   :  { %v401_v3 = vadd.f32 %v600_v60, %v535_v42  ;;  %v603_v4 = vadd.f32 %v602_v1, %v601_v62  ;;  %v630_v5 = vpop.f32.mrb[7].mxu1 }
 0x128   :  { %v631_v6 = vadd.f32 %v630_v5, %v629_v0 }
 0x129   :  { %v450_v8 = vadd.f32 %v628_v63, %v401_v3  ;;  %v404_v9 = vadd.f32 %v603_v4, %v535_v42 }
 0x12b   :  { %v460_v11 = vsel %vm456_vm0, %v450_v8, 0.0  ;;  %v453_v12 = vadd.f32 %v631_v6, %v404_v9 }
 0x12c   :  { %v461_v13 = vadd.f32 %v460_v11, %v459_v10 }
 0x12d   :  { %v462_v14 = vsel %vm456_vm0, %v453_v12, 0.0 }
 0x12e   :  { %v463_v15 = vadd.f32 %v462_v14, %v461_v13 }
 0x130   :  { %v464_v16 = vrot.slane %v463_v15, 4 }
 0x132   :  { %v465_v17 = vadd.f32 %v464_v16, %v463_v15 }
 0x134   :  { %v466_v18 = vrot.slane %v465_v17, 2 }
 0x136   :  { %v467_v19 = vadd.f32 %v466_v18, %v465_v17 }
 0x138   :  { %v468_v20 = vrot.slane %v467_v19, 1 }
 0x13a   :  { %v469_v21 = vadd.f32 %v468_v20, %v467_v19 }
 0x13c   :  { %v471_v22 = vmul.f32 0.03125, %v469_v21 }
 0x13e   :  { %v472_v23 = vsub.f32 %v812_v54, %v471_v22  ;;  %v473_v24 = vsub.f32 %v814_v56, %v471_v22  ;;  %v474_v25 = vsub.f32 %v450_v8, %v471_v22  ;;  %v475_v26 = vsub.f32 %v453_v12, %v471_v22 }
 0x140   :  { %v476_v27 = vmul.f32 %v472_v23, %v472_v23  ;;  %v477_v28 = vmul.f32 %v473_v24, %v473_v24  ;;  %v478_v29 = vmul.f32 %v474_v25, %v474_v25  ;;  %v479_v30 = vmul.f32 %v475_v26, %v475_v26 }
 0x142   :  { %v480_v31 = vsel %vm456_vm0, %v476_v27, 0.0  ;;  %v481_v32 = vsel %vm456_vm0, %v477_v28, 0.0  ;;  %v483_v34 = vsel %vm456_vm0, %v478_v29, 0.0  ;;  %v485_v36 = vsel %vm456_vm0, %v479_v30, 0.0 }
 0x143   :  { %v482_v33 = vadd.f32 %v481_v32, %v480_v31 }
 0x145   :  { %v484_v35 = vadd.f32 %v483_v34, %v482_v33 }
 0x147   :  { %v486_v37 = vadd.f32 %v485_v36, %v484_v35 }
 0x149   :  { %v487_v38 = vrot.slane %v486_v37, 4 }
 0x14b   :  { %v488_v39 = vadd.f32 %v487_v38, %v486_v37 }
 0x14d   :  { %v489_v40 = vrot.slane %v488_v39, 2 }
 0x14f   :  { %v490_v41 = vadd.f32 %v489_v40, %v488_v39 }
 0x151   :  { %v491_v42 = vrot.slane %v490_v41, 1 }
 0x153   :  { %v492_v43 = vadd.f32 %v491_v42, %v490_v41 }
 0x155   :  { %v493_v44 = vmul.f32 0.03125, %v492_v43 }
 0x157   :  { %v495_v45 = vadd.f32 1e-05, %v493_v44 }
 0x159   :  { %680 = vrsqrt.f32 %v495_v45 }
 0x163   :  { %v681_v50 = vpop.eup %680 }
 0x164   :  { %v497_v51 = vmul.f32 %v681_v50, %v494_v48 }
 0x166   :  { %v499_v53 = vmul.f32 %v497_v51, %v471_v22  ;;  %v505_v55 = vrot.slane %v497_v51, %v504_v49 }
 0x168   :  { %v500_v57 = vsub.f32 %v498_v52, %v499_v53  ;;  %v509_v58 = vmul.f32 %v505_v55, %v450_v8  ;;  %v510_v59 = vmul.f32 %v505_v55, %v453_v12  ;;  %v507_v60 = vmul.f32 %v505_v55, %v812_v54 }
 0x169   :  { %v508_v61 = vmul.f32 %v505_v55, %v814_v56 }
 0x16a   :  { %v515_v62 = vrot.slane %v500_v57, %v504_v49 }
 0x16c   :  { %v517_v63 = vadd.f32 %v515_v62, %v507_v60  ;;  %v518_v0 = vadd.f32 %v515_v62, %v508_v61  ;;  %v519_v1 = vadd.f32 %v515_v62, %v509_v58  ;;  %v520_v2 = vadd.f32 %v515_v62, %v510_v59 }
 0x16e   :  { %v521_v3 = vmax.f32 %v517_v63, 0.0  ;;  %v522_v4 = vmax.f32 %v518_v0, 0.0  ;;  %v523_v5 = vmax.f32 %v519_v1, 0.0  ;;  %v524_v6 = vmax.f32 %v520_v2, 0.0 }
 0x170   :  { %525 = vst.msk [vmem:[%s857_s5] sm:$0xff] %vm456_vm0, %v521_v3  ;;  %526 = vst.msk [vmem:[%s857_s5 + $0x8] sm:$0xff] %vm456_vm0, %v522_v4 }
 0x171   :  { %527 = vst.msk [vmem:[%s857_s5 + $0x10] sm:$0xff] %vm456_vm0, %v523_v5  ;;  %528 = vst.msk [vmem:[%s857_s5 + $0x18] sm:$0xff] %vm456_vm0, %v524_v6 }
 0x172   :  { %533 = vsyncpa [#allocation3], 1 }
 0x173   :  { %534 = vsyncpa [#allocation5], 1 }

// kernel: generator_forward.5
= control target key start
LH: loop header
LB: loop body
LE: loop exit
PB: predicated region body
PF: predicated region fallthrough
CT: control target
= control target key end

     0   :  { %10 = vsyncpa [#allocation3], 0  ;;  %s1485_s18 = smov [#allocation2]   ;;  %s1957_s0 = inlined_call_operand.vmem [shape: bf16[4,32,256], index: 0, kind: input, shape index: {}]   ;;  %s1958_s1 = inlined_call_operand.vmem [shape: bf16[4,256,32], index: 1, kind: input, shape index: {}]   ;;  %s1959_s2 = inlined_call_operand.hbm [shape: f32[1,32], index: 2, kind: input, shape index: {}]   ;;  %s1960_s3 = inlined_call_operand.vmem [shape: f32[1,32], index: 3, kind: input, shape index: {}]   ;;  %s1961_s4 = inlined_call_operand.vmem [shape: f32[1,32], index: 4, kind: input, shape index: {}]   ;;  %s1962_s5 = inlined_call_operand.vmem [shape: f32[4,32,32], index: 5, kind: output, shape index: {}]  }
   0x1   :  { %s21_s19 = sshll.u32 %s1485_s18, 4  ;;  %s1461_s22 = scalar_lea.hbm %s1959_s2, 16  ;;  %s22_s19 = int_to_ptr.vmem [resolvable:$true] %s21_s19 }
   0x2   :  { %p1462_p0 = scmp.ne.s32.totalorder %s1959_s2, %s1461_s22  ;;  %p1465_p1 = scmp.lt.u32.totalorder %s1461_s22, %s1959_s2 }
   0x4   :  { %p1467_p2 = pnand %p1465_p1, %p1462_p0 }
   0x6   :  { %1470 = shalt.err (!%p1467_p2)
}
   0x7   :  { %s1471_s27 = scalar_lea.vmem %s22_s19, 16  ;;  %s1475_s28 = scalar_lea.vmem %s22_s19, 32 }
   0x8   :  { %p1472_p3 = scmp.ne.s32.totalorder %s22_s19, %s1471_s27  ;;  %p1476_p4 = scmp.lt.s32.totalorder %s22_s19, %s22_s19 }
   0x9   :  { %p1477_p5 = scmp.lt.s32.totalorder %s1475_s28, %s1471_s27 }
   0xb   :  { %p1478_p6 = por %p1477_p5, %p1476_p4 }
   0xd   :  { %p1479_p7 = pnand %p1478_p6, %p1472_p3 }
   0xf   :  { %1482 = shalt.err (!%p1479_p7)
}
  0x10   :  { %24 = dma.hbm_to_vmem [thread:$0]  %s1959_s2, 16, %s22_s19, [#allocation3]  }
  0x11   :  { %1483 = dma.done.wait [#allocation3], 16  }
  0x12   :  { %1484 = vsyncadd [#allocation3], 4294967280  ;;  %v1371_v0 = vld [vmem:[%s1958_s1 + $0x40] sm:$0xff]   ;;  %v1375_v4 = vld [vmem:[%s1958_s1 + $0x48] sm:$0xff]   ;;  %vm862_vm0 = vcmask 261120  }
  0x13   :  { %v1372_v1 = vld [vmem:[%s1958_s1 + $0xc0] sm:$0xff]   ;;  %1258 = vmatprep.subr.bf16.mxu0 %v1371_v0  ;;  %v1376_v5 = vld [vmem:[%s1958_s1 + $0xc8] sm:$0xff]   ;;  %v1379_v8 = vld [vmem:[%s1958_s1 + $0x50] sm:$0xff]  }
  0x14   :  { %v1373_v2 = vld [vmem:[%s1958_s1] sm:$0xff]   ;;  %1286 = vmatprep.subr.bf16.mxu1 %v1372_v1  ;;  %v1377_v6 = vld [vmem:[%s1958_s1 + $0x8] sm:$0xff]   ;;  %v1380_v9 = vld [vmem:[%s1958_s1 + $0xd0] sm:$0xff]  }
  0x15   :  { %v1374_v3 = vld [vmem:[%s1958_s1 + $0x80] sm:$0xff]   ;;  %1259 = vmatpush3.bf16.msra.mxu0 %v1373_v2  ;;  %v1378_v7 = vld [vmem:[%s1958_s1 + $0x88] sm:$0xff]   ;;  %v1381_v10 = vld [vmem:[%s1958_s1 + $0x10] sm:$0xff]  }
  0x16   :  { %1287 = vmatpush3.bf16.msra.mxu1 %v1374_v3  ;;  %1260 = vmatprep.subr.bf16.mxu0 %v1375_v4  ;;  %v1382_v11 = vld [vmem:[%s1958_s1 + $0x90] sm:$0xff]   ;;  %v1383_v12 = vld [vmem:[%s1958_s1 + $0x58] sm:$0xff]   ;;  %v1387_v16 = vld [vmem:[%s1958_s1 + $0x60] sm:$0xff]  }
  0x17   :  { %1288 = vmatprep.subr.bf16.mxu1 %v1376_v5  ;;  %v1384_v13 = vld [vmem:[%s1958_s1 + $0xd8] sm:$0xff]   ;;  %v1388_v17 = vld [vmem:[%s1958_s1 + $0xe0] sm:$0xff]   ;;  %v1391_v20 = vld [vmem:[%s1958_s1 + $0x68] sm:$0xff]  }
  0x18   :  { %v1385_v14 = vld [vmem:[%s1958_s1 + $0x18] sm:$0xff]   ;;  %v1389_v18 = vld [vmem:[%s1958_s1 + $0x20] sm:$0xff]   ;;  %v1392_v21 = vld [vmem:[%s1958_s1 + $0xe8] sm:$0xff]  }
  0x19   :  { %1261 = vmatpush3.bf16.msra.mxu0 %v1377_v6  ;;  %v1386_v15 = vld [vmem:[%s1958_s1 + $0x98] sm:$0xff]   ;;  %v1390_v19 = vld [vmem:[%s1958_s1 + $0xa0] sm:$0xff]   ;;  %v1393_v22 = vld [vmem:[%s1958_s1 + $0x28] sm:$0xff]  }
  0x1a   :  { %1289 = vmatpush3.bf16.msra.mxu1 %v1378_v7  ;;  %1262 = vmatprep.subr.bf16.mxu0 %v1379_v8  ;;  %v1394_v23 = vld [vmem:[%s1958_s1 + $0xa8] sm:$0xff]   ;;  %v1395_v24 = vld [vmem:[%s1958_s1 + $0x70] sm:$0xff]   ;;  %v1399_v28 = vld [vmem:[%s1958_s1 + $0x78] sm:$0xff]  }
  0x1b   :  { %1290 = vmatprep.subr.bf16.mxu1 %v1380_v9  ;;  %v1396_v25 = vld [vmem:[%s1958_s1 + $0xf0] sm:$0xff]   ;;  %v1400_v29 = vld [vmem:[%s1958_s1 + $0xf8] sm:$0xff]   ;;  %v1403_v32 = vld [vmem:[%s1957_s0] ss:$8 sps:$4 sm:$0xff]  }
  0x1c   :  { %v1397_v26 = vld [vmem:[%s1958_s1 + $0x30] sm:$0xff]   ;;  %v1401_v30 = vld [vmem:[%s1958_s1 + $0x38] sm:$0xff]   ;;  %v1405_v33 = vld [vmem:[%s1957_s0 + $0x4] ss:$8 sps:$4 sm:$0xff]  }
  0x1d   :  { %1263 = vmatpush3.bf16.msra.mxu0 %v1381_v10  ;;  %v1398_v27 = vld [vmem:[%s1958_s1 + $0xb0] sm:$0xff]   ;;  %v1402_v31 = vld [vmem:[%s1958_s1 + $0xb8] sm:$0xff]   ;;  %v1406_v34 = vld [vmem:[%s1957_s0 + $0x20] ss:$8 sps:$4 sm:$0xff]   ;;  %224 = vmatprep.mubr.bf16.mxu0 %v1405_v33 }
  0x1e   :  { %1291 = vmatpush3.bf16.msra.mxu1 %v1382_v11  ;;  %1264 = vmatprep.subr.bf16.mxu0 %v1383_v12  ;;  %v1408_v35 = vld [vmem:[%s1957_s0 + $0x24] ss:$8 sps:$4 sm:$0xff]   ;;  %v1417_v44 = vld [vmem:[%s1958_s1 + $0x150] sm:$0xff]   ;;  %v1421_v48 = vld [vmem:[%s1958_s1 + $0x158] sm:$0xff]  }
  0x1f   :  { %1292 = vmatprep.subr.bf16.mxu1 %v1384_v13  ;;  %v1409_v36 = vld [vmem:[%s1958_s1 + $0x140] sm:$0xff]   ;;  %427 = vmatprep.mubr.bf16.mxu1 %v1408_v35  ;;  %v1413_v40 = vld [vmem:[%s1958_s1 + $0x148] sm:$0xff]   ;;  %v1418_v45 = vld [vmem:[%s1958_s1 + $0x1d0] sm:$0xff]  }
  0x20   :  { %v1410_v37 = vld [vmem:[%s1958_s1 + $0x1c0] sm:$0xff]   ;;  %v1414_v41 = vld [vmem:[%s1958_s1 + $0x1c8] sm:$0xff]   ;;  %v1419_v46 = vld [vmem:[%s1958_s1 + $0x110] sm:$0xff]  }
  0x21   :  { %1265 = vmatpush3.bf16.msra.mxu0 %v1385_v14  ;;  %v1411_v38 = vld [vmem:[%s1958_s1 + $0x100] sm:$0xff]   ;;  %v1415_v42 = vld [vmem:[%s1958_s1 + $0x108] sm:$0xff]   ;;  %v1420_v47 = vld [vmem:[%s1958_s1 + $0x190] sm:$0xff]  }
  0x22   :  { %1293 = vmatpush3.bf16.msra.mxu1 %v1386_v15  ;;  %1266 = vmatprep.subr.bf16.mxu0 %v1387_v16  ;;  %v1412_v39 = vld [vmem:[%s1958_s1 + $0x180] sm:$0xff]   ;;  %v1416_v43 = vld [vmem:[%s1958_s1 + $0x188] sm:$0xff]   ;;  %v1422_v49 = vld [vmem:[%s1958_s1 + $0x1d8] sm:$0xff]  }
  0x23   :  { %1294 = vmatprep.subr.bf16.mxu1 %v1388_v17  ;;  %v1423_v50 = vld [vmem:[%s1958_s1 + $0x118] sm:$0xff]   ;;  %v1425_v52 = vld [vmem:[%s1958_s1 + $0x160] sm:$0xff]   ;;  %v1433_v58 = vld [vmem:[%s1958_s1 + $0x168] sm:$0xff]  }
  0x24   :  { %v1424_v51 = vld [vmem:[%s1958_s1 + $0x198] sm:$0xff]   ;;  %v1426_v53 = vld [vmem:[%s1958_s1 + $0x1e0] sm:$0xff]   ;;  %v1434_v59 = vld [vmem:[%s1958_s1 + $0x1e8] sm:$0xff]  }
  0x25   :  { %1267 = vmatpush3.bf16.msra.mxu0 %v1389_v18  ;;  %v1427_v54 = vld [vmem:[%s1958_s1 + $0x120] sm:$0xff]   ;;  %v1429_v56 = vld [vmem:[%s1957_s0 + $0x14] ss:$8 sps:$4 sm:$0xff]   ;;  %v1435_v60 = vld [vmem:[%s1957_s0 + $0x10] ss:$8 sps:$4 sm:$0xff]  }
  0x26   :  { %1295 = vmatpush3.bf16.msra.mxu1 %v1390_v19  ;;  %1268 = vmatprep.subr.bf16.mxu0 %v1391_v20  ;;  %v1428_v55 = vld [vmem:[%s1958_s1 + $0x1a0] sm:$0xff]   ;;  %v1431_v57 = vld [vmem:[%s1957_s0 + $0x34] ss:$8 sps:$4 sm:$0xff]   ;;  %v1436_v61 = vld [vmem:[%s1957_s0 + $0x30] ss:$8 sps:$4 sm:$0xff]  }
  0x27   :  { %1296 = vmatprep.subr.bf16.mxu1 %v1392_v21  ;;  %v1437_v62 = vld [vmem:[%s1958_s1 + $0x128] sm:$0xff]   ;;  %v1439_v0 = vld [vmem:[%s1958_s1 + $0x170] sm:$0xff]   ;;  %v1443_v4 = vld [vmem:[%s1958_s1 + $0x178] sm:$0xff]  }
  0x28   :  { %v1438_v63 = vld [vmem:[%s1958_s1 + $0x1a8] sm:$0xff]   ;;  %v1440_v1 = vld [vmem:[%s1958_s1 + $0x1f0] sm:$0xff]   ;;  %v1444_v5 = vld [vmem:[%s1958_s1 + $0x1f8] sm:$0xff]  }
  0x29   :  { %1269 = vmatpush3.bf16.msra.mxu0 %v1393_v22  ;;  %v1441_v2 = vld [vmem:[%s1958_s1 + $0x130] sm:$0xff]   ;;  %v1445_v6 = vld [vmem:[%s1958_s1 + $0x138] sm:$0xff]   ;;  %v1447_v8 = vld [vmem:[%s1957_s0 + $0x40] ss:$8 sps:$4 sm:$0xff]  }
  0x2a   :  { %1297 = vmatpush3.bf16.msra.mxu1 %v1394_v23  ;;  %1270 = vmatprep.subr.bf16.mxu0 %v1395_v24  ;;  %v1442_v3 = vld [vmem:[%s1958_s1 + $0x1b0] sm:$0xff]   ;;  %v1446_v7 = vld [vmem:[%s1958_s1 + $0x1b8] sm:$0xff]   ;;  %v1449_v9 = vld [vmem:[%s1957_s0 + $0x44] ss:$8 sps:$4 sm:$0xff]  }
  0x2b   :  { %1298 = vmatprep.subr.bf16.mxu1 %v1396_v25  ;;  %v1450_v10 = vld [vmem:[%s1957_s0 + $0x60] ss:$8 sps:$4 sm:$0xff]   ;;  %v1452_v11 = vld [vmem:[%s1957_s0 + $0x64] ss:$8 sps:$4 sm:$0xff]   ;;  %v1453_v12 = vld [vmem:[%s1957_s0 + $0x54] ss:$8 sps:$4 sm:$0xff]  }
  0x2c   :  { %v1455_v13 = vld [vmem:[%s1957_s0 + $0x74] ss:$8 sps:$4 sm:$0xff]   ;;  %v1457_v14 = vld [vmem:[%s1957_s0 + $0x50] ss:$8 sps:$4 sm:$0xff]  }
  0x2d   :  { %1271 = vmatpush3.bf16.msra.mxu0 %v1397_v26  ;;  %v1458_v15 = vld [vmem:[%s1957_s0 + $0x70] ss:$8 sps:$4 sm:$0xff]  }
  0x2e   :  { %1299 = vmatpush3.bf16.msra.mxu1 %v1398_v27  ;;  %1272 = vmatprep.subr.bf16.mxu0 %v1399_v28 }
  0x2f   :  { %1300 = vmatprep.subr.bf16.mxu1 %v1400_v29 }
  0x31   :  { %1273 = vmatpush3.bf16.msra.mxu0 %v1401_v30 }
  0x32   :  { %1301 = vmatpush3.bf16.msra.mxu1 %v1402_v31  ;;  %1314 = vmatprep.subr.bf16.mxu0 %v1409_v36 }
  0x33   :  { %1342 = vmatprep.subr.bf16.mxu1 %v1410_v37 }
  0x34   :  { %225 = vmatmul.mubr.bf16.vlgmr.msra.gmra.mrb[0].mxu0 %v1403_v32 }
  0x35   :  { %428 = vmatmul.mubr.bf16.vlgmr.msra.gmra.mrb[0].mxu1 %v1406_v34  ;;  %1315 = vmatpush3.bf16.msra.mxu0 %v1411_v38 }
  0x36   :  { %1343 = vmatpush3.bf16.msra.mxu1 %v1412_v39  ;;  %1316 = vmatprep.subr.bf16.mxu0 %v1413_v40  ;;  %v1057_v40 = vld [vmem:[#allocation2] ss:$0 sm:$0xff] }
  0x37   :  { %1344 = vmatprep.subr.bf16.mxu1 %v1414_v41  ;;  %232 = vmatprep.mubr.bf16.mxu0 %v1429_v56 }
  0x38   :  { %435 = vmatprep.mubr.bf16.mxu1 %v1431_v57 }
  0x39   :  { %1317 = vmatpush3.bf16.msra.mxu0 %v1415_v42 }
  0x3a   :  { %1345 = vmatpush3.bf16.msra.mxu1 %v1416_v43  ;;  %1318 = vmatprep.subr.bf16.mxu0 %v1417_v44 }
  0x3b   :  { %1346 = vmatprep.subr.bf16.mxu1 %v1418_v45 }
  0x3c   :  { %233 = vmatmul.mubr.bf16.gmra.mrb[4].mxu0 %v1435_v60 }
  0x3d   :  { %1319 = vmatpush3.bf16.msra.mxu0 %v1419_v46  ;;  %436 = vmatmul.mubr.bf16.gmra.mrb[4].mxu1 %v1436_v61 }
  0x3e   :  { %1347 = vmatpush3.bf16.msra.mxu1 %v1420_v47  ;;  %1320 = vmatprep.subr.bf16.mxu0 %v1421_v48 }
  0x3f   :  { %1348 = vmatprep.subr.bf16.mxu1 %v1422_v49  ;;  %630 = vmatprep.mubr.bf16.mxu0 %v1449_v9 }
  0x40   :  { %833 = vmatprep.mubr.bf16.mxu1 %v1452_v11 }
  0x41   :  { %1321 = vmatpush3.bf16.msra.mxu0 %v1423_v50 }
  0x42   :  { %1349 = vmatpush3.bf16.msra.mxu1 %v1424_v51  ;;  %1322 = vmatprep.subr.bf16.mxu0 %v1425_v52 }
  0x43   :  { %1350 = vmatprep.subr.bf16.mxu1 %v1426_v53 }
  0x45   :  { %1323 = vmatpush3.bf16.msra.mxu0 %v1427_v54 }
  0x46   :  { %1351 = vmatpush3.bf16.msra.mxu1 %v1428_v55  ;;  %1324 = vmatprep.subr.bf16.mxu0 %v1433_v58 }
  0x47   :  { %1352 = vmatprep.subr.bf16.mxu1 %v1434_v59 }
  0x49   :  { %1325 = vmatpush3.bf16.msra.mxu0 %v1437_v62 }
  0x4a   :  { %1353 = vmatpush3.bf16.msra.mxu1 %v1438_v63  ;;  %1326 = vmatprep.subr.bf16.mxu0 %v1439_v0 }
  0x4b   :  { %1354 = vmatprep.subr.bf16.mxu1 %v1440_v1 }
  0x4d   :  { %1327 = vmatpush3.bf16.msra.mxu0 %v1441_v2 }
  0x4e   :  { %1355 = vmatpush3.bf16.msra.mxu1 %v1442_v3  ;;  %1328 = vmatprep.subr.bf16.mxu0 %v1443_v4 }
  0x4f   :  { %1356 = vmatprep.subr.bf16.mxu1 %v1444_v5 }
  0x51   :  { %1329 = vmatpush3.bf16.msra.mxu0 %v1445_v6 }
  0x52   :  { %1357 = vmatpush3.bf16.msra.mxu1 %v1446_v7 }
  0x54   :  { %631 = vmatmul.mubr.bf16.vlgmr.msra.gmra.mrb[8].mxu0 %v1447_v8 }
  0x55   :  { %834 = vmatmul.mubr.bf16.vlgmr.msra.gmra.mrb[8].mxu1 %v1450_v10  ;;  %638 = vmatprep.mubr.bf16.mxu0 %v1453_v12 }
  0x56   :  { %841 = vmatprep.mubr.bf16.mxu1 %v1455_v13 }
  0x5c   :  { %639 = vmatmul.mubr.bf16.gmra.mrb[12].mxu0 %v1457_v14 }
  0x5d   :  { %842 = vmatmul.mubr.bf16.gmra.mrb[12].mxu1 %v1458_v15 }
 0x107   :  { %v1274_v16 = vpop.f32.mrb[0].mxu0 }
 0x108   :  { %v1302_v17 = vpop.f32.mrb[0].mxu1  ;;  %v1275_v18 = vpop.f32.mrb[1].mxu0 }
 0x109   :  { %v1276_v19 = vadd.f32 %v1275_v18, %v1274_v16  ;;  %v1303_v20 = vpop.f32.mrb[1].mxu1  ;;  %v1277_v21 = vpop.f32.mrb[2].mxu0 }
 0x10a   :  { %v1304_v22 = vadd.f32 %v1303_v20, %v1302_v17  ;;  %v1305_v23 = vpop.f32.mrb[2].mxu1  ;;  %v1278_v24 = vpop.f32.mrb[3].mxu0 }
 0x10b   :  { %v1279_v25 = vadd.f32 %v1278_v24, %v1277_v21  ;;  %v1306_v26 = vpop.f32.mrb[3].mxu1  ;;  %v1768_v42 = vadd.f32 %v1276_v19, %v1057_v40 }
 0x10c   :  { %v1307_v27 = vadd.f32 %v1306_v26, %v1305_v23  ;;  %v1770_v45 = vadd.f32 %v1304_v22, %v1057_v40 }
 0x10d   :  { %v1772_v46 = vadd.f32 %v1279_v25, %v1057_v40 }
 0x10e   :  { %v1774_v47 = vadd.f32 %v1307_v27, %v1057_v40  ;;  %v850_v58 = vadd.f32 %v1770_v45, %v1768_v42 }
 0x10f   :  { %v1280_v28 = vpop.f32.mrb[4].mxu0 }
 0x110   :  { %v1308_v29 = vpop.f32.mrb[4].mxu1  ;;  %v1281_v30 = vpop.f32.mrb[5].mxu0  ;;  %v851_v59 = vadd.f32 %v1774_v47, %v1772_v46 }
 0x111   :  { %v1282_v31 = vadd.f32 %v1281_v30, %v1280_v28  ;;  %v1309_v32 = vpop.f32.mrb[5].mxu1  ;;  %v1283_v33 = vpop.f32.mrb[6].mxu0 }
 0x112   :  { %v1310_v34 = vadd.f32 %v1309_v32, %v1308_v29  ;;  %v1311_v35 = vpop.f32.mrb[6].mxu1  ;;  %v1284_v36 = vpop.f32.mrb[7].mxu0 }
 0x113   :  { %v1285_v37 = vadd.f32 %v1284_v36, %v1283_v33  ;;  %v1312_v38 = vpop.f32.mrb[7].mxu1  ;;  %v1784_v61 = vadd.f32 %v1282_v31, %v1057_v40 }
 0x114   :  { %v1313_v39 = vadd.f32 %v1312_v38, %v1311_v35  ;;  %v1786_v62 = vadd.f32 %v1310_v34, %v1057_v40 }
 0x115   :  { %v1794_v6 = vadd.f32 %v1285_v37, %v1057_v40 }
 0x116   :  { %v1796_v7 = vadd.f32 %v1313_v39, %v1057_v40  ;;  %v852_v15 = vadd.f32 %v1786_v62, %v1784_v61 }
 0x118   :  { %v853_v22 = vadd.f32 %v1796_v7, %v1794_v6 }
 0x127   :  { %v1330_v41 = vpop.f32.mrb[8].mxu0 }
 0x128   :  { %v1358_v43 = vpop.f32.mrb[8].mxu1  ;;  %v1331_v44 = vpop.f32.mrb[9].mxu0 }
 0x129   :  { %v1332_v48 = vadd.f32 %v1331_v44, %v1330_v41  ;;  %v1359_v49 = vpop.f32.mrb[9].mxu1  ;;  %v1333_v50 = vpop.f32.mrb[10].mxu0 }
 0x12a   :  { %v1360_v51 = vadd.f32 %v1359_v49, %v1358_v43  ;;  %v1361_v52 = vpop.f32.mrb[10].mxu1  ;;  %v1334_v53 = vpop.f32.mrb[11].mxu0 }
 0x12b   :  { %v1776_v54 = vadd.f32 %v1332_v48, %v1057_v40  ;;  %v1335_v55 = vadd.f32 %v1334_v53, %v1333_v50  ;;  %v1362_v56 = vpop.f32.mrb[11].mxu1 }
 0x12c   :  { %v1363_v57 = vadd.f32 %v1362_v56, %v1361_v52  ;;  %v1789_v0 = vadd.f32 %v1360_v51, %v1057_v40 }
 0x12d   :  { %v1782_v60 = vadd.f32 %v1335_v55, %v1057_v40  ;;  %v854_v63 = vadd.f32 %v850_v58, %v1776_v54 }
 0x12e   :  { %v1792_v2 = vadd.f32 %v1363_v57, %v1057_v40 }
 0x12f   :  { %v855_v1 = vadd.f32 %v851_v59, %v1782_v60  ;;  %v1336_v3 = vpop.f32.mrb[12].mxu0  ;;  %v858_v16 = vadd.f32 %v854_v63, %v1789_v0 }
 0x130   :  { %v1364_v4 = vpop.f32.mrb[12].mxu1  ;;  %v1337_v5 = vpop.f32.mrb[13].mxu0 }
 0x131   :  { %v859_v8 = vadd.f32 %v855_v1, %v1792_v2  ;;  %v1338_v9 = vadd.f32 %v1337_v5, %v1336_v3  ;;  %v1365_v10 = vpop.f32.mrb[13].mxu1  ;;  %v1339_v11 = vpop.f32.mrb[14].mxu0  ;;  %v863_v26 = vsel %vm862_vm0, %v858_v16, 0.0 }
 0x132   :  { %v1366_v12 = vadd.f32 %v1365_v10, %v1364_v4  ;;  %v1367_v13 = vpop.f32.mrb[14].mxu1  ;;  %v1340_v14 = vpop.f32.mrb[15].mxu0 }
 0x133   :  { %v1802_v17 = vadd.f32 %v1338_v9, %v1057_v40  ;;  %v1341_v18 = vadd.f32 %v1340_v14, %v1339_v11  ;;  %v1368_v19 = vpop.f32.mrb[15].mxu1  ;;  %v864_v23 = vsel %vm862_vm0, %v859_v8, 0.0 }
 0x134   :  { %v1804_v20 = vadd.f32 %v1366_v12, %v1057_v40  ;;  %v1369_v21 = vadd.f32 %v1368_v19, %v1367_v13  ;;  %v865_v30 = vadd.f32 %v864_v23, %v863_v26 }
 0x135   :  { %v856_v24 = vadd.f32 %v852_v15, %v1802_v17  ;;  %v1810_v25 = vadd.f32 %v1341_v18, %v1057_v40 }
 0x136   :  { %v1815_v29 = vadd.f32 %v1369_v21, %v1057_v40 }
 0x137   :  { %v860_v27 = vadd.f32 %v856_v24, %v1804_v20  ;;  %v857_v28 = vadd.f32 %v853_v22, %v1810_v25 }
 0x139   :  { %v866_v31 = vsel %vm862_vm0, %v860_v27, 0.0  ;;  %v861_v32 = vadd.f32 %v857_v28, %v1815_v29 }
 0x13a   :  { %v867_v33 = vadd.f32 %v866_v31, %v865_v30 }
 0x13b   :  { %v868_v34 = vsel %vm862_vm0, %v861_v32, 0.0 }
 0x13c   :  { %v869_v35 = vadd.f32 %v868_v34, %v867_v33 }
 0x13e   :  { %v870_v36 = vrot.slane %v869_v35, 4 }
 0x140   :  { %v871_v37 = vadd.f32 %v870_v36, %v869_v35 }
 0x142   :  { %v872_v38 = vrot.slane %v871_v37, 2 }
 0x144   :  { %v873_v39 = vadd.f32 %v872_v38, %v871_v37 }
 0x146   :  { %v874_v41 = vrot.slane %v873_v39, 1 }
 0x148   :  { %v875_v43 = vadd.f32 %v874_v41, %v873_v39 }
 0x14a   :  { %v1820_v44 = vmul.f32 0.0078125, %v875_v43 }
 0x14c   :  { %v878_v40 = vsub.f32 %v1768_v42, %v1820_v44  ;;  %v879_v48 = vsub.f32 %v1772_v46, %v1820_v44  ;;  %v880_v49 = vsub.f32 %v1784_v61, %v1820_v44  ;;  %v881_v50 = vsub.f32 %v1794_v6, %v1820_v44 }
 0x14d   :  { %v899_v51 = vsub.f32 %v1770_v45, %v1820_v44  ;;  %v900_v52 = vsub.f32 %v1774_v47, %v1820_v44  ;;  %v901_v53 = vsub.f32 %v1786_v62, %v1820_v44  ;;  %v902_v55 = vsub.f32 %v1796_v7, %v1820_v44 }
 0x14e   :  { %v882_v56 = vmul.f32 %v878_v40, %v878_v40  ;;  %v883_v57 = vmul.f32 %v879_v48, %v879_v48  ;;  %v884_v58 = vmul.f32 %v880_v49, %v880_v49  ;;  %v885_v59 = vmul.f32 %v881_v50, %v881_v50 }
 0x14f   :  { %v903_v63 = vmul.f32 %v899_v51, %v899_v51  ;;  %v904_v1 = vmul.f32 %v900_v52, %v900_v52  ;;  %v905_v3 = vmul.f32 %v901_v53, %v901_v53  ;;  %v906_v4 = vmul.f32 %v902_v55, %v902_v55 }
 0x150   :  { %v886_v5 = vsel %vm862_vm0, %v882_v56, 0.0  ;;  %v887_v8 = vsel %vm862_vm0, %v883_v57, 0.0  ;;  %v889_v9 = vsel %vm862_vm0, %v884_v58, 0.0  ;;  %v891_v10 = vsel %vm862_vm0, %v885_v59, 0.0 }
 0x151   :  { %v888_v11 = vadd.f32 %v887_v8, %v886_v5  ;;  %v907_v12 = vsel %vm862_vm0, %v903_v63, 0.0  ;;  %v908_v13 = vsel %vm862_vm0, %v904_v1, 0.0  ;;  %v910_v14 = vsel %vm862_vm0, %v905_v3, 0.0 }
 0x152   :  { %v909_v15 = vadd.f32 %v908_v13, %v907_v12  ;;  %v912_v16 = vsel %vm862_vm0, %v906_v4, 0.0  ;;  %v921_v18 = vsub.f32 %v1776_v54, %v1820_v44  ;;  %v922_v19 = vsub.f32 %v1782_v60, %v1820_v44 }
 0x153   :  { %v890_v21 = vadd.f32 %v889_v9, %v888_v11  ;;  %v923_v22 = vsub.f32 %v1802_v17, %v1820_v44  ;;  %v924_v23 = vsub.f32 %v1810_v25, %v1820_v44  ;;  %v943_v24 = vsub.f32 %v1789_v0, %v1820_v44 }
 0x154   :  { %v911_v26 = vadd.f32 %v910_v14, %v909_v15  ;;  %v925_v27 = vmul.f32 %v921_v18, %v921_v18  ;;  %v926_v28 = vmul.f32 %v922_v19, %v922_v19  ;;  %v944_v30 = vsub.f32 %v1792_v2, %v1820_v44 }
 0x155   :  { %v892_v31 = vadd.f32 %v891_v10, %v890_v21  ;;  %v927_v32 = vmul.f32 %v923_v22, %v923_v22  ;;  %v928_v33 = vmul.f32 %v924_v23, %v924_v23  ;;  %v945_v34 = vsub.f32 %v1804_v20, %v1820_v44 }
 0x156   :  { %v913_v35 = vadd.f32 %v912_v16, %v911_v26  ;;  %v929_v36 = vsel %vm862_vm0, %v925_v27, 0.0  ;;  %v930_v37 = vsel %vm862_vm0, %v926_v28, 0.0  ;;  %v946_v38 = vsub.f32 %v1815_v29, %v1820_v44 }
 0x157   :  { %v893_v39 = vrot.slane %v892_v31, 4  ;;  %v931_v41 = vadd.f32 %v930_v37, %v929_v36  ;;  %v932_v43 = vsel %vm862_vm0, %v927_v32, 0.0  ;;  %v947_v48 = vmul.f32 %v943_v24, %v943_v24 }
 0x158   :  { %v914_v40 = vrot.slane %v913_v35, 4  ;;  %v948_v49 = vmul.f32 %v944_v30, %v944_v30  ;;  %v949_v50 = vmul.f32 %v945_v34, %v945_v34  ;;  %v934_v53 = vsel %vm862_vm0, %v928_v33, 0.0 }
 0x159   :  { %v894_v51 = vadd.f32 %v893_v39, %v892_v31  ;;  %v933_v52 = vadd.f32 %v932_v43, %v931_v41  ;;  %v950_v56 = vmul.f32 %v946_v38, %v946_v38  ;;  %v951_v57 = vsel %vm862_vm0, %v947_v48, 0.0  ;;  %v966_v39 = vld [vmem:[%s1960_s3] sm:$0x1] }
 0x15a   :  { %v915_v55 = vadd.f32 %v914_v40, %v913_v35  ;;  %v952_v58 = vsel %vm862_vm0, %v948_v49, 0.0  ;;  %v954_v4 = vsel %vm862_vm0, %v949_v50, 0.0  ;;  %v974_v37 = vlaneseq  ;;  %v970_v48 = vld [vmem:[%s1961_s4] sm:$0x1] }
 0x15b   :  { %v895_v59 = vrot.slane %v894_v51, 2  ;;  %v935_v63 = vadd.f32 %v934_v53, %v933_v52  ;;  %v953_v1 = vadd.f32 %v952_v58, %v951_v57  ;;  %v956_v11 = vsel %vm862_vm0, %v950_v56, 0.0 }
 0x15c   :  { %v916_v3 = vrot.slane %v915_v55, 2  ;;  %v975_v38 = vshrl.u32 %v974_v37, 7 }
 0x15d   :  { %v896_v5 = vadd.f32 %v895_v59, %v894_v51  ;;  %v936_v8 = vrot.slane %v935_v63, 4  ;;  %v955_v9 = vadd.f32 %v954_v4, %v953_v1 }
 0x15e   :  { %v917_v10 = vadd.f32 %v916_v3, %v915_v55  ;;  %v976_v41 = vsub.s32 0, %v975_v38 }
 0x15f   :  { %v897_v12 = vrot.slane %v896_v5, 1  ;;  %v937_v13 = vadd.f32 %v936_v8, %v935_v63  ;;  %v957_v14 = vadd.f32 %v956_v11, %v955_v9 }
 0x160   :  { %v918_v15 = vrot.slane %v917_v10, 1 }
 0x161   :  { %v898_v16 = vadd.f32 %v897_v12, %v896_v5  ;;  %v938_v18 = vrot.slane %v937_v13, 2  ;;  %v958_v19 = vrot.slane %v957_v14, 4 }
 0x162   :  { %v919_v21 = vadd.f32 %v918_v15, %v917_v10 }
 0x163   :  { %v939_v22 = vadd.f32 %v938_v18, %v937_v13  ;;  %v959_v23 = vadd.f32 %v958_v19, %v957_v14 }
 0x164   :  { %v920_v24 = vadd.f32 %v919_v21, %v898_v16 }
 0x165   :  { %v940_v26 = vrot.slane %v939_v22, 1  ;;  %v960_v27 = vrot.slane %v959_v23, 2 }
 0x167   :  { %v941_v28 = vadd.f32 %v940_v26, %v939_v22  ;;  %v961_v30 = vadd.f32 %v960_v27, %v959_v23 }
 0x169   :  { %v942_v31 = vadd.f32 %v941_v28, %v920_v24  ;;  %v962_v32 = vrot.slane %v961_v30, 1 }
 0x16b   :  { %v963_v33 = vadd.f32 %v962_v32, %v961_v30 }
 0x16d   :  { %v964_v34 = vadd.f32 %v963_v33, %v942_v31 }
 0x16f   :  { %v965_v35 = vmul.f32 0.0078125, %v964_v34 }
 0x171   :  { %v967_v36 = vadd.f32 1e-05, %v965_v35 }
 0x173   :  { %1459 = vrsqrt.f32 %v967_v36 }
 0x17d   :  { %v1460_v43 = vpop.eup %1459 }
 0x17e   :  { %v969_v40 = vmul.f32 %v1460_v43, %v966_v39 }
 0x180   :  { %v971_v49 = vmul.f32 %v969_v40, %v1820_v44  ;;  %v977_v50 = vrot.slane %v969_v40, %v976_v41 }
 0x182   :  { %v972_v51 = vsub.f32 %v970_v48, %v971_v49  ;;  %v979_v52 = vmul.f32 %v977_v50, %v1768_v42  ;;  %v980_v53 = vmul.f32 %v977_v50, %v1772_v46  ;;  %v981_v55 = vmul.f32 %v977_v50, %v1784_v61 }
 0x183   :  { %v982_v56 = vmul.f32 %v977_v50, %v1794_v6  ;;  %v1001_v57 = vmul.f32 %v977_v50, %v1770_v45  ;;  %v1002_v58 = vmul.f32 %v977_v50, %v1774_v47  ;;  %v1003_v59 = vmul.f32 %v977_v50, %v1786_v62 }
 0x184   :  { %v987_v63 = vrot.slane %v972_v51, %v976_v41  ;;  %v1004_v1 = vmul.f32 %v977_v50, %v1796_v7  ;;  %v1018_v44 = vmul.f32 %v977_v50, %v1776_v54  ;;  %v1019_v3 = vmul.f32 %v977_v50, %v1782_v60 }
 0x185   :  { %v1020_v42 = vmul.f32 %v977_v50, %v1802_v17  ;;  %v1021_v46 = vmul.f32 %v977_v50, %v1810_v25  ;;  %v1035_v61 = vmul.f32 %v977_v50, %v1789_v0  ;;  %v1036_v6 = vmul.f32 %v977_v50, %v1792_v2 }
 0x186   :  { %v989_v45 = vadd.f32 %v987_v63, %v979_v52  ;;  %v990_v4 = vadd.f32 %v987_v63, %v980_v53  ;;  %v991_v47 = vadd.f32 %v987_v63, %v981_v55  ;;  %v992_v5 = vadd.f32 %v987_v63, %v982_v56 }
 0x187   :  { %v1005_v62 = vadd.f32 %v1001_v57, %v987_v63  ;;  %v1006_v8 = vadd.f32 %v1002_v58, %v987_v63  ;;  %v1007_v9 = vadd.f32 %v1003_v59, %v987_v63  ;;  %v1008_v7 = vadd.f32 %v1004_v1, %v987_v63 }
 0x188   :  { %v993_v10 = vmax.f32 %v989_v45, 0.0  ;;  %v994_v54 = vmax.f32 %v990_v4, 0.0  ;;  %v995_v11 = vmax.f32 %v991_v47, 0.0  ;;  %v996_v60 = vmax.f32 %v992_v5, 0.0 }
 0x189   :  { %v1009_v12 = vmax.f32 %v1005_v62, 0.0  ;;  %v1010_v17 = vmax.f32 %v1006_v8, 0.0  ;;  %v1011_v13 = vmax.f32 %v1007_v9, 0.0  ;;  %v1012_v25 = vmax.f32 %v1008_v7, 0.0 }
 0x18a   :  { %997 = vst.msk [vmem:[%s1962_s5] sm:$0xff] %vm862_vm0, %v993_v10  ;;  %998 = vst.msk [vmem:[%s1962_s5 + $0x8] sm:$0xff] %vm862_vm0, %v994_v54  ;;  %v1022_v0 = vadd.f32 %v1018_v44, %v987_v63  ;;  %v1023_v2 = vadd.f32 %v1019_v3, %v987_v63  ;;  %v1024_v14 = vadd.f32 %v1020_v42, %v987_v63 }
 0x18b   :  { %999 = vst.msk [vmem:[%s1962_s5 + $0x10] sm:$0xff] %vm862_vm0, %v995_v11  ;;  %1000 = vst.msk [vmem:[%s1962_s5 + $0x18] sm:$0xff] %vm862_vm0, %v996_v60  ;;  %v1025_v15 = vadd.f32 %v1021_v46, %v987_v63  ;;  %v1037_v16 = vmul.f32 %v977_v50, %v1804_v20  ;;  %v1038_v18 = vmul.f32 %v977_v50, %v1815_v29 }
 0x18c   :  { %1246 = vst.msk [vmem:[%s1962_s5 + $0x20] sm:$0xff] %vm862_vm0, %v1009_v12  ;;  %1247 = vst.msk [vmem:[%s1962_s5 + $0x28] sm:$0xff] %vm862_vm0, %v1010_v17  ;;  %v1039_v19 = vadd.f32 %v1035_v61, %v987_v63  ;;  %v1040_v21 = vadd.f32 %v1036_v6, %v987_v63  ;;  %v1026_v22 = vmax.f32 %v1022_v0, 0.0  ;;  %v1027_v23 = vmax.f32 %v1023_v2, 0.0 }
 0x18d   :  { %1248 = vst.msk [vmem:[%s1962_s5 + $0x30] sm:$0xff] %vm862_vm0, %v1011_v13  ;;  %1249 = vst.msk [vmem:[%s1962_s5 + $0x38] sm:$0xff] %vm862_vm0, %v1012_v25  ;;  %v1028_v24 = vmax.f32 %v1024_v14, 0.0  ;;  %v1029_v26 = vmax.f32 %v1025_v15, 0.0  ;;  %v1041_v27 = vadd.f32 %v1037_v16, %v987_v63  ;;  %v1042_v28 = vadd.f32 %v1038_v18, %v987_v63 }
 0x18e   :  { %v1043_v30 = vmax.f32 %v1039_v19, 0.0  ;;  %v1044_v31 = vmax.f32 %v1040_v21, 0.0  ;;  %1250 = vst.msk [vmem:[%s1962_s5 + $0x40] sm:$0xff] %vm862_vm0, %v1026_v22  ;;  %1251 = vst.msk [vmem:[%s1962_s5 + $0x48] sm:$0xff] %vm862_vm0, %v1027_v23 }
 0x18f   :  { %1252 = vst.msk [vmem:[%s1962_s5 + $0x50] sm:$0xff] %vm862_vm0, %v1028_v24  ;;  %1253 = vst.msk [vmem:[%s1962_s5 + $0x58] sm:$0xff] %vm862_vm0, %v1029_v26  ;;  %v1045_v20 = vmax.f32 %v1041_v27, 0.0  ;;  %v1046_v29 = vmax.f32 %v1042_v28, 0.0 }
 0x190   :  { %1254 = vst.msk [vmem:[%s1962_s5 + $0x60] sm:$0xff] %vm862_vm0, %v1043_v30  ;;  %1255 = vst.msk [vmem:[%s1962_s5 + $0x68] sm:$0xff] %vm862_vm0, %v1044_v31 }
 0x191   :  { %1256 = vst.msk [vmem:[%s1962_s5 + $0x70] sm:$0xff] %vm862_vm0, %v1045_v20  ;;  %1257 = vst.msk [vmem:[%s1962_s5 + $0x78] sm:$0xff] %vm862_vm0, %v1046_v29 }
 0x192   :  { %1056 = vsyncpa [#allocation3], 1 }

// kernel: generator_forward.6
= control target key start
LH: loop header
LB: loop body
LE: loop exit
PB: predicated region body
PF: predicated region fallthrough
CT: control target
= control target key end

     0   :  { %vm982_vm0 = vcmask 130048   ;;  %s3272_s1 = inlined_call_operand.vmem [shape: bf16[4,128,16], index: 1, kind: input, shape index: {}]   ;;  %s3273_s0 = inlined_call_operand.vmem [shape: bf16[4,128,128], index: 0, kind: input, shape index: {}]   ;;  %s3274_s2 = inlined_call_operand.vmem [shape: f32[1,16], index: 2, kind: input, shape index: {}]   ;;  %s3275_s3 = inlined_call_operand.vmem [shape: f32[1,16], index: 3, kind: input, shape index: {}]   ;;  %s3276_s4 = inlined_call_operand.vmem [shape: f32[1,16], index: 4, kind: input, shape index: {}]   ;;  %s3277_s5 = inlined_call_operand.vmem [shape: f32[4,128,16], index: 5, kind: output, shape index: {}]  }
   0x1   :  { %v1985_v0 = vld [vmem:[%s3272_s1] sm:$0xff]   ;;  %v1987_v2 = vld [vmem:[%s3272_s1 + $0x8] sm:$0xff]   ;;  %v1989_v4 = vld [vmem:[%s3272_s1 + $0x10] sm:$0xff]  }
   0x2   :  { %v1986_v1 = vld [vmem:[%s3272_s1 + $0x40] sm:$0xff]   ;;  %1857 = vmatprep.subr.bf16.mxu0 %v1985_v0  ;;  %v1988_v3 = vld [vmem:[%s3272_s1 + $0x48] sm:$0xff]   ;;  %v1990_v5 = vld [vmem:[%s3272_s1 + $0x50] sm:$0xff]  }
   0x3   :  { %1889 = vmatprep.subr.bf16.mxu1 %v1986_v1  ;;  %1858 = vmatpush3.bf16.msra.mxu0 %v1985_v0  ;;  %v1991_v6 = vld [vmem:[%s3272_s1 + $0x18] sm:$0xff]   ;;  %v1993_v8 = vld [vmem:[%s3272_s1 + $0x20] sm:$0xff]   ;;  %v1995_v10 = vld [vmem:[%s3272_s1 + $0x28] sm:$0xff]  }
   0x4   :  { %1890 = vmatpush3.bf16.msra.mxu1 %v1986_v1  ;;  %1859 = vmatprep.subr.bf16.mxu0 %v1987_v2  ;;  %v1992_v7 = vld [vmem:[%s3272_s1 + $0x58] sm:$0xff]   ;;  %v1994_v9 = vld [vmem:[%s3272_s1 + $0x60] sm:$0xff]   ;;  %v1996_v11 = vld [vmem:[%s3272_s1 + $0x68] sm:$0xff]  }
   0x5   :  { %1891 = vmatprep.subr.bf16.mxu1 %v1988_v3  ;;  %v2001_v12 = vld [vmem:[%s3273_s0] sm:$0xff]   ;;  %v1997_v14 = vld [vmem:[%s3272_s1 + $0x30] sm:$0xff]   ;;  %v1999_v16 = vld [vmem:[%s3272_s1 + $0x38] sm:$0xff]  }
   0x6   :  { %v2002_v13 = vld [vmem:[%s3273_s0 + $0x40] sm:$0xff]   ;;  %1873 = vmatprep.mubr.bf16.mxu0 %v2001_v12  ;;  %v1998_v15 = vld [vmem:[%s3272_s1 + $0x70] sm:$0xff]   ;;  %v2000_v17 = vld [vmem:[%s3272_s1 + $0x78] sm:$0xff]  }
   0x7   :  { %1860 = vmatpush3.bf16.msra.mxu0 %v1987_v2  ;;  %1905 = vmatprep.mubr.bf16.mxu1 %v2002_v13  ;;  %v2003_v18 = vld [vmem:[%s3273_s0 + $0x8] sm:$0xff]   ;;  %v2005_v19 = vld [vmem:[%s3272_s1 + $0x80] sm:$0xff]   ;;  %v2009_v24 = vld [vmem:[%s3273_s0 + $0x10] sm:$0xff]  }
   0x8   :  { %1892 = vmatpush3.bf16.msra.mxu1 %v1988_v3  ;;  %1861 = vmatprep.subr.bf16.mxu0 %v1989_v4  ;;  %v2006_v20 = vld [vmem:[%s3272_s1 + $0xc0] sm:$0xff]   ;;  %v2004_v21 = vld [vmem:[%s3273_s0 + $0x48] sm:$0xff]   ;;  %v2010_v25 = vld [vmem:[%s3273_s0 + $0x50] sm:$0xff]  }
   0x9   :  { %1893 = vmatprep.subr.bf16.mxu1 %v1990_v5  ;;  %v2007_v22 = vld [vmem:[%s3272_s1 + $0x88] sm:$0xff]   ;;  %v2011_v26 = vld [vmem:[%s3273_s0 + $0x18] sm:$0xff]   ;;  %v2013_v27 = vld [vmem:[%s3272_s1 + $0x90] sm:$0xff]  }
   0xa   :  { %v2008_v23 = vld [vmem:[%s3272_s1 + $0xc8] sm:$0xff]   ;;  %v2014_v28 = vld [vmem:[%s3272_s1 + $0xd0] sm:$0xff]   ;;  %v2012_v29 = vld [vmem:[%s3273_s0 + $0x58] sm:$0xff]  }
   0xb   :  { %1862 = vmatpush3.bf16.msra.mxu0 %v1989_v4  ;;  %v2015_v30 = vld [vmem:[%s3272_s1 + $0x98] sm:$0xff]   ;;  %v2017_v32 = vld [vmem:[%s3273_s0 + $0x20] sm:$0xff]   ;;  %v2019_v34 = vld [vmem:[%s3273_s0 + $0x28] sm:$0xff]  }
   0xc   :  { %1894 = vmatpush3.bf16.msra.mxu1 %v1990_v5  ;;  %1863 = vmatprep.subr.bf16.mxu0 %v1991_v6  ;;  %v2016_v31 = vld [vmem:[%s3272_s1 + $0xd8] sm:$0xff]   ;;  %v2018_v33 = vld [vmem:[%s3273_s0 + $0x60] sm:$0xff]   ;;  %v2020_v37 = vld [vmem:[%s3273_s0 + $0x68] sm:$0xff]  }
   0xd   :  { %1895 = vmatprep.subr.bf16.mxu1 %v1992_v7  ;;  %v2021_v35 = vld [vmem:[%s3272_s1 + $0xa0] sm:$0xff]   ;;  %v2023_v38 = vld [vmem:[%s3272_s1 + $0xa8] sm:$0xff]   ;;  %v2025_v40 = vld [vmem:[%s3273_s0 + $0x30] sm:$0xff]  }
   0xe   :  { %v2022_v36 = vld [vmem:[%s3272_s1 + $0xe0] sm:$0xff]   ;;  %v2024_v39 = vld [vmem:[%s3272_s1 + $0xe8] sm:$0xff]   ;;  %v2026_v41 = vld [vmem:[%s3273_s0 + $0x70] sm:$0xff]  }
   0xf   :  { %1864 = vmatpush3.bf16.msra.mxu0 %v1991_v6  ;;  %v2027_v42 = vld [vmem:[%s3273_s0 + $0x38] sm:$0xff]   ;;  %v2029_v43 = vld [vmem:[%s3272_s1 + $0xb0] sm:$0xff]   ;;  %v2033_v48 = vld [vmem:[%s3273_s0 + $0x80] sm:$0xff]  }
  0x10   :  { %1896 = vmatpush3.bf16.msra.mxu1 %v1992_v7  ;;  %1865 = vmatprep.subr.bf16.mxu0 %v1993_v8  ;;  %v2030_v44 = vld [vmem:[%s3272_s1 + $0xf0] sm:$0xff]   ;;  %v2028_v45 = vld [vmem:[%s3273_s0 + $0x78] sm:$0xff]   ;;  %v2034_v49 = vld [vmem:[%s3273_s0 + $0xc0] sm:$0xff]  }
  0x11   :  { %1897 = vmatprep.subr.bf16.mxu1 %v1994_v9  ;;  %v2031_v46 = vld [vmem:[%s3272_s1 + $0xb8] sm:$0xff]   ;;  %v2035_v50 = vld [vmem:[%s3273_s0 + $0x88] sm:$0xff]   ;;  %v2037_v52 = vld [vmem:[%s3273_s0 + $0x90] sm:$0xff]  }
  0x12   :  { %v2032_v47 = vld [vmem:[%s3272_s1 + $0xf8] sm:$0xff]   ;;  %v2036_v51 = vld [vmem:[%s3273_s0 + $0xc8] sm:$0xff]   ;;  %v2038_v53 = vld [vmem:[%s3273_s0 + $0xd0] sm:$0xff]  }
  0x13   :  { %1866 = vmatpush3.bf16.msra.mxu0 %v1993_v8  ;;  %v2039_v54 = vld [vmem:[%s3273_s0 + $0x98] sm:$0xff]   ;;  %v2041_v56 = vld [vmem:[%s3273_s0 + $0xa0] sm:$0xff]   ;;  %v2043_v58 = vld [vmem:[%s3273_s0 + $0xa8] sm:$0xff]  }
  0x14   :  { %1898 = vmatpush3.bf16.msra.mxu1 %v1994_v9  ;;  %1867 = vmatprep.subr.bf16.mxu0 %v1995_v10  ;;  %v2040_v55 = vld [vmem:[%s3273_s0 + $0xd8] sm:$0xff]   ;;  %v2042_v57 = vld [vmem:[%s3273_s0 + $0xe0] sm:$0xff]   ;;  %v2044_v59 = vld [vmem:[%s3273_s0 + $0xe8] sm:$0xff]  }
  0x15   :  { %1899 = vmatprep.subr.bf16.mxu1 %v1996_v11  ;;  %v2045_v60 = vld [vmem:[%s3273_s0 + $0xb0] sm:$0xff]   ;;  %v2047_v62 = vld [vmem:[%s3273_s0 + $0xb8] sm:$0xff]  }
  0x16   :  { %v2046_v61 = vld [vmem:[%s3273_s0 + $0xf0] sm:$0xff]   ;;  %v2048_v63 = vld [vmem:[%s3273_s0 + $0xf8] sm:$0xff]  }
  0x17   :  { %1868 = vmatpush3.bf16.msra.mxu0 %v1995_v10 }
  0x18   :  { %1900 = vmatpush3.bf16.msra.mxu1 %v1996_v11  ;;  %1869 = vmatprep.subr.bf16.mxu0 %v1997_v14 }
  0x19   :  { %1901 = vmatprep.subr.bf16.mxu1 %v1998_v15 }
  0x1b   :  { %1870 = vmatpush3.bf16.msra.mxu0 %v1997_v14 }
  0x1c   :  { %1902 = vmatpush3.bf16.msra.mxu1 %v1998_v15  ;;  %1871 = vmatprep.subr.bf16.mxu0 %v1999_v16 }
  0x1d   :  { %1903 = vmatprep.subr.bf16.mxu1 %v2000_v17 }
  0x1f   :  { %1872 = vmatpush3.bf16.msra.mxu0 %v1999_v16 }
  0x20   :  { %1904 = vmatpush3.bf16.msra.mxu1 %v2000_v17  ;;  %1921 = vmatprep.subr.bf16.mxu0 %v2005_v19 }
  0x21   :  { %1953 = vmatprep.subr.bf16.mxu1 %v2006_v20 }
  0x22   :  { %1874 = vmatmul.mubr.bf16.vlgmr.msra.gmra.mrb[0].mxu0 %v2003_v18 }
  0x23   :  { %1906 = vmatmul.mubr.bf16.vlgmr.msra.gmra.mrb[0].mxu1 %v2004_v21  ;;  %1922 = vmatpush3.bf16.msra.mxu0 %v2005_v19 }
  0x24   :  { %1954 = vmatpush3.bf16.msra.mxu1 %v2006_v20  ;;  %1923 = vmatprep.subr.bf16.mxu0 %v2007_v22 }
  0x25   :  { %1955 = vmatprep.subr.bf16.mxu1 %v2008_v23  ;;  %1877 = vmatprep.mubr.bf16.mxu0 %v2009_v24  ;;  %v2284_v24 = vld [vmem:[%s3274_s2] ss:$0 sm:$0xff] }
  0x26   :  { %1909 = vmatprep.mubr.bf16.mxu1 %v2010_v25 }
  0x27   :  { %1924 = vmatpush3.bf16.msra.mxu0 %v2007_v22 }
  0x28   :  { %1956 = vmatpush3.bf16.msra.mxu1 %v2008_v23  ;;  %1925 = vmatprep.subr.bf16.mxu0 %v2013_v27 }
  0x29   :  { %1957 = vmatprep.subr.bf16.mxu1 %v2014_v28 }
  0x2a   :  { %1878 = vmatmul.mubr.bf16.gmra.mrb[4].mxu0 %v2011_v26 }
  0x2b   :  { %1910 = vmatmul.mubr.bf16.gmra.mrb[4].mxu1 %v2012_v29  ;;  %1926 = vmatpush3.bf16.msra.mxu0 %v2013_v27 }
  0x2c   :  { %1958 = vmatpush3.bf16.msra.mxu1 %v2014_v28  ;;  %1927 = vmatprep.subr.bf16.mxu0 %v2015_v30 }
  0x2d   :  { %1959 = vmatprep.subr.bf16.mxu1 %v2016_v31  ;;  %1881 = vmatprep.mubr.bf16.mxu0 %v2017_v32 }
  0x2e   :  { %1913 = vmatprep.mubr.bf16.mxu1 %v2018_v33 }
  0x2f   :  { %1928 = vmatpush3.bf16.msra.mxu0 %v2015_v30 }
  0x30   :  { %1960 = vmatpush3.bf16.msra.mxu1 %v2016_v31  ;;  %1929 = vmatprep.subr.bf16.mxu0 %v2021_v35 }
  0x31   :  { %1961 = vmatprep.subr.bf16.mxu1 %v2022_v36 }
  0x32   :  { %1882 = vmatmul.mubr.bf16.gmra.mrb[8].mxu0 %v2019_v34 }
  0x33   :  { %1914 = vmatmul.mubr.bf16.gmra.mrb[8].mxu1 %v2020_v37  ;;  %1930 = vmatpush3.bf16.msra.mxu0 %v2021_v35 }
  0x34   :  { %1962 = vmatpush3.bf16.msra.mxu1 %v2022_v36  ;;  %1931 = vmatprep.subr.bf16.mxu0 %v2023_v38 }
  0x35   :  { %1963 = vmatprep.subr.bf16.mxu1 %v2024_v39  ;;  %1885 = vmatprep.mubr.bf16.mxu0 %v2025_v40 }
  0x36   :  { %1917 = vmatprep.mubr.bf16.mxu1 %v2026_v41 }
  0x37   :  { %1932 = vmatpush3.bf16.msra.mxu0 %v2023_v38 }
  0x38   :  { %1964 = vmatpush3.bf16.msra.mxu1 %v2024_v39  ;;  %1933 = vmatprep.subr.bf16.mxu0 %v2029_v43 }
  0x39   :  { %1965 = vmatprep.subr.bf16.mxu1 %v2030_v44 }
  0x3a   :  { %1886 = vmatmul.mubr.bf16.gmra.mrb[12].mxu0 %v2027_v42 }
  0x3b   :  { %1918 = vmatmul.mubr.bf16.gmra.mrb[12].mxu1 %v2028_v45  ;;  %1934 = vmatpush3.bf16.msra.mxu0 %v2029_v43 }
  0x3c   :  { %1966 = vmatpush3.bf16.msra.mxu1 %v2030_v44  ;;  %1935 = vmatprep.subr.bf16.mxu0 %v2031_v46 }
  0x3d   :  { %1967 = vmatprep.subr.bf16.mxu1 %v2032_v47  ;;  %1937 = vmatprep.mubr.bf16.mxu0 %v2033_v48 }
  0x3e   :  { %1969 = vmatprep.mubr.bf16.mxu1 %v2034_v49 }
  0x3f   :  { %1936 = vmatpush3.bf16.msra.mxu0 %v2031_v46 }
  0x40   :  { %1968 = vmatpush3.bf16.msra.mxu1 %v2032_v47 }
  0x42   :  { %1938 = vmatmul.mubr.bf16.vlgmr.msra.gmra.mrb[16].mxu0 %v2035_v50 }
  0x43   :  { %1970 = vmatmul.mubr.bf16.vlgmr.msra.gmra.mrb[16].mxu1 %v2036_v51  ;;  %1941 = vmatprep.mubr.bf16.mxu0 %v2037_v52 }
  0x44   :  { %1973 = vmatprep.mubr.bf16.mxu1 %v2038_v53 }
  0x4a   :  { %1942 = vmatmul.mubr.bf16.gmra.mrb[20].mxu0 %v2039_v54 }
  0x4b   :  { %1974 = vmatmul.mubr.bf16.gmra.mrb[20].mxu1 %v2040_v55  ;;  %1945 = vmatprep.mubr.bf16.mxu0 %v2041_v56 }
  0x4c   :  { %1977 = vmatprep.mubr.bf16.mxu1 %v2042_v57 }
  0x52   :  { %1946 = vmatmul.mubr.bf16.gmra.mrb[24].mxu0 %v2043_v58 }
  0x53   :  { %1978 = vmatmul.mubr.bf16.gmra.mrb[24].mxu1 %v2044_v59  ;;  %1949 = vmatprep.mubr.bf16.mxu0 %v2045_v60 }
  0x54   :  { %1981 = vmatprep.mubr.bf16.mxu1 %v2046_v61 }
  0x5a   :  { %1950 = vmatmul.mubr.bf16.gmra.mrb[28].mxu0 %v2047_v62 }
  0x5b   :  { %1982 = vmatmul.mubr.bf16.gmra.mrb[28].mxu1 %v2048_v63 }
  0xf5   :  { %v1875_v0 = vpop.f32.mrb[0].mxu0 }
  0xf6   :  { %v1907_v1 = vpop.f32.mrb[0].mxu1  ;;  %v190_v2 = vpop.f32.mrb[1].mxu0  ;;  %v2297_v30 = vadd.f32 %v1875_v0, %v2284_v24 }
  0xf7   :  { %v417_v3 = vpop.f32.mrb[1].mxu1  ;;  %v1876_v4 = vpop.f32.mrb[2].mxu0  ;;  %v2300_v31 = vadd.f32 %v1907_v1, %v2284_v24  ;;  %v2303_v32 = vadd.f32 %v2284_v24, %v190_v2 }
  0xf8   :  { %v1908_v5 = vpop.f32.mrb[2].mxu1  ;;  %v193_v6 = vpop.f32.mrb[3].mxu0  ;;  %v2306_v33 = vadd.f32 %v2284_v24, %v417_v3  ;;  %v2313_v36 = vadd.f32 %v1876_v4, %v2284_v24 }
  0xf9   :  { %v420_v7 = vpop.f32.mrb[3].mxu1  ;;  %3339 = vst [vmem:[#allocation2_spill] sm:$0xff] %v2300_v31  ;;  %v2316_v37 = vadd.f32 %v1908_v5, %v2284_v24  ;;  %v2319_v38 = vadd.f32 %v2284_v24, %v193_v6  ;;  %v936_v41 = vadd.f32 %v2300_v31, %v2297_v30 }
  0xfa   :  { %3340 = vst [vmem:[#allocation3_spill] sm:$0xff] %v2306_v33  ;;  %v2322_v39 = vadd.f32 %v2284_v24, %v420_v7  ;;  %v934_v42 = vadd.f32 %v2306_v33, %v2303_v32 }
  0xfb   :  { %3341 = vst [vmem:[#allocation4_spill] sm:$0xff] %v2316_v37  ;;  %v937_v43 = vadd.f32 %v2316_v37, %v2313_v36 }
  0xfc   :  { %3342 = vst [vmem:[#allocation5_spill] sm:$0xff] %v2322_v39  ;;  %v935_v44 = vadd.f32 %v2322_v39, %v2319_v38 }
  0xfd   :  { %v1879_v8 = vpop.f32.mrb[4].mxu0 }
  0xfe   :  { %v1911_v9 = vpop.f32.mrb[4].mxu1  ;;  %v206_v10 = vpop.f32.mrb[5].mxu0  ;;  %v2335_v45 = vadd.f32 %v1879_v8, %v2284_v24 }
  0xff   :  { %v433_v11 = vpop.f32.mrb[5].mxu1  ;;  %v1880_v12 = vpop.f32.mrb[6].mxu0  ;;  %v2338_v46 = vadd.f32 %v1911_v9, %v2284_v24  ;;  %v2341_v48 = vadd.f32 %v2284_v24, %v206_v10 }
 0x100   :  { %v1912_v13 = vpop.f32.mrb[6].mxu1  ;;  %v209_v14 = vpop.f32.mrb[7].mxu0  ;;  %v2344_v49 = vadd.f32 %v2284_v24, %v433_v11  ;;  %v2347_v50 = vadd.f32 %v1880_v12, %v2284_v24 }
 0x101   :  { %v436_v15 = vpop.f32.mrb[7].mxu1  ;;  %v2353_v54 = vadd.f32 %v1912_v13, %v2284_v24  ;;  %v2356_v55 = vadd.f32 %v2284_v24, %v209_v14  ;;  %v940_v7 = vadd.f32 %v2338_v46, %v2335_v45 }
 0x102   :  { %3343 = vst [vmem:[#allocation6_spill] sm:$0xff] %v2344_v49  ;;  %v2359_v56 = vadd.f32 %v2284_v24, %v436_v15  ;;  %v938_v8 = vadd.f32 %v2344_v49, %v2341_v48 }
 0x103   :  { %v941_v15 = vadd.f32 %v2353_v54, %v2347_v50 }
 0x104   :  { %3344 = vst [vmem:[#allocation7_spill] sm:$0xff] %v2359_v56 }
 0x105   :  { %v1883_v16 = vpop.f32.mrb[8].mxu0 }
 0x106   :  { %v1915_v17 = vpop.f32.mrb[8].mxu1  ;;  %v222_v18 = vpop.f32.mrb[9].mxu0  ;;  %v2375_v2 = vadd.f32 %v1883_v16, %v2284_v24  ;;  %v939_v16 = vadd.f32 %v2359_v56, %v2356_v55 }
 0x107   :  { %v449_v19 = vpop.f32.mrb[9].mxu1  ;;  %v2273_v20 = vpop.f32.mrb[10].mxu0  ;;  %v2378_v3 = vadd.f32 %v1915_v17, %v2284_v24  ;;  %v2389_v9 = vadd.f32 %v2284_v24, %v222_v18 }
 0x108   :  { %v2275_v21 = vpop.f32.mrb[10].mxu1  ;;  %v2277_v22 = vpop.f32.mrb[11].mxu0  ;;  %3347 = vst [vmem:[#allocation10_spill] sm:$0xff] %v2375_v2  ;;  %v2393_v11 = vadd.f32 %v2284_v24, %v449_v19 }
 0x109   :  { %v2279_v23 = vpop.f32.mrb[11].mxu1  ;;  %v944_v19 = vadd.f32 %v2378_v3, %v2375_v2 }
 0x10d   :  { %v2286_v25 = vpop.f32.mrb[12].mxu0 }
 0x10e   :  { %v2288_v26 = vpop.f32.mrb[12].mxu1  ;;  %v2290_v27 = vpop.f32.mrb[13].mxu0 }
 0x10f   :  { %v2292_v28 = vpop.f32.mrb[13].mxu1  ;;  %v2294_v29 = vpop.f32.mrb[14].mxu0 }
 0x110   :  { %v2308_v34 = vpop.f32.mrb[14].mxu1  ;;  %v2310_v35 = vpop.f32.mrb[15].mxu0 }
 0x111   :  { %v2324_v40 = vpop.f32.mrb[15].mxu1 }
 0x115   :  { %v1939_v47 = vpop.f32.mrb[16].mxu0 }
 0x116   :  { %v2350_v51 = vadd.f32 %v1939_v47, %v2284_v24  ;;  %v1971_v52 = vpop.f32.mrb[16].mxu1  ;;  %v644_v53 = vpop.f32.mrb[17].mxu0  ;;  %v2421_v47 = vadd.f32 %v2284_v24, %v2277_v22 }
 0x117   :  { %v2362_v57 = vadd.f32 %v2284_v24, %v644_v53  ;;  %v871_v58 = vpop.f32.mrb[17].mxu1  ;;  %v1940_v59 = vpop.f32.mrb[18].mxu0  ;;  %v2366_v61 = vadd.f32 %v1971_v52, %v2284_v24  ;;  %v2425_v52 = vadd.f32 %v2284_v24, %v2279_v23 }
 0x118   :  { %v952_v60 = vadd.f32 %v936_v41, %v2350_v51  ;;  %v2369_v62 = vadd.f32 %v2284_v24, %v871_v58  ;;  %v2372_v63 = vadd.f32 %v1940_v59, %v2284_v24  ;;  %v1972_v0 = vpop.f32.mrb[18].mxu1  ;;  %v647_v1 = vpop.f32.mrb[19].mxu0  ;;  %v2412_v41 = vadd.f32 %v2273_v20, %v2284_v24 }
 0x119   :  { %3345 = vst [vmem:[#allocation8_spill] sm:$0xff] %v2366_v61  ;;  %v950_v4 = vadd.f32 %v934_v42, %v2362_v57  ;;  %v2382_v5 = vadd.f32 %v2284_v24, %v647_v1  ;;  %v874_v6 = vpop.f32.mrb[19].mxu1  ;;  %v2406_v18 = vadd.f32 %v1972_v0, %v2284_v24  ;;  %v2416_v42 = vadd.f32 %v2275_v21, %v2284_v24 }
 0x11a   :  { %3346 = vst [vmem:[#allocation9_spill] sm:$0xff] %v2369_v62  ;;  %v953_v10 = vadd.f32 %v937_v43, %v2372_v63  ;;  %v2398_v14 = vadd.f32 %v2284_v24, %v874_v6  ;;  %v968_v17 = vadd.f32 %v952_v60, %v2366_v61  ;;  %3350 = vst [vmem:[#allocation13_spill] sm:$0xff] %v2412_v41 }
 0x11b   :  { %v966_v12 = vadd.f32 %v950_v4, %v2369_v62  ;;  %v951_v13 = vadd.f32 %v935_v44, %v2382_v5  ;;  %3349 = vst [vmem:[#allocation12_spill] sm:$0xff] %v2406_v18  ;;  %v942_v21 = vadd.f32 %v2393_v11, %v2389_v9  ;;  %v2470_v62 = vadd.f32 %v2288_v26, %v2284_v24 }
 0x11c   :  { %3348 = vst [vmem:[#allocation11_spill] sm:$0xff] %v2398_v14  ;;  %v969_v53 = vadd.f32 %v953_v10, %v2406_v18  ;;  %v986_v4 = vsel %vm982_vm0, %v968_v17, 0.0  ;;  %v2488_v26 = vadd.f32 %v2294_v29, %v2284_v24 }
 0x11d   :  { %v967_v43 = vadd.f32 %v951_v13, %v2398_v14  ;;  %v1943_v44 = vpop.f32.mrb[20].mxu0  ;;  %v983_v60 = vsel %vm982_vm0, %v966_v12, 0.0 }
 0x11e   :  { %v2429_v20 = vadd.f32 %v1943_v44, %v2284_v24  ;;  %v1975_v58 = vpop.f32.mrb[20].mxu1  ;;  %v660_v59 = vpop.f32.mrb[21].mxu0  ;;  %3361 = vst [vmem:[#allocation24_spill] sm:$0xff] %v2488_v26 }
 0x11f   :  { %v984_v0 = vsel %vm982_vm0, %v967_v43, 0.0  ;;  %v2436_v22 = vadd.f32 %v2284_v24, %v660_v59  ;;  %v887_v1 = vpop.f32.mrb[21].mxu1  ;;  %v1944_v23 = vpop.f32.mrb[22].mxu0  ;;  %v2447_v43 = vadd.f32 %v1975_v58, %v2284_v24 }
 0x120   :  { %3351 = vst [vmem:[#allocation14_spill] sm:$0xff] %v2429_v20  ;;  %v985_v6 = vadd.f32 %v984_v0, %v983_v60  ;;  %v2440_v10 = vadd.f32 %v2284_v24, %v887_v1  ;;  %v2443_v13 = vadd.f32 %v1944_v23, %v2284_v24  ;;  %v1976_v44 = vpop.f32.mrb[22].mxu1  ;;  %v663_v18 = vpop.f32.mrb[23].mxu0  ;;  %v956_v12 = vadd.f32 %v940_v7, %v2429_v20 }
 0x121   :  { %3352 = vst [vmem:[#allocation15_spill] sm:$0xff] %v2436_v22  ;;  %3355 = vst [vmem:[#allocation18_spill] sm:$0xff] %v2447_v43  ;;  %v954_v59 = vadd.f32 %v938_v8, %v2436_v22  ;;  %v2451_v61 = vadd.f32 %v2284_v24, %v663_v18  ;;  %v890_v17 = vpop.f32.mrb[23].mxu1  ;;  %v945_v60 = vadd.f32 %v2416_v42, %v2412_v41  ;;  %v988_v1 = vsel %vm982_vm0, %v969_v53, 0.0 }
 0x122   :  { %3353 = vst [vmem:[#allocation16_spill] sm:$0xff] %v2440_v10  ;;  %3354 = vst [vmem:[#allocation17_spill] sm:$0xff] %v2443_v13  ;;  %v943_v0 = vadd.f32 %v2425_v52, %v2421_v47  ;;  %v987_v23 = vadd.f32 %v986_v4, %v985_v6  ;;  %v957_v58 = vadd.f32 %v941_v15, %v2443_v13 }
 0x123   :  { %3356 = vst [vmem:[#allocation19_spill] sm:$0xff] %v2451_v61  ;;  %v970_v7 = vadd.f32 %v954_v59, %v2440_v10  ;;  %v955_v14 = vadd.f32 %v939_v16, %v2451_v61  ;;  %v2462_v8 = vadd.f32 %v2284_v24, %v890_v17  ;;  %v2466_v18 = vadd.f32 %v2286_v25, %v2284_v24 }
 0x124   :  { %v2474_v53 = vadd.f32 %v2284_v24, %v2290_v27  ;;  %v989_v4 = vadd.f32 %v988_v1, %v987_v23  ;;  %v972_v15 = vadd.f32 %v956_v12, %v2447_v43  ;;  %v2479_v6 = vadd.f32 %v1976_v44, %v2284_v24 }
 0x125   :  { %3357 = vst [vmem:[#allocation20_spill] sm:$0xff] %v2462_v8  ;;  %3358 = vst [vmem:[#allocation21_spill] sm:$0xff] %v2466_v18  ;;  %v990_v16 = vsel %vm982_vm0, %v970_v7, 0.0  ;;  %v971_v59 = vadd.f32 %v955_v14, %v2462_v8  ;;  %v1947_v25 = vpop.f32.mrb[24].mxu0  ;;  %v2484_v17 = vadd.f32 %v2284_v24, %v2292_v28 }
 0x126   :  { %3359 = vst [vmem:[#allocation22_spill] sm:$0xff] %v2474_v53  ;;  %3360 = vst [vmem:[#allocation23_spill] sm:$0xff] %v2479_v6  ;;  %v991_v27 = vadd.f32 %v990_v16, %v989_v4  ;;  %v2491_v1 = vadd.f32 %v1947_v25, %v2284_v24  ;;  %v1979_v12 = vpop.f32.mrb[24].mxu1  ;;  %v676_v23 = vpop.f32.mrb[25].mxu0  ;;  %v973_v44 = vadd.f32 %v957_v58, %v2479_v6 }
 0x127   :  { %v992_v7 = vsel %vm982_vm0, %v971_v59, 0.0  ;;  %v2496_v14 = vadd.f32 %v1979_v12, %v2284_v24  ;;  %v2499_v28 = vadd.f32 %v2284_v24, %v676_v23  ;;  %v903_v43 = vpop.f32.mrb[25].mxu1  ;;  %v1948_v8 = vpop.f32.mrb[26].mxu0  ;;  %v2510_v59 = vadd.f32 %v2308_v34, %v2284_v24 }
 0x128   :  { %3362 = vst [vmem:[#allocation25_spill] sm:$0xff] %v2491_v1  ;;  %v993_v29 = vadd.f32 %v992_v7, %v991_v27  ;;  %v960_v4 = vadd.f32 %v944_v19, %v2491_v1  ;;  %v2503_v16 = vadd.f32 %v2284_v24, %v903_v43  ;;  %v2506_v25 = vadd.f32 %v1948_v8, %v2284_v24  ;;  %v1980_v58 = vpop.f32.mrb[26].mxu1  ;;  %v679_v6 = vpop.f32.mrb[27].mxu0 }
 0x129   :  { %3363 = vst [vmem:[#allocation26_spill] sm:$0xff] %v2496_v14  ;;  %3364 = vst [vmem:[#allocation27_spill] sm:$0xff] %v2499_v28  ;;  %v994_v12 = vsel %vm982_vm0, %v972_v15, 0.0  ;;  %v958_v23 = vadd.f32 %v942_v21, %v2499_v28  ;;  %v2515_v27 = vadd.f32 %v2284_v24, %v679_v6  ;;  %v906_v19 = vpop.f32.mrb[27].mxu1  ;;  %v2519_v43 = vadd.f32 %v2284_v24, %v2310_v35 }
 0x12a   :  { %3365 = vst [vmem:[#allocation28_spill] sm:$0xff] %v2503_v16  ;;  %3366 = vst [vmem:[#allocation29_spill] sm:$0xff] %v2506_v25  ;;  %v2523_v8 = vadd.f32 %v2284_v24, %v2324_v40  ;;  %v995_v7 = vadd.f32 %v994_v12, %v993_v29  ;;  %v961_v34 = vadd.f32 %v945_v60, %v2506_v25  ;;  %v996_v10 = vsel %vm982_vm0, %v973_v44, 0.0 }
 0x12b   :  { %3367 = vst [vmem:[#allocation30_spill] sm:$0xff] %v2515_v27  ;;  %3368 = vst [vmem:[#allocation31_spill] sm:$0xff] %v2519_v43  ;;  %v974_v15 = vadd.f32 %v958_v23, %v2503_v16  ;;  %v959_v21 = vadd.f32 %v943_v0, %v2515_v27  ;;  %v2530_v6 = vadd.f32 %v2284_v24, %v906_v19 }
 0x12c   :  { %v976_v1 = vadd.f32 %v960_v4, %v2496_v14  ;;  %v997_v35 = vadd.f32 %v996_v10, %v995_v7  ;;  %v2534_v28 = vadd.f32 %v1980_v58, %v2284_v24  ;;  %v948_v40 = vadd.f32 %v2470_v62, %v2466_v18 }
 0x12d   :  { %3369 = vst [vmem:[#allocation32_spill] sm:$0xff] %v2530_v6  ;;  %v998_v60 = vsel %vm982_vm0, %v974_v15, 0.0  ;;  %v975_v44 = vadd.f32 %v959_v21, %v2530_v6  ;;  %v1951_v29 = vpop.f32.mrb[28].mxu0  ;;  %v946_v0 = vadd.f32 %v2484_v17, %v2474_v53  ;;  %v949_v19 = vadd.f32 %v2510_v59, %v2488_v26 }
 0x12e   :  { %3370 = vst [vmem:[#allocation33_spill] sm:$0xff] %v2534_v28  ;;  %v999_v12 = vadd.f32 %v998_v60, %v997_v35  ;;  %v977_v23 = vadd.f32 %v961_v34, %v2534_v28  ;;  %v2544_v4 = vadd.f32 %v1951_v29, %v2284_v24  ;;  %v1983_v10 = vpop.f32.mrb[28].mxu1  ;;  %v692_v58 = vpop.f32.mrb[29].mxu0  ;;  %v947_v7 = vadd.f32 %v2523_v8, %v2519_v43 }
 0x12f   :  { %v1000_v15 = vsel %vm982_vm0, %v975_v44, 0.0  ;;  %v2552_v21 = vadd.f32 %v2284_v24, %v692_v58  ;;  %v919_v14 = vpop.f32.mrb[29].mxu1  ;;  %v1952_v35 = vpop.f32.mrb[30].mxu0  ;;  %v1002_v34 = vsel %vm982_vm0, %v976_v1, 0.0  ;;  %v2563_v44 = vadd.f32 %v1983_v10, %v2284_v24 }
 0x130   :  { %3371 = vst [vmem:[#allocation34_spill] sm:$0xff] %v2544_v4  ;;  %v1001_v60 = vadd.f32 %v1000_v15, %v999_v12  ;;  %v2556_v29 = vadd.f32 %v2284_v24, %v919_v14  ;;  %v2559_v28 = vadd.f32 %v1952_v35, %v2284_v24  ;;  %v1984_v6 = vpop.f32.mrb[30].mxu1  ;;  %v695_v16 = vpop.f32.mrb[31].mxu0  ;;  %v964_v25 = vadd.f32 %v948_v40, %v2544_v4 }
 0x131   :  { %3372 = vst [vmem:[#allocation35_spill] sm:$0xff] %v2552_v21  ;;  %3375 = vst [vmem:[#allocation38_spill] sm:$0xff] %v2563_v44  ;;  %v962_v58 = vadd.f32 %v946_v0, %v2552_v21  ;;  %v2567_v27 = vadd.f32 %v2284_v24, %v695_v16  ;;  %v922_v1 = vpop.f32.mrb[31].mxu1  ;;  %v1004_v12 = vsel %vm982_vm0, %v977_v23, 0.0  ;;  %v2579_v16 = vadd.f32 %v1984_v6, %v2284_v24 }
 0x132   :  { %3373 = vst [vmem:[#allocation36_spill] sm:$0xff] %v2556_v29  ;;  %3374 = vst [vmem:[#allocation37_spill] sm:$0xff] %v2559_v28  ;;  %v1003_v14 = vadd.f32 %v1002_v34, %v1001_v60  ;;  %v965_v35 = vadd.f32 %v949_v19, %v2559_v28  ;;  %v2574_v40 = vadd.f32 %v2284_v24, %v922_v1 }
 0x133   :  { %3376 = vst [vmem:[#allocation39_spill] sm:$0xff] %v2567_v27  ;;  %v978_v15 = vadd.f32 %v962_v58, %v2556_v29  ;;  %v963_v13 = vadd.f32 %v947_v7, %v2567_v27  ;;  %v980_v4 = vadd.f32 %v964_v25, %v2563_v44  ;;  %3378 = vst [vmem:[#allocation41_spill] sm:$0xff] %v2579_v16 }
 0x134   :  { %3377 = vst [vmem:[#allocation40_spill] sm:$0xff] %v2574_v40  ;;  %v1005_v10 = vadd.f32 %v1004_v12, %v1003_v14  ;;  %v981_v60 = vadd.f32 %v965_v35, %v2579_v16 }
 0x135   :  { %v1006_v0 = vsel %vm982_vm0, %v978_v15, 0.0  ;;  %v979_v23 = vadd.f32 %v963_v13, %v2574_v40  ;;  %v1010_v7 = vsel %vm982_vm0, %v980_v4, 0.0 }
 0x136   :  { %v1007_v34 = vadd.f32 %v1006_v0, %v1005_v10  ;;  %v1012_v12 = vsel %vm982_vm0, %v981_v60, 0.0 }
 0x137   :  { %v1008_v19 = vsel %vm982_vm0, %v979_v23, 0.0 }
 0x138   :  { %v1009_v58 = vadd.f32 %v1008_v19, %v1007_v34 }
 0x13a   :  { %v1011_v1 = vadd.f32 %v1010_v7, %v1009_v58 }
 0x13c   :  { %v1013_v14 = vadd.f32 %v1012_v12, %v1011_v1 }
 0x13e   :  { %v1014_v25 = vrot.slane %v1013_v14, 4 }
 0x140   :  { %v1015_v44 = vadd.f32 %v1014_v25, %v1013_v14 }
 0x142   :  { %v1016_v15 = vrot.slane %v1015_v44, 2 }
 0x144   :  { %v1017_v29 = vadd.f32 %v1016_v15, %v1015_v44 }
 0x146   :  { %v1018_v24 = vrot.slane %v1017_v29, 1 }
 0x148   :  { %v1019_v6 = vadd.f32 %v1018_v24, %v1017_v29 }
 0x14a   :  { %v2586_v28 = vmul.f32 0.001953125, %v1019_v6 }
 0x14c   :  { %v1022_v13 = vsub.f32 %v2303_v32, %v2586_v28  ;;  %v1023_v35 = vsub.f32 %v2319_v38, %v2586_v28  ;;  %v1024_v4 = vsub.f32 %v2297_v30, %v2586_v28  ;;  %v1025_v10 = vsub.f32 %v2313_v36, %v2586_v28 }
 0x14d   :  { %v1026_v29 = vsub.f32 %v2341_v48, %v2586_v28  ;;  %v1027_v12 = vsub.f32 %v2356_v55, %v2586_v28  ;;  %v1091_v24 = vsub.f32 %v2306_v33, %v2586_v28  ;;  %v1092_v6 = vsub.f32 %v2322_v39, %v2586_v28 }
 0x14e   :  { %v1038_v0 = vmul.f32 %v1022_v13, %v1022_v13  ;;  %v1039_v23 = vmul.f32 %v1023_v35, %v1023_v35  ;;  %v1040_v34 = vmul.f32 %v1024_v4, %v1024_v4  ;;  %v1041_v44 = vmul.f32 %v1025_v10, %v1025_v10 }
 0x14f   :  { %v1042_v14 = vmul.f32 %v1026_v29, %v1026_v29  ;;  %v1028_v13 = vsub.f32 %v2335_v45, %v2586_v28  ;;  %v1043_v35 = vmul.f32 %v1027_v12, %v1027_v12  ;;  %v1093_v10 = vsub.f32 %v2300_v31, %v2586_v28 }
 0x150   :  { %v1054_v60 = vsel %vm982_vm0, %v1038_v0, 0.0  ;;  %v1055_v19 = vsel %vm982_vm0, %v1039_v23, 0.0  ;;  %v1057_v7 = vsel %vm982_vm0, %v1040_v34, 0.0  ;;  %v1059_v25 = vsel %vm982_vm0, %v1041_v44, 0.0 }
 0x151   :  { %v1056_v58 = vadd.f32 %v1055_v19, %v1054_v60  ;;  %v1061_v4 = vsel %vm982_vm0, %v1042_v14, 0.0  ;;  %v1107_v23 = vmul.f32 %v1091_v24, %v1091_v24  ;;  %v1029_v34 = vsub.f32 %v2347_v50, %v2586_v28 }
 0x152   :  { %v1030_v29 = vsub.f32 %v2389_v9, %v2586_v28  ;;  %v1094_v44 = vsub.f32 %v2316_v37, %v2586_v28  ;;  %v1108_v60 = vmul.f32 %v1092_v6, %v1092_v6  ;;  %v1031_v19 = vsub.f32 %v2421_v47, %v2586_v28 }
 0x153   :  { %v1058_v1 = vadd.f32 %v1057_v7, %v1056_v58  ;;  %v1032_v58 = vsub.f32 %v2375_v2, %v2586_v28  ;;  %v1033_v7 = vsub.f32 %v2412_v41, %v2586_v28  ;;  %v1044_v12 = vmul.f32 %v1028_v13, %v1028_v13 }
 0x154   :  { %v1063_v14 = vsel %vm982_vm0, %v1043_v35, 0.0  ;;  %v1035_v24 = vsub.f32 %v2519_v43, %v2586_v28  ;;  %v1036_v6 = vsub.f32 %v2466_v18, %v2586_v28  ;;  %v1123_v37 = vsel %vm982_vm0, %v1107_v23, 0.0 }
 0x155   :  { %v1060_v15 = vadd.f32 %v1059_v25, %v1058_v1  ;;  %v1034_v1 = vsub.f32 %v2474_v53, %v2586_v28  ;;  %v1095_v25 = vsub.f32 %v2344_v49, %v2586_v28  ;;  %v1037_v31 = vsub.f32 %v2488_v26, %v2586_v28 }
 0x156   :  { %v1096_v13 = vsub.f32 %v2359_v56, %v2586_v28  ;;  %v1110_v35 = vmul.f32 %v1094_v44, %v1094_v44  ;;  %v1124_v39 = vsel %vm982_vm0, %v1108_v60, 0.0  ;;  %v1045_v49 = vmul.f32 %v1029_v34, %v1029_v34 }
 0x157   :  { %v1062_v0 = vadd.f32 %v1061_v4, %v1060_v15  ;;  %v1109_v15 = vmul.f32 %v1093_v10, %v1093_v10  ;;  %v1046_v10 = vmul.f32 %v1030_v29, %v1030_v29  ;;  %v1047_v33 = vmul.f32 %v1031_v19, %v1031_v19 }
 0x158   :  { %v1125_v53 = vadd.f32 %v1124_v39, %v1123_v37  ;;  %v1065_v43 = vsel %vm982_vm0, %v1044_v12, 0.0  ;;  %v1048_v18 = vmul.f32 %v1032_v58, %v1032_v58  ;;  %v1049_v26 = vmul.f32 %v1033_v7, %v1033_v7 }
 0x159   :  { %v1064_v4 = vadd.f32 %v1063_v14, %v1062_v0  ;;  %v1097_v0 = vsub.f32 %v2338_v46, %v2586_v28  ;;  %v1111_v14 = vmul.f32 %v1095_v25, %v1095_v25  ;;  %v1126_v23 = vsel %vm982_vm0, %v1109_v15, 0.0 }
 0x15a   :  { %v1127_v2 = vadd.f32 %v1126_v23, %v1125_v53  ;;  %v1050_v56 = vmul.f32 %v1034_v1, %v1034_v1  ;;  %v1098_v44 = vsub.f32 %v2353_v54, %v2586_v28  ;;  %v1112_v34 = vmul.f32 %v1096_v13, %v1096_v13 }
 0x15b   :  { %v1066_v41 = vadd.f32 %v1065_v43, %v1064_v4  ;;  %v1128_v29 = vsel %vm982_vm0, %v1110_v35, 0.0  ;;  %v1051_v37 = vmul.f32 %v1035_v24, %v1035_v24  ;;  %v1052_v39 = vmul.f32 %v1036_v6, %v1036_v6 }
 0x15c   :  { %v1053_v60 = vmul.f32 %v1037_v31, %v1037_v31  ;;  %v1129_v19 = vadd.f32 %v1128_v29, %v1127_v2  ;;  %v1067_v12 = vsel %vm982_vm0, %v1045_v49, 0.0  ;;  %v1099_v25 = vsub.f32 %v2393_v11, %v2586_v28 }
 0x15d   :  { %v1113_v58 = vmul.f32 %v1097_v0, %v1097_v0  ;;  %v1130_v43 = vsel %vm982_vm0, %v1111_v14, 0.0  ;;  %v1068_v53 = vadd.f32 %v1067_v12, %v1066_v41  ;;  %v1069_v7 = vsel %vm982_vm0, %v1046_v10, 0.0 }
 0x15e   :  { %v1131_v1 = vadd.f32 %v1130_v43, %v1129_v19  ;;  %v1161_v15 = vsub.f32 %v2362_v57, %v2586_v28  ;;  %v1100_v24 = vsub.f32 %v2425_v52, %v2586_v28  ;;  %v1114_v31 = vmul.f32 %v1098_v44, %v1098_v44 }
 0x15f   :  { %v1132_v2 = vsel %vm982_vm0, %v1112_v34, 0.0  ;;  %v1162_v49 = vsub.f32 %v2382_v5, %v2586_v28  ;;  %v1071_v6 = vsel %vm982_vm0, %v1047_v33, 0.0  ;;  %v1073_v4 = vsel %vm982_vm0, %v1048_v18, 0.0 }
 0x160   :  { %v1075_v41 = vsel %vm982_vm0, %v1049_v26, 0.0  ;;  %v1133_v13 = vadd.f32 %v1132_v2, %v1131_v1  ;;  %v2663_v35 = vsel %vm982_vm0, %v1050_v56, 0.0  ;;  %v1115_v10 = vmul.f32 %v1099_v25, %v1099_v25 }
 0x161   :  { %v1134_v0 = vsel %vm982_vm0, %v1113_v58, 0.0  ;;  %v1163_v14 = vsub.f32 %v2350_v51, %v2586_v28  ;;  %v1070_v23 = vadd.f32 %v1069_v7, %v1068_v53  ;;  %v1101_v44 = vsub.f32 %v2378_v3, %v2586_v28 }
 0x162   :  { %v1135_v34 = vadd.f32 %v1134_v0, %v1133_v13  ;;  %v1177_v33 = vmul.f32 %v1161_v15, %v1161_v15  ;;  %v1116_v29 = vmul.f32 %v1100_v24, %v1100_v24  ;;  %v1136_v18 = vsel %vm982_vm0, %v1114_v31, 0.0 }
 0x163   :  { %v1164_v26 = vsub.f32 %v2372_v63, %v2586_v28  ;;  %v1178_v56 = vmul.f32 %v1162_v49, %v1162_v49  ;;  %v2674_v19 = vsel %vm982_vm0, %v1051_v37, 0.0  ;;  %v2677_v12 = vsel %vm982_vm0, %v1052_v39, 0.0 }
 0x164   :  { %v1102_v25 = vsub.f32 %v2416_v42, %v2586_v28  ;;  %v1137_v58 = vadd.f32 %v1136_v18, %v1135_v34  ;;  %v1103_v43 = vsub.f32 %v2484_v17, %v2586_v28  ;;  %v1138_v53 = vsel %vm982_vm0, %v1115_v10, 0.0 }
 0x165   :  { %v1165_v7 = vsub.f32 %v2436_v22, %v2586_v28  ;;  %v1179_v1 = vmul.f32 %v1163_v14, %v1163_v14  ;;  %v1072_v15 = vadd.f32 %v1071_v6, %v1070_v23  ;;  %v1117_v24 = vmul.f32 %v1101_v44, %v1101_v44 }
 0x166   :  { %v1139_v37 = vadd.f32 %v1138_v53, %v1137_v58  ;;  %v1193_v31 = vsel %vm982_vm0, %v1177_v33, 0.0  ;;  %v1140_v39 = vsel %vm982_vm0, %v1116_v29, 0.0  ;;  %v1166_v2 = vsub.f32 %v2451_v61, %v2586_v28  ;;  %v3379_v53 = vld [vmem:[#allocation17_spill] sm:$0xff] }
 0x167   :  { %v1180_v49 = vmul.f32 %v1164_v26, %v1164_v26  ;;  %v1194_v13 = vsel %vm982_vm0, %v1178_v56, 0.0  ;;  %v1104_v10 = vsub.f32 %v2523_v8, %v2586_v28  ;;  %v1105_v0 = vsub.f32 %v2470_v62, %v2586_v28 }
 0x168   :  { %v1141_v14 = vadd.f32 %v1140_v39, %v1139_v37  ;;  %v1195_v6 = vadd.f32 %v1194_v13, %v1193_v31  ;;  %v1106_v23 = vsub.f32 %v2510_v59, %v2586_v28  ;;  %v1167_v44 = vsub.f32 %v2429_v20, %v2586_v28 }
 0x169   :  { %v1181_v34 = vmul.f32 %v1165_v7, %v1165_v7  ;;  %v1196_v33 = vsel %vm982_vm0, %v1179_v1, 0.0  ;;  %v1074_v29 = vadd.f32 %v1073_v4, %v1072_v15  ;;  %v1118_v18 = vmul.f32 %v1102_v25, %v1102_v25  ;;  %v3380_v4 = vld [vmem:[#allocation27_spill] sm:$0xff] }
 0x16a   :  { %v1119_v26 = vmul.f32 %v1103_v43, %v1103_v43  ;;  %v1197_v56 = vadd.f32 %v1196_v33, %v1195_v6  ;;  %v1142_v58 = vsel %vm982_vm0, %v1117_v24, 0.0  ;;  %v1168_v61 = vsub.f32 %v3379_v53, %v2586_v28 }
 0x16b   :  { %v1182_v37 = vmul.f32 %v1166_v2, %v1166_v2  ;;  %v1198_v31 = vsel %vm982_vm0, %v1180_v49, 0.0  ;;  %v2705_v39 = vsel %vm982_vm0, %v1053_v60, 0.0  ;;  %v1120_v13 = vmul.f32 %v1104_v10, %v1104_v10  ;;  %v3381_v60 = vld [vmem:[#allocation30_spill] sm:$0xff] }
 0x16c   :  { %v1143_v20 = vadd.f32 %v1142_v58, %v1141_v14  ;;  %v1199_v7 = vadd.f32 %v1198_v31, %v1197_v56  ;;  %v1121_v22 = vmul.f32 %v1105_v0, %v1105_v0  ;;  %v1169_v25 = vsub.f32 %v3380_v4, %v2586_v28 }
 0x16d   :  { %v1183_v43 = vmul.f32 %v1167_v44, %v1167_v44  ;;  %v1200_v1 = vsel %vm982_vm0, %v1181_v34, 0.0  ;;  %v1076_v15 = vadd.f32 %v1075_v41, %v1074_v29  ;;  %v2710_v24 = vmul.f32 %v1106_v23, %v1106_v23  ;;  %v3382_v34 = vld [vmem:[#allocation9_spill] sm:$0xff] }
 0x16e   :  { %v1144_v2 = vsel %vm982_vm0, %v1118_v18, 0.0  ;;  %v1201_v6 = vadd.f32 %v1200_v1, %v1199_v7  ;;  %v1146_v49 = vsel %vm982_vm0, %v1119_v26, 0.0  ;;  %v1170_v10 = vsub.f32 %v3381_v60, %v2586_v28  ;;  %v3383_v23 = vld [vmem:[#allocation25_spill] sm:$0xff]  ;;  %v3384_v26 = vld [vmem:[#allocation11_spill] sm:$0xff] }
 0x16f   :  { %v1184_v14 = vmul.f32 %v1168_v61, %v1168_v61  ;;  %v1202_v0 = vsel %vm982_vm0, %v1182_v37, 0.0  ;;  %v1145_v33 = vadd.f32 %v1144_v2, %v1143_v20  ;;  %v1148_v56 = vsel %vm982_vm0, %v1120_v13, 0.0  ;;  %v3385_v20 = vld [vmem:[#allocation29_spill] sm:$0xff] }
 0x170   :  { %v1203_v44 = vadd.f32 %v1202_v0, %v1201_v6  ;;  %v1231_v41 = vsub.f32 %v3382_v34, %v2586_v28  ;;  %v1171_v29 = vsub.f32 %v3383_v23, %v2586_v28  ;;  %v1185_v18 = vmul.f32 %v1169_v25, %v1169_v25  ;;  %v3386_v25 = vld [vmem:[#allocation8_spill] sm:$0xff] }
 0x171   :  { %v1204_v58 = vsel %vm982_vm0, %v1183_v43, 0.0  ;;  %v1232_v31 = vsub.f32 %v3384_v26, %v2586_v28  ;;  %v1078_v61 = vadd.f32 %v2663_v35, %v1076_v15  ;;  %v1150_v37 = vsel %vm982_vm0, %v1121_v22, 0.0 }
 0x172   :  { %v1172_v13 = vsub.f32 %v3385_v20, %v2586_v28  ;;  %v1205_v7 = vadd.f32 %v1204_v58, %v1203_v44  ;;  %v1173_v1 = vsub.f32 %v2552_v21, %v2586_v28  ;;  %v1186_v2 = vmul.f32 %v1170_v10, %v1170_v10  ;;  %v3387_v44 = vld [vmem:[#allocation12_spill] sm:$0xff] }
 0x173   :  { %v1206_v6 = vsel %vm982_vm0, %v1184_v14, 0.0  ;;  %v1233_v43 = vsub.f32 %v3386_v25, %v2586_v28  ;;  %v1147_v0 = vadd.f32 %v1146_v49, %v1145_v33  ;;  %v1174_v26 = vsub.f32 %v2567_v27, %v2586_v28  ;;  %v3388_v14 = vld [vmem:[#allocation34_spill] sm:$0xff]  ;;  %v3389_v25 = vld [vmem:[#allocation37_spill] sm:$0xff] }
 0x174   :  { %v1207_v35 = vadd.f32 %v1206_v6, %v1205_v7  ;;  %v1247_v15 = vmul.f32 %v1231_v41, %v1231_v41  ;;  %v1187_v22 = vmul.f32 %v1171_v29, %v1171_v29  ;;  %v1208_v34 = vsel %vm982_vm0, %v1185_v18, 0.0  ;;  %v3390_v41 = vld [vmem:[#allocation16_spill] sm:$0xff] }
 0x175   :  { %v1234_v58 = vsub.f32 %v3387_v44, %v2586_v28  ;;  %v1248_v20 = vmul.f32 %v1232_v31, %v1232_v31  ;;  %v1080_v10 = vadd.f32 %v2674_v19, %v1078_v61  ;;  %v1175_v21 = vsub.f32 %v3388_v14, %v2586_v28  ;;  %v3391_v61 = vld [vmem:[#allocation20_spill] sm:$0xff] }
 0x176   :  { %v1176_v49 = vsub.f32 %v3389_v25, %v2586_v28  ;;  %v1209_v33 = vadd.f32 %v1208_v34, %v1207_v35  ;;  %v1188_v23 = vmul.f32 %v1172_v13, %v1172_v13  ;;  %v1210_v7 = vsel %vm982_vm0, %v1186_v2, 0.0 }
 0x177   :  { %v1235_v29 = vsub.f32 %v3390_v41, %v2586_v28  ;;  %v1249_v18 = vmul.f32 %v1233_v43, %v1233_v43  ;;  %v1149_v6 = vadd.f32 %v1148_v56, %v1147_v0  ;;  %v1189_v27 = vmul.f32 %v1173_v1, %v1173_v1  ;;  %v3392_v56 = vld [vmem:[#allocation18_spill] sm:$0xff] }
 0x178   :  { %v1211_v44 = vadd.f32 %v1210_v7, %v1209_v33  ;;  %v1263_v31 = vsel %vm982_vm0, %v1247_v15, 0.0  ;;  %v1212_v19 = vsel %vm982_vm0, %v1187_v22, 0.0  ;;  %v1236_v14 = vsub.f32 %v3391_v61, %v2586_v28 }
 0x179   :  { %v1250_v60 = vmul.f32 %v1234_v58, %v1234_v58  ;;  %v1264_v34 = vsel %vm982_vm0, %v1248_v20, 0.0  ;;  %v1082_v13 = vadd.f32 %v2677_v12, %v1080_v10  ;;  %v1190_v2 = vmul.f32 %v1174_v26, %v1174_v26  ;;  %v3393_v20 = vld [vmem:[#allocation23_spill] sm:$0xff] }
 0x17a   :  { %v1213_v35 = vadd.f32 %v1212_v19, %v1211_v44  ;;  %v1265_v25 = vadd.f32 %v1264_v34, %v1263_v31  ;;  %v1214_v43 = vsel %vm982_vm0, %v1188_v23, 0.0  ;;  %v1237_v1 = vsub.f32 %v3392_v56, %v2586_v28 }
 0x17b   :  { %v1251_v0 = vmul.f32 %v1235_v29, %v1235_v29  ;;  %v1266_v15 = vsel %vm982_vm0, %v1249_v18, 0.0  ;;  %v1151_v22 = vadd.f32 %v1150_v37, %v1149_v6  ;;  %v1191_v33 = vmul.f32 %v1175_v21, %v1175_v21  ;;  %v3394_v21 = vld [vmem:[#allocation28_spill] sm:$0xff] }
 0x17c   :  { %v1215_v7 = vadd.f32 %v1214_v43, %v1213_v35  ;;  %v1267_v61 = vadd.f32 %v1266_v15, %v1265_v25  ;;  %v1216_v58 = vsel %vm982_vm0, %v1189_v27, 0.0  ;;  %v1238_v12 = vsub.f32 %v3393_v20, %v2586_v28  ;;  %v3396_v43 = vld [vmem:[#allocation26_spill] sm:$0xff] }
 0x17d   :  { %v1252_v26 = vmul.f32 %v1236_v14, %v1236_v14  ;;  %v1268_v44 = vsel %vm982_vm0, %v1250_v60, 0.0  ;;  %v1084_v23 = vadd.f32 %v2705_v39, %v1082_v13  ;;  %v1152_v10 = vsel %vm982_vm0, %v2710_v24, 0.0  ;;  %v3395_v39 = vld [vmem:[#allocation32_spill] sm:$0xff] }
 0x17e   :  { %v1217_v29 = vadd.f32 %v1216_v58, %v1215_v7  ;;  %v1269_v31 = vadd.f32 %v1268_v44, %v1267_v61  ;;  %v1218_v37 = vsel %vm982_vm0, %v1190_v2, 0.0  ;;  %v1239_v25 = vsub.f32 %v3394_v21, %v2586_v28 }
 0x17f   :  { %v1253_v18 = vmul.f32 %v1237_v1, %v1237_v1  ;;  %v1270_v27 = vsel %vm982_vm0, %v1251_v0, 0.0  ;;  %v1153_v6 = vadd.f32 %v1152_v10, %v1151_v22  ;;  %v1192_v19 = vmul.f32 %v1176_v49, %v1176_v49 }
 0x180   :  { %v1219_v14 = vadd.f32 %v1218_v37, %v1217_v29  ;;  %v1271_v34 = vadd.f32 %v1270_v27, %v1269_v31  ;;  %v1220_v60 = vsel %vm982_vm0, %v1191_v33, 0.0  ;;  %v1240_v13 = vsub.f32 %v3395_v39, %v2586_v28  ;;  %v3397_v33 = vld [vmem:[#allocation33_spill] sm:$0xff]  ;;  %v3398_v31 = vld [vmem:[#allocation36_spill] sm:$0xff] }
 0x181   :  { %v1254_v24 = vmul.f32 %v1238_v12, %v1238_v12  ;;  %v1272_v61 = vsel %vm982_vm0, %v1252_v26, 0.0  ;;  %v1241_v15 = vsub.f32 %v3396_v43, %v2586_v28  ;;  %v1255_v1 = vmul.f32 %v1239_v25, %v1239_v25 }
 0x182   :  { %v1221_v35 = vadd.f32 %v1220_v60, %v1219_v14  ;;  %v1273_v2 = vadd.f32 %v1272_v61, %v1271_v34  ;;  %v1274_v0 = vsel %vm982_vm0, %v1253_v18, 0.0  ;;  %v1085_v22 = vrot.slane %v1084_v23, 4 }
 0x183   :  { %v1154_v49 = vrot.slane %v1153_v6, 4  ;;  %v1222_v58 = vsel %vm982_vm0, %v1192_v19, 0.0  ;;  %v1242_v44 = vsub.f32 %v3397_v33, %v2586_v28  ;;  %v1256_v10 = vmul.f32 %v1240_v13, %v1240_v13 }
 0x184   :  { %v1275_v7 = vadd.f32 %v1274_v0, %v1273_v2  ;;  %v1276_v12 = vsel %vm982_vm0, %v1254_v24, 0.0  ;;  %v1223_v26 = vadd.f32 %v1222_v58, %v1221_v35  ;;  %v1243_v37 = vsub.f32 %v3398_v31, %v2586_v28  ;;  %v3399_v24 = vld [vmem:[#allocation38_spill] sm:$0xff] }
 0x185   :  { %v1257_v27 = vmul.f32 %v1241_v15, %v1241_v15  ;;  %v1278_v25 = vsel %vm982_vm0, %v1255_v1, 0.0  ;;  %v1086_v18 = vadd.f32 %v1085_v22, %v1084_v23  ;;  %v1155_v14 = vadd.f32 %v1154_v49, %v1153_v6 }
 0x186   :  { %v1277_v29 = vadd.f32 %v1276_v12, %v1275_v7  ;;  %v1244_v19 = vsub.f32 %v2574_v40, %v2586_v28  ;;  %v1258_v60 = vmul.f32 %v1242_v44, %v1242_v44  ;;  %v1280_v61 = vsel %vm982_vm0, %v1256_v10, 0.0 }
 0x187   :  { %v1224_v13 = vrot.slane %v1223_v26, 4  ;;  %v1245_v35 = vsub.f32 %v3399_v24, %v2586_v28  ;;  %v1259_v0 = vmul.f32 %v1243_v37, %v1243_v37  ;;  %v1282_v7 = vsel %vm982_vm0, %v1257_v27, 0.0 }
 0x188   :  { %v1279_v34 = vadd.f32 %v1278_v25, %v1277_v29  ;;  %v1087_v15 = vrot.slane %v1086_v18, 2  ;;  %v1156_v58 = vrot.slane %v1155_v14, 2  ;;  %v1246_v23 = vsub.f32 %v2579_v16, %v2586_v28 }
 0x189   :  { %v1260_v6 = vmul.f32 %v1244_v19, %v1244_v19  ;;  %v1284_v22 = vsel %vm982_vm0, %v1258_v60, 0.0  ;;  %v1225_v49 = vadd.f32 %v1224_v13, %v1223_v26  ;;  %v1261_v10 = vmul.f32 %v1245_v35, %v1245_v35 }
 0x18a   :  { %v1281_v2 = vadd.f32 %v1280_v61, %v1279_v34  ;;  %v1286_v12 = vsel %vm982_vm0, %v1259_v0, 0.0  ;;  %v1088_v29 = vadd.f32 %v1087_v15, %v1086_v18  ;;  %v1157_v25 = vadd.f32 %v1156_v58, %v1155_v14 }
 0x18b   :  { %v1262_v37 = vmul.f32 %v1246_v23, %v1246_v23  ;;  %v1288_v27 = vsel %vm982_vm0, %v1260_v6, 0.0  ;;  %v1226_v61 = vrot.slane %v1225_v49, 2 }
 0x18c   :  { %v1283_v1 = vadd.f32 %v1282_v7, %v1281_v2  ;;  %v1290_v2 = vsel %vm982_vm0, %v1261_v10, 0.0  ;;  %v1089_v7 = vrot.slane %v1088_v29, 1  ;;  %v1158_v16 = vrot.slane %v1157_v25, 1 }
 0x18d   :  { %v1292_v60 = vsel %vm982_vm0, %v1262_v37, 0.0  ;;  %v1227_v26 = vadd.f32 %v1226_v61, %v1225_v49  ;;  %v1306_v61 = vld [vmem:[%s3276_s4] sm:$0x1] }
 0x18e   :  { %v1285_v44 = vadd.f32 %v1284_v22, %v1283_v1  ;;  %v1090_v35 = vadd.f32 %v1089_v7, %v1088_v29  ;;  %v1159_v1 = vadd.f32 %v1158_v16, %v1157_v25  ;;  %v1302_v16 = vld [vmem:[%s3275_s3] sm:$0x1] }
 0x18f   :  { %v1228_v18 = vrot.slane %v1227_v26, 1 }
 0x190   :  { %v1287_v34 = vadd.f32 %v1286_v12, %v1285_v44  ;;  %v1160_v15 = vadd.f32 %v1159_v1, %v1090_v35 }
 0x191   :  { %v1229_v23 = vadd.f32 %v1228_v18, %v1227_v26  ;;  %v3400_v18 = vld [vmem:[#allocation10_spill] sm:$0xff] }
 0x192   :  { %v1289_v24 = vadd.f32 %v1288_v27, %v1287_v34 }
 0x193   :  { %v1230_v22 = vadd.f32 %v1229_v23, %v1160_v15  ;;  %v3402_v15 = vld [vmem:[#allocation22_spill] sm:$0xff]  ;;  %v3404_v23 = vld [vmem:[#allocation21_spill] sm:$0xff] }
 0x194   :  { %v1291_v19 = vadd.f32 %v1290_v2, %v1289_v24  ;;  %v1310_v24 = vlaneseq }
 0x196   :  { %v1293_v13 = vadd.f32 %v1292_v60, %v1291_v19  ;;  %v1311_v37 = vshrl.u32 %v1310_v24, 7  ;;  %v3409_v24 = vld [vmem:[#allocation4_spill] sm:$0xff] }
 0x198   :  { %v1294_v0 = vrot.slane %v1293_v13, 4  ;;  %v1312_v49 = vsub.s32 0, %v1311_v37 }
 0x19a   :  { %v1295_v14 = vadd.f32 %v1294_v0, %v1293_v13 }
 0x19c   :  { %v1296_v58 = vrot.slane %v1295_v14, 2 }
 0x19e   :  { %v1297_v6 = vadd.f32 %v1296_v58, %v1295_v14  ;;  %v3401_v14 = vld [vmem:[#allocation13_spill] sm:$0xff]  ;;  %v3403_v58 = vld [vmem:[#allocation31_spill] sm:$0xff] }
 0x1a0   :  { %v1298_v44 = vrot.slane %v1297_v6, 1 }
 0x1a2   :  { %v1299_v12 = vadd.f32 %v1298_v44, %v1297_v6  ;;  %v3405_v6 = vld [vmem:[#allocation24_spill] sm:$0xff] }
 0x1a4   :  { %v1300_v10 = vadd.f32 %v1299_v12, %v1230_v22  ;;  %v3407_v12 = vld [vmem:[#allocation5_spill] sm:$0xff] }
 0x1a6   :  { %v1301_v34 = vmul.f32 0.001953125, %v1300_v10 }
 0x1a8   :  { %v1303_v27 = vadd.f32 1e-05, %v1301_v34  ;;  %v3408_v34 = vld [vmem:[#allocation2_spill] sm:$0xff] }
 0x1aa   :  { %2049 = vrsqrt.f32 %v1303_v27 }
 0x1b4   :  { %v2050_v29 = vpop.eup %2049 }
 0x1b5   :  { %v1305_v25 = vmul.f32 %v2050_v29, %v1302_v16  ;;  %v3410_v16 = vld [vmem:[#allocation6_spill] sm:$0xff]  ;;  %v3411_v29 = vld [vmem:[#allocation7_spill] sm:$0xff] }
 0x1b7   :  { %v1307_v2 = vmul.f32 %v1305_v25, %v2586_v28  ;;  %v2802_v7 = vrot.slane %v1305_v25, %v1312_v49 }
 0x1b9   :  { %v1308_v19 = vsub.f32 %v1306_v61, %v1307_v2  ;;  %v1315_v60 = vmul.f32 %v2802_v7, %v2303_v32  ;;  %v1316_v26 = vmul.f32 %v2802_v7, %v2319_v38  ;;  %v1317_v13 = vmul.f32 %v2802_v7, %v2297_v30 }
 0x1ba   :  { %v1318_v35 = vmul.f32 %v2802_v7, %v2313_v36  ;;  %v1319_v1 = vmul.f32 %v2802_v7, %v2341_v48  ;;  %v1320_v28 = vmul.f32 %v2802_v7, %v2356_v55  ;;  %v1321_v0 = vmul.f32 %v2802_v7, %v2335_v45 }
 0x1bb   :  { %v1322_v32 = vmul.f32 %v2802_v7, %v2347_v50  ;;  %v1323_v38 = vmul.f32 %v2802_v7, %v2389_v9  ;;  %v1324_v30 = vmul.f32 %v2802_v7, %v2421_v47  ;;  %v1325_v36 = vmul.f32 %v2802_v7, %v3400_v18  ;;  %v3406_v47 = vld [vmem:[#allocation3_spill] sm:$0xff] }
 0x1bc   :  { %v1326_v48 = vmul.f32 %v2802_v7, %v3401_v14  ;;  %v1327_v55 = vmul.f32 %v2802_v7, %v3402_v15  ;;  %v1328_v45 = vmul.f32 %v2802_v7, %v3403_v58  ;;  %v1329_v50 = vmul.f32 %v2802_v7, %v3404_v23 }
 0x1bd   :  { %v1330_v9 = vmul.f32 %v2802_v7, %v3405_v6  ;;  %v2836_v22 = vrot.slane %v1308_v19, %v1312_v49  ;;  %v2840_v44 = vmul.f32 %v2802_v7, %v3406_v47  ;;  %v2844_v10 = vmul.f32 %v2802_v7, %v3407_v12 }
 0x1be   :  { %v2848_v27 = vmul.f32 %v2802_v7, %v3408_v34  ;;  %v2852_v37 = vmul.f32 %v2802_v7, %v3409_v24  ;;  %v2856_v49 = vmul.f32 %v2802_v7, %v3410_v16  ;;  %v2860_v25 = vmul.f32 %v2802_v7, %v3411_v29 }
 0x1bf   :  { %v1337_v61 = vadd.f32 %v2836_v22, %v1315_v60  ;;  %v1338_v2 = vadd.f32 %v2836_v22, %v1316_v26  ;;  %v1339_v19 = vadd.f32 %v2836_v22, %v1317_v13  ;;  %v1340_v18 = vadd.f32 %v2836_v22, %v1318_v35 }
 0x1c0   :  { %v1341_v14 = vadd.f32 %v2836_v22, %v1319_v1  ;;  %v1342_v15 = vadd.f32 %v2836_v22, %v1320_v28  ;;  %v1343_v58 = vadd.f32 %v2836_v22, %v1321_v0  ;;  %v1344_v23 = vadd.f32 %v2836_v22, %v1322_v32 }
 0x1c1   :  { %v1345_v6 = vadd.f32 %v2836_v22, %v1323_v38  ;;  %v1346_v47 = vadd.f32 %v2836_v22, %v1324_v30  ;;  %v1347_v60 = vadd.f32 %v2836_v22, %v1325_v36  ;;  %v1348_v26 = vadd.f32 %v2836_v22, %v1326_v48 }
 0x1c2   :  { %v1349_v13 = vadd.f32 %v2836_v22, %v1327_v55  ;;  %v1350_v35 = vadd.f32 %v2836_v22, %v1328_v45  ;;  %v1351_v1 = vadd.f32 %v2836_v22, %v1329_v50  ;;  %v1352_v28 = vadd.f32 %v2836_v22, %v1330_v9 }
 0x1c3   :  { %v1353_v12 = vmax.f32 %v1337_v61, 0.0  ;;  %v1354_v0 = vmax.f32 %v1338_v2, 0.0  ;;  %v1355_v34 = vmax.f32 %v1339_v19, 0.0  ;;  %v1356_v32 = vmax.f32 %v1340_v18, 0.0 }
 0x1c4   :  { %v1357_v24 = vmax.f32 %v1341_v14, 0.0  ;;  %v1358_v38 = vmax.f32 %v1342_v15, 0.0  ;;  %v1359_v16 = vmax.f32 %v1343_v58, 0.0  ;;  %v1360_v30 = vmax.f32 %v1344_v23, 0.0 }
 0x1c5   :  { %v1361_v29 = vmax.f32 %v1345_v6, 0.0  ;;  %v1362_v36 = vmax.f32 %v1346_v47, 0.0  ;;  %v1363_v40 = vmax.f32 %v1347_v60, 0.0  ;;  %v1364_v48 = vmax.f32 %v1348_v26, 0.0  ;;  %1369 = vst.msk [vmem:[%s3277_s5] sm:$0xff] %vm982_vm0, %v1353_v12  ;;  %1370 = vst.msk [vmem:[%s3277_s5 + $0x8] sm:$0xff] %vm982_vm0, %v1354_v0 }
 0x1c6   :  { %1371 = vst.msk [vmem:[%s3277_s5 + $0x10] sm:$0xff] %vm982_vm0, %v1355_v34  ;;  %1372 = vst.msk [vmem:[%s3277_s5 + $0x18] sm:$0xff] %vm982_vm0, %v1356_v32  ;;  %v1365_v55 = vmax.f32 %v1349_v13, 0.0  ;;  %v1366_v45 = vmax.f32 %v1350_v35, 0.0  ;;  %v1367_v50 = vmax.f32 %v1351_v1, 0.0  ;;  %v1368_v9 = vmax.f32 %v1352_v28, 0.0 }
 0x1c7   :  { %1373 = vst.msk [vmem:[%s3277_s5 + $0x20] sm:$0xff] %vm982_vm0, %v1357_v24  ;;  %1374 = vst.msk [vmem:[%s3277_s5 + $0x28] sm:$0xff] %vm982_vm0, %v1358_v38  ;;  %v1391_v61 = vmul.f32 %v2802_v7, %v2338_v46  ;;  %v1392_v2 = vmul.f32 %v2802_v7, %v2353_v54  ;;  %v1393_v19 = vmul.f32 %v2802_v7, %v2393_v11 }
 0x1c8   :  { %1375 = vst.msk [vmem:[%s3277_s5 + $0x30] sm:$0xff] %vm982_vm0, %v1359_v16  ;;  %1376 = vst.msk [vmem:[%s3277_s5 + $0x38] sm:$0xff] %vm982_vm0, %v1360_v30  ;;  %v1394_v18 = vmul.f32 %v2802_v7, %v2425_v52  ;;  %v1395_v46 = vmul.f32 %v2802_v7, %v2378_v3  ;;  %v1396_v54 = vmul.f32 %v2802_v7, %v2416_v42 }
 0x1c9   :  { %1377 = vst.msk [vmem:[%s3277_s5 + $0x40] sm:$0xff] %vm982_vm0, %v1361_v29  ;;  %1378 = vst.msk [vmem:[%s3277_s5 + $0x48] sm:$0xff] %vm982_vm0, %v1362_v36  ;;  %v1397_v11 = vmul.f32 %v2802_v7, %v2484_v17  ;;  %v1398_v52 = vmul.f32 %v2802_v7, %v2523_v8  ;;  %v1400_v14 = vmul.f32 %v2802_v7, %v2510_v59 }
 0x1ca   :  { %1379 = vst.msk [vmem:[%s3277_s5 + $0x50] sm:$0xff] %vm982_vm0, %v1363_v40  ;;  %1380 = vst.msk [vmem:[%s3277_s5 + $0x58] sm:$0xff] %vm982_vm0, %v1364_v48  ;;  %v1399_v40 = vmul.f32 %v2802_v7, %v2470_v62  ;;  %v1401_v15 = vadd.f32 %v2840_v44, %v2836_v22  ;;  %v1402_v3 = vadd.f32 %v2844_v10, %v2836_v22 }
 0x1cb   :  { %1381 = vst.msk [vmem:[%s3277_s5 + $0x60] sm:$0xff] %vm982_vm0, %v1365_v55  ;;  %1382 = vst.msk [vmem:[%s3277_s5 + $0x68] sm:$0xff] %vm982_vm0, %v1366_v45  ;;  %v1403_v42 = vadd.f32 %v2848_v27, %v2836_v22  ;;  %v1404_v17 = vadd.f32 %v2852_v37, %v2836_v22  ;;  %v1405_v8 = vadd.f32 %v2856_v49, %v2836_v22  ;;  %v3412_v55 = vld [vmem:[#allocation15_spill] sm:$0xff] }
 0x1cc   :  { %1383 = vst.msk [vmem:[%s3277_s5 + $0x70] sm:$0xff] %vm982_vm0, %v1367_v50  ;;  %1384 = vst.msk [vmem:[%s3277_s5 + $0x78] sm:$0xff] %vm982_vm0, %v1368_v9  ;;  %v1406_v62 = vadd.f32 %v2860_v25, %v2836_v22  ;;  %v1407_v59 = vadd.f32 %v1391_v61, %v2836_v22  ;;  %v1408_v58 = vadd.f32 %v1392_v2, %v2836_v22  ;;  %v1417_v47 = vmax.f32 %v1401_v15, 0.0  ;;  %v3413_v50 = vld [vmem:[#allocation19_spill] sm:$0xff] }
 0x1cd   :  { %v1409_v44 = vadd.f32 %v1393_v19, %v2836_v22  ;;  %v1410_v10 = vadd.f32 %v1394_v18, %v2836_v22  ;;  %v1411_v23 = vadd.f32 %v1395_v46, %v2836_v22  ;;  %v1412_v27 = vadd.f32 %v1396_v54, %v2836_v22  ;;  %v3415_v19 = vld [vmem:[#allocation30_spill] sm:$0xff]  ;;  %v3416_v46 = vld [vmem:[#allocation25_spill] sm:$0xff]  ;;  %v3419_v15 = vld [vmem:[#allocation39_spill] sm:$0xff] }
 0x1ce   :  { %v1413_v37 = vadd.f32 %v1397_v11, %v2836_v22  ;;  %v1414_v6 = vadd.f32 %v1398_v52, %v2836_v22  ;;  %v1415_v49 = vadd.f32 %v1399_v40, %v2836_v22  ;;  %v1416_v25 = vadd.f32 %v1400_v14, %v2836_v22  ;;  %1745 = vst.msk [vmem:[%s3277_s5 + $0x80] sm:$0xff] %vm982_vm0, %v1417_v47  ;;  %v3417_v11 = vld [vmem:[#allocation29_spill] sm:$0xff]  ;;  %v3418_v40 = vld [vmem:[#allocation35_spill] sm:$0xff] }
 0x1cf   :  { %v1418_v60 = vmax.f32 %v1402_v3, 0.0  ;;  %v1419_v26 = vmax.f32 %v1403_v42, 0.0  ;;  %v1420_v13 = vmax.f32 %v1404_v17, 0.0  ;;  %v1421_v35 = vmax.f32 %v1405_v8, 0.0  ;;  %v3420_v42 = vld [vmem:[#allocation34_spill] sm:$0xff]  ;;  %v3421_v17 = vld [vmem:[#allocation37_spill] sm:$0xff] }
 0x1d0   :  { %v1422_v1 = vmax.f32 %v1406_v62, 0.0  ;;  %v1423_v28 = vmax.f32 %v1407_v59, 0.0  ;;  %v1424_v12 = vmax.f32 %v1408_v58, 0.0  ;;  %v1425_v0 = vmax.f32 %v1409_v44, 0.0 }
 0x1d1   :  { %v1426_v34 = vmax.f32 %v1410_v10, 0.0  ;;  %1746 = vst.msk [vmem:[%s3277_s5 + $0x88] sm:$0xff] %vm982_vm0, %v1418_v60  ;;  %v1427_v32 = vmax.f32 %v1411_v23, 0.0  ;;  %v1428_v24 = vmax.f32 %v1412_v27, 0.0  ;;  %v1429_v38 = vmax.f32 %v1413_v37, 0.0  ;;  %1747 = vst.msk [vmem:[%s3277_s5 + $0x90] sm:$0xff] %vm982_vm0, %v1419_v26 }
 0x1d2   :  { %v1430_v16 = vmax.f32 %v1414_v6, 0.0  ;;  %1748 = vst.msk [vmem:[%s3277_s5 + $0x98] sm:$0xff] %vm982_vm0, %v1420_v13  ;;  %1749 = vst.msk [vmem:[%s3277_s5 + $0xa0] sm:$0xff] %vm982_vm0, %v1421_v35  ;;  %v1431_v30 = vmax.f32 %v1415_v49, 0.0  ;;  %v1432_v29 = vmax.f32 %v1416_v25, 0.0  ;;  %v1450_v36 = vmul.f32 %v2802_v7, %v2362_v57 }
 0x1d3   :  { %1750 = vst.msk [vmem:[%s3277_s5 + $0xa8] sm:$0xff] %vm982_vm0, %v1422_v1  ;;  %1751 = vst.msk [vmem:[%s3277_s5 + $0xb0] sm:$0xff] %vm982_vm0, %v1423_v28  ;;  %v1451_v48 = vmul.f32 %v2802_v7, %v2382_v5  ;;  %v1452_v57 = vmul.f32 %v2802_v7, %v2350_v51  ;;  %v1453_v5 = vmul.f32 %v2802_v7, %v2372_v63  ;;  %v3414_v51 = vld [vmem:[#allocation14_spill] sm:$0xff] }
 0x1d4   :  { %1752 = vst.msk [vmem:[%s3277_s5 + $0xb8] sm:$0xff] %vm982_vm0, %v1424_v12  ;;  %1753 = vst.msk [vmem:[%s3277_s5 + $0xc0] sm:$0xff] %vm982_vm0, %v1425_v0  ;;  %v1454_v45 = vmul.f32 %v2802_v7, %v3412_v55  ;;  %v1455_v9 = vmul.f32 %v2802_v7, %v3413_v50  ;;  %v1456_v61 = vmul.f32 %v2802_v7, %v3414_v51  ;;  %v3422_v55 = vld [vmem:[#allocation9_spill] sm:$0xff]  ;;  %v3423_v50 = vld [vmem:[#allocation11_spill] sm:$0xff] }
 0x1d5   :  { %1754 = vst.msk [vmem:[%s3277_s5 + $0xc8] sm:$0xff] %vm982_vm0, %v1426_v34  ;;  %1755 = vst.msk [vmem:[%s3277_s5 + $0xd0] sm:$0xff] %vm982_vm0, %v1427_v32  ;;  %v1457_v63 = vmul.f32 %v2802_v7, %v3379_v53  ;;  %v1458_v2 = vmul.f32 %v2802_v7, %v3380_v4  ;;  %v1459_v18 = vmul.f32 %v2802_v7, %v3415_v19  ;;  %v3424_v51 = vld [vmem:[#allocation8_spill] sm:$0xff] }
 0x1d6   :  { %1756 = vst.msk [vmem:[%s3277_s5 + $0xd8] sm:$0xff] %vm982_vm0, %v1428_v24  ;;  %1757 = vst.msk [vmem:[%s3277_s5 + $0xe0] sm:$0xff] %vm982_vm0, %v1429_v38  ;;  %v1460_v54 = vmul.f32 %v2802_v7, %v3416_v46  ;;  %v1461_v52 = vmul.f32 %v2802_v7, %v3417_v11  ;;  %v1462_v14 = vmul.f32 %v2802_v7, %v3418_v40 }
 0x1d7   :  { %1758 = vst.msk [vmem:[%s3277_s5 + $0xe8] sm:$0xff] %vm982_vm0, %v1430_v16  ;;  %1759 = vst.msk [vmem:[%s3277_s5 + $0xf0] sm:$0xff] %vm982_vm0, %v1431_v30  ;;  %v1463_v3 = vmul.f32 %v2802_v7, %v3419_v15  ;;  %v1464_v53 = vmul.f32 %v2802_v7, %v3420_v42  ;;  %v1465_v4 = vmul.f32 %v2802_v7, %v3421_v17  ;;  %v3428_v42 = vld [vmem:[#allocation38_spill] sm:$0xff] }
 0x1d8   :  { %1760 = vst.msk [vmem:[%s3277_s5 + $0xf8] sm:$0xff] %vm982_vm0, %v1432_v29  ;;  %v1466_v8 = vadd.f32 %v1450_v36, %v2836_v22  ;;  %v1467_v62 = vadd.f32 %v1451_v48, %v2836_v22  ;;  %v1468_v59 = vadd.f32 %v1452_v57, %v2836_v22  ;;  %v1469_v58 = vadd.f32 %v1453_v5, %v2836_v22 }
 0x1d9   :  { %v1470_v44 = vadd.f32 %v1454_v45, %v2836_v22  ;;  %v1471_v10 = vadd.f32 %v1455_v9, %v2836_v22  ;;  %v1472_v23 = vadd.f32 %v1456_v61, %v2836_v22  ;;  %v1473_v27 = vadd.f32 %v1457_v63, %v2836_v22  ;;  %v3425_v63 = vld [vmem:[#allocation12_spill] sm:$0xff] }
 0x1da   :  { %v1474_v37 = vadd.f32 %v1458_v2, %v2836_v22  ;;  %v1475_v6 = vadd.f32 %v1459_v18, %v2836_v22  ;;  %v1476_v49 = vadd.f32 %v1460_v54, %v2836_v22  ;;  %v1477_v25 = vadd.f32 %v1461_v52, %v2836_v22  ;;  %v3426_v18 = vld [vmem:[#allocation20_spill] sm:$0xff] }
 0x1db   :  { %v1478_v47 = vadd.f32 %v1462_v14, %v2836_v22  ;;  %v1479_v60 = vadd.f32 %v1463_v3, %v2836_v22  ;;  %v1480_v26 = vadd.f32 %v1464_v53, %v2836_v22  ;;  %v1481_v13 = vadd.f32 %v1465_v4, %v2836_v22  ;;  %v3427_v3 = vld [vmem:[#allocation40_spill] sm:$0xff]  ;;  %v3429_v53 = vld [vmem:[#allocation41_spill] sm:$0xff] }
 0x1dc   :  { %v1482_v35 = vmax.f32 %v1466_v8, 0.0  ;;  %v1483_v1 = vmax.f32 %v1467_v62, 0.0  ;;  %v1484_v28 = vmax.f32 %v1468_v59, 0.0  ;;  %v1485_v12 = vmax.f32 %v1469_v58, 0.0 }
 0x1dd   :  { %v1486_v0 = vmax.f32 %v1470_v44, 0.0  ;;  %v1487_v34 = vmax.f32 %v1471_v10, 0.0  ;;  %v1488_v32 = vmax.f32 %v1472_v23, 0.0  ;;  %v1489_v24 = vmax.f32 %v1473_v27, 0.0 }
 0x1de   :  { %v1490_v38 = vmax.f32 %v1474_v37, 0.0  ;;  %v1491_v16 = vmax.f32 %v1475_v6, 0.0  ;;  %1761 = vst.msk [vmem:[%s3277_s5 + $0x100] sm:$0xff] %vm982_vm0, %v1482_v35  ;;  %1762 = vst.msk [vmem:[%s3277_s5 + $0x108] sm:$0xff] %vm982_vm0, %v1483_v1  ;;  %v1492_v30 = vmax.f32 %v1476_v49, 0.0  ;;  %v1493_v29 = vmax.f32 %v1477_v25, 0.0 }
 0x1df   :  { %v1494_v36 = vmax.f32 %v1478_v47, 0.0  ;;  %v1495_v48 = vmax.f32 %v1479_v60, 0.0  ;;  %1763 = vst.msk [vmem:[%s3277_s5 + $0x110] sm:$0xff] %vm982_vm0, %v1484_v28  ;;  %1764 = vst.msk [vmem:[%s3277_s5 + $0x118] sm:$0xff] %vm982_vm0, %v1485_v12  ;;  %v1496_v57 = vmax.f32 %v1480_v26, 0.0  ;;  %v1497_v5 = vmax.f32 %v1481_v13, 0.0 }
 0x1e0   :  { %1765 = vst.msk [vmem:[%s3277_s5 + $0x120] sm:$0xff] %vm982_vm0, %v1486_v0  ;;  %1766 = vst.msk [vmem:[%s3277_s5 + $0x128] sm:$0xff] %vm982_vm0, %v1487_v34  ;;  %v1515_v45 = vmul.f32 %v2802_v7, %v3422_v55  ;;  %v1516_v9 = vmul.f32 %v2802_v7, %v3423_v50  ;;  %v1517_v61 = vmul.f32 %v2802_v7, %v3424_v51 }
 0x1e1   :  { %1767 = vst.msk [vmem:[%s3277_s5 + $0x130] sm:$0xff] %vm982_vm0, %v1488_v32  ;;  %1768 = vst.msk [vmem:[%s3277_s5 + $0x138] sm:$0xff] %vm982_vm0, %v1489_v24  ;;  %v1518_v2 = vmul.f32 %v2802_v7, %v3425_v63  ;;  %v1519_v19 = vmul.f32 %v2802_v7, %v3390_v41  ;;  %v1520_v46 = vmul.f32 %v2802_v7, %v3426_v18 }
 0x1e2   :  { %1769 = vst.msk [vmem:[%s3277_s5 + $0x140] sm:$0xff] %vm982_vm0, %v1490_v38  ;;  %1770 = vst.msk [vmem:[%s3277_s5 + $0x148] sm:$0xff] %vm982_vm0, %v1491_v16  ;;  %v1521_v54 = vmul.f32 %v2802_v7, %v3392_v56  ;;  %v1522_v11 = vmul.f32 %v2802_v7, %v3393_v20  ;;  %v1523_v41 = vmul.f32 %v2802_v7, %v3394_v21 }
 0x1e3   :  { %1771 = vst.msk [vmem:[%s3277_s5 + $0x150] sm:$0xff] %vm982_vm0, %v1492_v30  ;;  %1772 = vst.msk [vmem:[%s3277_s5 + $0x158] sm:$0xff] %vm982_vm0, %v1493_v29  ;;  %v1524_v52 = vmul.f32 %v2802_v7, %v3395_v39  ;;  %v1525_v40 = vmul.f32 %v2802_v7, %v3396_v43  ;;  %v1526_v14 = vmul.f32 %v2802_v7, %v3397_v33 }
 0x1e4   :  { %1773 = vst.msk [vmem:[%s3277_s5 + $0x160] sm:$0xff] %vm982_vm0, %v1494_v36  ;;  %1774 = vst.msk [vmem:[%s3277_s5 + $0x168] sm:$0xff] %vm982_vm0, %v1495_v48  ;;  %v1527_v15 = vmul.f32 %v2802_v7, %v3398_v31  ;;  %v1528_v56 = vmul.f32 %v2802_v7, %v3427_v3  ;;  %v1529_v20 = vmul.f32 %v2802_v7, %v3428_v42 }
 0x1e5   :  { %1775 = vst.msk [vmem:[%s3277_s5 + $0x170] sm:$0xff] %vm982_vm0, %v1496_v57  ;;  %1776 = vst.msk [vmem:[%s3277_s5 + $0x178] sm:$0xff] %vm982_vm0, %v1497_v5  ;;  %v1530_v21 = vmul.f32 %v2802_v7, %v3429_v53  ;;  %v1531_v39 = vadd.f32 %v1515_v45, %v2836_v22  ;;  %v1532_v17 = vadd.f32 %v1516_v9, %v2836_v22 }
 0x1e6   :  { %v1533_v43 = vadd.f32 %v1517_v61, %v2836_v22  ;;  %v1534_v33 = vadd.f32 %v1518_v2, %v2836_v22  ;;  %v1535_v4 = vadd.f32 %v1519_v19, %v2836_v22  ;;  %v1536_v31 = vadd.f32 %v1520_v46, %v2836_v22 }
 0x1e7   :  { %v1537_v8 = vadd.f32 %v1521_v54, %v2836_v22  ;;  %v1538_v62 = vadd.f32 %v1522_v11, %v2836_v22  ;;  %v1539_v59 = vadd.f32 %v1523_v41, %v2836_v22  ;;  %v1540_v7 = vadd.f32 %v1524_v52, %v2836_v22 }
 0x1e8   :  { %v1541_v58 = vadd.f32 %v1525_v40, %v2836_v22  ;;  %v1542_v44 = vadd.f32 %v1526_v14, %v2836_v22  ;;  %v1543_v10 = vadd.f32 %v1527_v15, %v2836_v22  ;;  %v1544_v23 = vadd.f32 %v1528_v56, %v2836_v22 }
 0x1e9   :  { %v1545_v27 = vadd.f32 %v1529_v20, %v2836_v22  ;;  %v1546_v37 = vadd.f32 %v1530_v21, %v2836_v22  ;;  %v1547_v6 = vmax.f32 %v1531_v39, 0.0  ;;  %v1548_v49 = vmax.f32 %v1532_v17, 0.0 }
 0x1ea   :  { %v1549_v25 = vmax.f32 %v1533_v43, 0.0  ;;  %v1550_v47 = vmax.f32 %v1534_v33, 0.0  ;;  %v1551_v60 = vmax.f32 %v1535_v4, 0.0  ;;  %v1552_v26 = vmax.f32 %v1536_v31, 0.0 }
 0x1eb   :  { %v1553_v13 = vmax.f32 %v1537_v8, 0.0  ;;  %v1554_v35 = vmax.f32 %v1538_v62, 0.0  ;;  %v1555_v1 = vmax.f32 %v1539_v59, 0.0  ;;  %v1556_v28 = vmax.f32 %v1540_v7, 0.0  ;;  %1777 = vst.msk [vmem:[%s3277_s5 + $0x180] sm:$0xff] %vm982_vm0, %v1547_v6  ;;  %1778 = vst.msk [vmem:[%s3277_s5 + $0x188] sm:$0xff] %vm982_vm0, %v1548_v49 }
 0x1ec   :  { %v1557_v22 = vmax.f32 %v1541_v58, 0.0  ;;  %v1558_v12 = vmax.f32 %v1542_v44, 0.0  ;;  %v1559_v0 = vmax.f32 %v1543_v10, 0.0  ;;  %v1560_v34 = vmax.f32 %v1544_v23, 0.0  ;;  %1779 = vst.msk [vmem:[%s3277_s5 + $0x190] sm:$0xff] %vm982_vm0, %v1549_v25  ;;  %1780 = vst.msk [vmem:[%s3277_s5 + $0x198] sm:$0xff] %vm982_vm0, %v1550_v47 }
 0x1ed   :  { %1781 = vst.msk [vmem:[%s3277_s5 + $0x1a0] sm:$0xff] %vm982_vm0, %v1551_v60  ;;  %1782 = vst.msk [vmem:[%s3277_s5 + $0x1a8] sm:$0xff] %vm982_vm0, %v1552_v26  ;;  %v1561_v32 = vmax.f32 %v1545_v27, 0.0  ;;  %v1562_v24 = vmax.f32 %v1546_v37, 0.0 }
 0x1ee   :  { %1783 = vst.msk [vmem:[%s3277_s5 + $0x1b0] sm:$0xff] %vm982_vm0, %v1553_v13  ;;  %1784 = vst.msk [vmem:[%s3277_s5 + $0x1b8] sm:$0xff] %vm982_vm0, %v1554_v35 }
 0x1ef   :  { %1785 = vst.msk [vmem:[%s3277_s5 + $0x1c0] sm:$0xff] %vm982_vm0, %v1555_v1  ;;  %1786 = vst.msk [vmem:[%s3277_s5 + $0x1c8] sm:$0xff] %vm982_vm0, %v1556_v28 }
 0x1f0   :  { %1787 = vst.msk [vmem:[%s3277_s5 + $0x1d0] sm:$0xff] %vm982_vm0, %v1557_v22  ;;  %1788 = vst.msk [vmem:[%s3277_s5 + $0x1d8] sm:$0xff] %vm982_vm0, %v1558_v12 }
 0x1f1   :  { %1789 = vst.msk [vmem:[%s3277_s5 + $0x1e0] sm:$0xff] %vm982_vm0, %v1559_v0  ;;  %1790 = vst.msk [vmem:[%s3277_s5 + $0x1e8] sm:$0xff] %vm982_vm0, %v1560_v34 }
 0x1f2   :  { %1791 = vst.msk [vmem:[%s3277_s5 + $0x1f0] sm:$0xff] %vm982_vm0, %v1561_v32  ;;  %1792 = vst.msk [vmem:[%s3277_s5 + $0x1f8] sm:$0xff] %vm982_vm0, %v1562_v24 }

// kernel: generator_forward.7
= control target key start
LH: loop header
LB: loop body
LE: loop exit
PB: predicated region body
PF: predicated region fallthrough
CT: control target
= control target key end

     0   :  { %s1502_s18 = smov 0   ;;  %s1792_s0 = inlined_call_operand.vmem [shape: bf16[4,512,64], index: 0, kind: input, shape index: {}]   ;;  %s1793_s1 = inlined_call_operand.vmem [shape: bf16[4,64,3], index: 1, kind: input, shape index: {}]   ;;  %s1794_s2 = inlined_call_operand.vmem [shape: f32[1,3], index: 2, kind: input, shape index: {}]   ;;  %s1795_s3 = inlined_call_operand.vmem [shape: f32[1,3], index: 3, kind: input, shape index: {}]   ;;  %s1796_s4 = inlined_call_operand.vmem [shape: f32[1,3], index: 4, kind: input, shape index: {}]   ;;  %s1797_s5 = inlined_call_operand.vmem [shape: f32[4,512,3], index: 5, kind: output, shape index: {}]  }
   0x1 LB: > { %s1091_s19 = sadd.s32 4294967295, %s1470_s18   ;;  %p1095_p0 = scmp.ge.s32.totalorder %s1470_s18, 1  ;;  %s1470_s18 = sphi %s1502_s18, %s15_s18  }
   0x2   : > { %p197_p1 = scmp.lt.s32.totalorder %s1470_s18, 5 }
   0x4   : > { %p198_p2 = pnand %p1095_p0, %p197_p1 }
   0x5   : > { %p230_p3 = scmp.lt.s32.totalorder (!%p198_p2), %s1091_s19, 3  ;;  %vm509_vm0 = vcmask (!%p198_p2), 523264   ;;  %v1589_v36 = vld [vmem:[%s1794_s2] ss:$0 sm:$0xff] (!%p198_p2)  ;;  %vm959_vm1 = vcmask (!%p198_p2), 23552  }
   0x6   : > { %201 = sbr.rel (%p198_p2) target bundleno = 325 (0x145), region = 40 }
   0xd   : > { %s1799_s19 = smov (!%p230_p3, %s1091_s19), 3 }
   0xe   : > { %s1173_s3 = sshll.u32 %s1799_s19, 8  ;;  %s1174_s4 = sshll.u32 %s1799_s19, 5 }
   0xf   : > { %s239_s22 = scalar_lea.vmem %s1793_s1, %s1174_s4  ;;  %s1520_s25 = scalar_lea.vmem %s1792_s0, %s1173_s3 }
  0x10   : > { %v1300_v0 = vld [vmem:[%s239_s22] sm:$0xff]   ;;  %v1301_v1 = vld [vmem:[%s239_s22 + $0x8] sm:$0xff]   ;;  %v1302_v2 = vld [vmem:[%s239_s22 + $0x10] sm:$0xff]   ;;  %s1175_s28 = sshll.u32 %s1799_s19, 9 }
  0x11   : > { %1212 = vmatprep.subr.bf16.mxu0 %v1300_v0  ;;  %1284 = vmatprep.subr.bf16.mxu1 %v1300_v0  ;;  %v1304_v3 = vld [vmem:[%s1520_s25] sm:$0xff]   ;;  %v1303_v5 = vld [vmem:[%s239_s22 + $0x18] sm:$0xff]   ;;  %v1306_v6 = vld [vmem:[%s1520_s25 + $0x8] sm:$0xff]   ;;  %s1607_s6 = scalar_lea.vmem %s1797_s5, %s1175_s28 }
  0x12   : > { %1213 = vmatpush3.bf16.msra.mxu0 %v1300_v0  ;;  %1288 = vmatpush3.bf16.msra.mxu1 %v1300_v0  ;;  %v1305_v4 = vld [vmem:[%s1520_s25 + $0x80] sm:$0xff]   ;;  %v1307_v7 = vld [vmem:[%s1520_s25 + $0x88] sm:$0xff]   ;;  %v1308_v8 = vld [vmem:[%s1520_s25 + $0x10] sm:$0xff]  }
  0x13   : > { %1214 = vmatprep.subr.bf16.mxu0 %v1301_v1  ;;  %1285 = vmatprep.subr.bf16.mxu1 %v1301_v1  ;;  %v1309_v9 = vld [vmem:[%s1520_s25 + $0x90] sm:$0xff]   ;;  %v1310_v10 = vld [vmem:[%s1520_s25 + $0x18] sm:$0xff]   ;;  %v1312_v12 = vld [vmem:[%s1520_s25 + $0x20] sm:$0xff]  }
  0x14   : > { %1220 = vmatprep.mubr.msk.bf16.mxu0 %vm509_vm0, %v1304_v3  ;;  %1252 = vmatprep.mubr.msk.bf16.mxu1 %vm509_vm0, %v1305_v4  ;;  %v1311_v11 = vld [vmem:[%s1520_s25 + $0x98] sm:$0xff]   ;;  %v1313_v13 = vld [vmem:[%s1520_s25 + $0xa0] sm:$0xff]   ;;  %v1314_v14 = vld [vmem:[%s1520_s25 + $0x28] sm:$0xff]  }
  0x15   : > { %v1315_v15 = vld [vmem:[%s1520_s25 + $0xa8] sm:$0xff]   ;;  %v1316_v16 = vld [vmem:[%s1520_s25 + $0x30] sm:$0xff]   ;;  %v1318_v18 = vld [vmem:[%s1520_s25 + $0x38] sm:$0xff]  }
  0x16   : > { %1215 = vmatpush3.bf16.msra.mxu0 %v1301_v1  ;;  %1289 = vmatpush3.bf16.msra.mxu1 %v1301_v1  ;;  %v1317_v17 = vld [vmem:[%s1520_s25 + $0xb0] sm:$0xff]   ;;  %v1319_v19 = vld [vmem:[%s1520_s25 + $0xb8] sm:$0xff]   ;;  %v1320_v20 = vld [vmem:[%s1520_s25 + $0x40] sm:$0xff]  }
  0x17   : > { %1216 = vmatprep.subr.bf16.mxu0 %v1302_v2  ;;  %1286 = vmatprep.subr.bf16.mxu1 %v1302_v2  ;;  %v1321_v21 = vld [vmem:[%s1520_s25 + $0xc0] sm:$0xff]   ;;  %v1322_v22 = vld [vmem:[%s1520_s25 + $0x48] sm:$0xff]   ;;  %v1324_v24 = vld [vmem:[%s1520_s25 + $0x50] sm:$0xff]  }
  0x18   : > { %v1323_v23 = vld [vmem:[%s1520_s25 + $0xc8] sm:$0xff]   ;;  %v1325_v25 = vld [vmem:[%s1520_s25 + $0xd0] sm:$0xff]   ;;  %v1326_v26 = vld [vmem:[%s1520_s25 + $0x58] sm:$0xff]  }
  0x19   : > { %v1327_v27 = vld [vmem:[%s1520_s25 + $0xd8] sm:$0xff]   ;;  %v1328_v28 = vld [vmem:[%s1520_s25 + $0x60] sm:$0xff]   ;;  %v1330_v30 = vld [vmem:[%s1520_s25 + $0x68] sm:$0xff]  }
  0x1a   : > { %1217 = vmatpush3.bf16.msra.mxu0 %v1302_v2  ;;  %1290 = vmatpush3.bf16.msra.mxu1 %v1302_v2  ;;  %v1329_v29 = vld [vmem:[%s1520_s25 + $0xe0] sm:$0xff]   ;;  %v1331_v31 = vld [vmem:[%s1520_s25 + $0xe8] sm:$0xff]   ;;  %v1332_v32 = vld [vmem:[%s1520_s25 + $0x70] sm:$0xff]  }
  0x1b   : > { %1218 = vmatprep.subr.bf16.mxu0 %v1303_v5  ;;  %1287 = vmatprep.subr.bf16.mxu1 %v1303_v5  ;;  %v1333_v33 = vld [vmem:[%s1520_s25 + $0xf0] sm:$0xff]   ;;  %v1334_v34 = vld [vmem:[%s1520_s25 + $0x78] sm:$0xff]  }
  0x1c   : > { %v1335_v35 = vld [vmem:[%s1520_s25 + $0xf8] sm:$0xff]  }
  0x1e   : > { %1219 = vmatpush3.bf16.msra.mxu0 %v1303_v5  ;;  %1291 = vmatpush3.bf16.msra.mxu1 %v1303_v5 }
  0x21   : > { %1221 = vmatmul.mubr.msk.bf16.vlgmr.msra.gmra.mrb[0].mxu0 %vm509_vm0, %v1306_v6  ;;  %1253 = vmatmul.mubr.msk.bf16.vlgmr.msra.gmra.mrb[0].mxu1 %vm509_vm0, %v1307_v7 }
  0x22   : > { %1224 = vmatprep.mubr.msk.bf16.mxu0 %vm509_vm0, %v1308_v8  ;;  %1256 = vmatprep.mubr.msk.bf16.mxu1 %vm509_vm0, %v1309_v9 }
  0x29   : > { %1225 = vmatmul.mubr.msk.bf16.gmra.mrb[4].mxu0 %vm509_vm0, %v1310_v10  ;;  %1257 = vmatmul.mubr.msk.bf16.gmra.mrb[4].mxu1 %vm509_vm0, %v1311_v11 }
  0x2a   : > { %1228 = vmatprep.mubr.msk.bf16.mxu0 %vm509_vm0, %v1312_v12  ;;  %1260 = vmatprep.mubr.msk.bf16.mxu1 %vm509_vm0, %v1313_v13 }
  0x31   : > { %1229 = vmatmul.mubr.msk.bf16.gmra.mrb[8].mxu0 %vm509_vm0, %v1314_v14  ;;  %1261 = vmatmul.mubr.msk.bf16.gmra.mrb[8].mxu1 %vm509_vm0, %v1315_v15 }
  0x32   : > { %1232 = vmatprep.mubr.msk.bf16.mxu0 %vm509_vm0, %v1316_v16  ;;  %1264 = vmatprep.mubr.msk.bf16.mxu1 %vm509_vm0, %v1317_v17 }
  0x39   : > { %1233 = vmatmul.mubr.msk.bf16.gmra.mrb[12].mxu0 %vm509_vm0, %v1318_v18  ;;  %1265 = vmatmul.mubr.msk.bf16.gmra.mrb[12].mxu1 %vm509_vm0, %v1319_v19 }
  0x3a   : > { %1236 = vmatprep.mubr.msk.bf16.mxu0 %vm509_vm0, %v1320_v20  ;;  %1268 = vmatprep.mubr.msk.bf16.mxu1 %vm509_vm0, %v1321_v21 }
  0x41   : > { %1237 = vmatmul.mubr.msk.bf16.gmra.mrb[16].mxu0 %vm509_vm0, %v1322_v22  ;;  %1269 = vmatmul.mubr.msk.bf16.gmra.mrb[16].mxu1 %vm509_vm0, %v1323_v23 }
  0x42   : > { %1240 = vmatprep.mubr.msk.bf16.mxu0 %vm509_vm0, %v1324_v24  ;;  %1272 = vmatprep.mubr.msk.bf16.mxu1 %vm509_vm0, %v1325_v25 }
  0x49   : > { %1241 = vmatmul.mubr.msk.bf16.gmra.mrb[20].mxu0 %vm509_vm0, %v1326_v26  ;;  %1273 = vmatmul.mubr.msk.bf16.gmra.mrb[20].mxu1 %vm509_vm0, %v1327_v27 }
  0x4a   : > { %1244 = vmatprep.mubr.msk.bf16.mxu0 %vm509_vm0, %v1328_v28  ;;  %1276 = vmatprep.mubr.msk.bf16.mxu1 %vm509_vm0, %v1329_v29 }
  0x51   : > { %1245 = vmatmul.mubr.msk.bf16.gmra.mrb[24].mxu0 %vm509_vm0, %v1330_v30  ;;  %1277 = vmatmul.mubr.msk.bf16.gmra.mrb[24].mxu1 %vm509_vm0, %v1331_v31 }
  0x52   : > { %1248 = vmatprep.mubr.msk.bf16.mxu0 %vm509_vm0, %v1332_v32  ;;  %1280 = vmatprep.mubr.msk.bf16.mxu1 %vm509_vm0, %v1333_v33 }
  0x59   : > { %1249 = vmatmul.mubr.msk.bf16.gmra.mrb[28].mxu0 %vm509_vm0, %v1334_v34  ;;  %1281 = vmatmul.mubr.msk.bf16.gmra.mrb[28].mxu1 %vm509_vm0, %v1335_v35 }
  0xf4   : > { %v1222_v37 = vpop.f32.mrb[0].mxu0  ;;  %v1254_v38 = vpop.f32.mrb[0].mxu1 }
  0xf5   : > { %v649_v39 = vadd.f32 %v1222_v37, %v1589_v36  ;;  %v777_v40 = vadd.f32 %v1254_v38, %v1589_v36  ;;  %v640_v41 = vpop.f32.mrb[1].mxu0  ;;  %v768_v42 = vpop.f32.mrb[1].mxu1 }
  0xf6   : > { %v641_v43 = vadd.f32 %v1589_v36, %v640_v41  ;;  %v769_v44 = vadd.f32 %v1589_v36, %v768_v42  ;;  %v1223_v45 = vpop.f32.mrb[2].mxu0  ;;  %v1255_v46 = vpop.f32.mrb[2].mxu1 }
  0xf7   : > { %1336 = vtanh.f32 %v649_v39  ;;  %v652_v47 = vadd.f32 %v1223_v45, %v1589_v36  ;;  %v643_v48 = vpop.f32.mrb[3].mxu0  ;;  %v771_v49 = vpop.f32.mrb[3].mxu1  ;;  %v780_v50 = vadd.f32 %v1255_v46, %v1589_v36 }
  0xf8   : > { %1338 = vtanh.f32 %v777_v40  ;;  %v644_v51 = vadd.f32 %v1589_v36, %v643_v48  ;;  %v772_v52 = vadd.f32 %v1589_v36, %v771_v49 }
  0xf9   : > { %1340 = vtanh.f32 %v641_v43 }
  0xfa   : > { %1342 = vtanh.f32 %v769_v44 }
  0xfb   : > { %1344 = vtanh.f32 %v652_v47 }
  0xfc   : > { %1346 = vtanh.f32 %v780_v50  ;;  %v1226_v53 = vpop.f32.mrb[4].mxu0  ;;  %v1258_v54 = vpop.f32.mrb[4].mxu1 }
  0xfd   : > { %1348 = vtanh.f32 %v644_v51  ;;  %v665_v55 = vadd.f32 %v1226_v53, %v1589_v36  ;;  %v793_v56 = vadd.f32 %v1258_v54, %v1589_v36  ;;  %v656_v57 = vpop.f32.mrb[5].mxu0  ;;  %v784_v58 = vpop.f32.mrb[5].mxu1 }
  0xfe   : > { %1350 = vtanh.f32 %v772_v52  ;;  %v657_v59 = vadd.f32 %v1589_v36, %v656_v57  ;;  %v785_v60 = vadd.f32 %v1589_v36, %v784_v58  ;;  %v1227_v61 = vpop.f32.mrb[6].mxu0  ;;  %v1259_v62 = vpop.f32.mrb[6].mxu1 }
  0xff   : > { %1352 = vtanh.f32 %v665_v55  ;;  %v668_v63 = vadd.f32 %v1227_v61, %v1589_v36  ;;  %v659_v0 = vpop.f32.mrb[7].mxu0  ;;  %v787_v1 = vpop.f32.mrb[7].mxu1  ;;  %v796_v2 = vadd.f32 %v1259_v62, %v1589_v36 }
 0x100   : > { %1354 = vtanh.f32 %v793_v56  ;;  %v660_v4 = vadd.f32 %v1589_v36, %v659_v0  ;;  %v788_v6 = vadd.f32 %v1589_v36, %v787_v1 }
 0x101   : > { %v1337_v3 = vpop.eup %1336  ;;  %1356 = vtanh.f32 %v657_v59 }
 0x102   : > { %v1339_v5 = vpop.eup %1338  ;;  %962 = vst.msk [vmem:[%s1607_s6 + $0x10] sm:$0xff] %vm959_vm1, %v1337_v3  ;;  %1358 = vtanh.f32 %v785_v60 }
 0x103   : > { %v1341_v7 = vpop.eup %1340  ;;  %994 = vst.msk [vmem:[%s1607_s6 + $0x110] sm:$0xff] %vm959_vm1, %v1339_v5  ;;  %1360 = vtanh.f32 %v668_v63 }
 0x104   : > { %v1343_v8 = vpop.eup %1342  ;;  %960 = vst.msk [vmem:[%s1607_s6] sm:$0xff] %vm959_vm1, %v1341_v7  ;;  %1362 = vtanh.f32 %v796_v2  ;;  %v1230_v9 = vpop.f32.mrb[8].mxu0 }
 0x105   : > { %v1262_v10 = vpop.f32.mrb[8].mxu1  ;;  %v1345_v11 = vpop.eup %1344  ;;  %992 = vst.msk [vmem:[%s1607_s6 + $0x100] sm:$0xff] %vm959_vm1, %v1343_v8  ;;  %1364 = vtanh.f32 %v660_v4  ;;  %v681_v12 = vadd.f32 %v1230_v9, %v1589_v36 }
 0x106   : > { %v809_v13 = vadd.f32 %v1262_v10, %v1589_v36  ;;  %v672_v14 = vpop.f32.mrb[9].mxu0  ;;  %v800_v15 = vpop.f32.mrb[9].mxu1  ;;  %963 = vst.msk [vmem:[%s1607_s6 + $0x18] sm:$0xff] %vm959_vm1, %v1345_v11  ;;  %1366 = vtanh.f32 %v788_v6 }
 0x107   : > { %v1347_v16 = vpop.eup %1346  ;;  %v673_v17 = vadd.f32 %v1589_v36, %v672_v14  ;;  %v801_v18 = vadd.f32 %v1589_v36, %v800_v15  ;;  %v1231_v19 = vpop.f32.mrb[10].mxu0  ;;  %1368 = vtanh.f32 %v681_v12 }
 0x108   : > { %v1263_v20 = vpop.f32.mrb[10].mxu1  ;;  %v1349_v21 = vpop.eup %1348  ;;  %995 = vst.msk [vmem:[%s1607_s6 + $0x118] sm:$0xff] %vm959_vm1, %v1347_v16  ;;  %v684_v22 = vadd.f32 %v1231_v19, %v1589_v36  ;;  %1370 = vtanh.f32 %v809_v13 }
 0x109   : > { %v675_v23 = vpop.f32.mrb[11].mxu0  ;;  %v803_v24 = vpop.f32.mrb[11].mxu1  ;;  %961 = vst.msk [vmem:[%s1607_s6 + $0x8] sm:$0xff] %vm959_vm1, %v1349_v21  ;;  %v812_v26 = vadd.f32 %v1263_v20, %v1589_v36  ;;  %1372 = vtanh.f32 %v673_v17 }
 0x10a   : > { %v1351_v25 = vpop.eup %1350  ;;  %v676_v28 = vadd.f32 %v1589_v36, %v675_v23  ;;  %1374 = vtanh.f32 %v801_v18  ;;  %v804_v30 = vadd.f32 %v1589_v36, %v803_v24 }
 0x10b   : > { %v1353_v27 = vpop.eup %1352  ;;  %993 = vst.msk [vmem:[%s1607_s6 + $0x108] sm:$0xff] %vm959_vm1, %v1351_v25  ;;  %1376 = vtanh.f32 %v684_v22 }
 0x10c   : > { %v1355_v29 = vpop.eup %1354  ;;  %966 = vst.msk [vmem:[%s1607_s6 + $0x30] sm:$0xff] %vm959_vm1, %v1353_v27  ;;  %1378 = vtanh.f32 %v812_v26  ;;  %v1234_v33 = vpop.f32.mrb[12].mxu0 }
 0x10d   : > { %v1357_v31 = vpop.eup %1356  ;;  %998 = vst.msk [vmem:[%s1607_s6 + $0x130] sm:$0xff] %vm959_vm1, %v1355_v29  ;;  %v1266_v34 = vpop.f32.mrb[12].mxu1  ;;  %1380 = vtanh.f32 %v676_v28  ;;  %v697_v37 = vadd.f32 %v1234_v33, %v1589_v36 }
 0x10e   : > { %v1359_v32 = vpop.eup %1358  ;;  %964 = vst.msk [vmem:[%s1607_s6 + $0x20] sm:$0xff] %vm959_vm1, %v1357_v31  ;;  %v825_v38 = vadd.f32 %v1266_v34, %v1589_v36  ;;  %v688_v39 = vpop.f32.mrb[13].mxu0  ;;  %1382 = vtanh.f32 %v804_v30 }
 0x10f   : > { %v1361_v35 = vpop.eup %1360  ;;  %996 = vst.msk [vmem:[%s1607_s6 + $0x120] sm:$0xff] %vm959_vm1, %v1359_v32  ;;  %v816_v40 = vpop.f32.mrb[13].mxu1  ;;  %v689_v42 = vadd.f32 %v1589_v36, %v688_v39  ;;  %1384 = vtanh.f32 %v697_v37 }
 0x110   : > { %v1363_v41 = vpop.eup %1362  ;;  %967 = vst.msk [vmem:[%s1607_s6 + $0x38] sm:$0xff] %vm959_vm1, %v1361_v35  ;;  %v817_v43 = vadd.f32 %v1589_v36, %v816_v40  ;;  %v1235_v44 = vpop.f32.mrb[14].mxu0  ;;  %1386 = vtanh.f32 %v825_v38 }
 0x111   : > { %v1267_v45 = vpop.f32.mrb[14].mxu1  ;;  %v1365_v46 = vpop.eup %1364  ;;  %999 = vst.msk [vmem:[%s1607_s6 + $0x138] sm:$0xff] %vm959_vm1, %v1363_v41  ;;  %v700_v47 = vadd.f32 %v1235_v44, %v1589_v36  ;;  %1388 = vtanh.f32 %v689_v42 }
 0x112   : > { %v691_v48 = vpop.f32.mrb[15].mxu0  ;;  %v819_v49 = vpop.f32.mrb[15].mxu1  ;;  %965 = vst.msk [vmem:[%s1607_s6 + $0x28] sm:$0xff] %vm959_vm1, %v1365_v46  ;;  %v828_v51 = vadd.f32 %v1267_v45, %v1589_v36  ;;  %1390 = vtanh.f32 %v817_v43 }
 0x113   : > { %v1367_v50 = vpop.eup %1366  ;;  %v692_v53 = vadd.f32 %v1589_v36, %v691_v48  ;;  %v820_v55 = vadd.f32 %v1589_v36, %v819_v49  ;;  %1392 = vtanh.f32 %v700_v47 }
 0x114   : > { %v1369_v52 = vpop.eup %1368  ;;  %997 = vst.msk [vmem:[%s1607_s6 + $0x128] sm:$0xff] %vm959_vm1, %v1367_v50  ;;  %1394 = vtanh.f32 %v828_v51  ;;  %v1238_v58 = vpop.f32.mrb[16].mxu0 }
 0x115   : > { %v1371_v54 = vpop.eup %1370  ;;  %970 = vst.msk [vmem:[%s1607_s6 + $0x50] sm:$0xff] %vm959_vm1, %v1369_v52  ;;  %v1270_v59 = vpop.f32.mrb[16].mxu1  ;;  %1396 = vtanh.f32 %v692_v53  ;;  %v713_v61 = vadd.f32 %v1238_v58, %v1589_v36 }
 0x116   : > { %v1373_v56 = vpop.eup %1372  ;;  %1002 = vst.msk [vmem:[%s1607_s6 + $0x150] sm:$0xff] %vm959_vm1, %v1371_v54  ;;  %v841_v62 = vadd.f32 %v1270_v59, %v1589_v36  ;;  %v704_v63 = vpop.f32.mrb[17].mxu0  ;;  %1398 = vtanh.f32 %v820_v55 }
 0x117   : > { %v1375_v57 = vpop.eup %1374  ;;  %968 = vst.msk [vmem:[%s1607_s6 + $0x40] sm:$0xff] %vm959_vm1, %v1373_v56  ;;  %v832_v0 = vpop.f32.mrb[17].mxu1  ;;  %v705_v2 = vadd.f32 %v1589_v36, %v704_v63  ;;  %1400 = vtanh.f32 %v713_v61 }
 0x118   : > { %v1377_v60 = vpop.eup %1376  ;;  %1000 = vst.msk [vmem:[%s1607_s6 + $0x140] sm:$0xff] %vm959_vm1, %v1375_v57  ;;  %v833_v3 = vadd.f32 %v1589_v36, %v832_v0  ;;  %v1239_v4 = vpop.f32.mrb[18].mxu0  ;;  %1402 = vtanh.f32 %v841_v62 }
 0x119   : > { %v1379_v1 = vpop.eup %1378  ;;  %971 = vst.msk [vmem:[%s1607_s6 + $0x58] sm:$0xff] %vm959_vm1, %v1377_v60  ;;  %v1271_v5 = vpop.f32.mrb[18].mxu1  ;;  %v716_v7 = vadd.f32 %v1239_v4, %v1589_v36  ;;  %1404 = vtanh.f32 %v705_v2 }
 0x11a   : > { %v1381_v6 = vpop.eup %1380  ;;  %1003 = vst.msk [vmem:[%s1607_s6 + $0x158] sm:$0xff] %vm959_vm1, %v1379_v1  ;;  %v707_v8 = vpop.f32.mrb[19].mxu0  ;;  %v844_v11 = vadd.f32 %v1271_v5, %v1589_v36  ;;  %1406 = vtanh.f32 %v833_v3 }
 0x11b   : > { %v835_v9 = vpop.f32.mrb[19].mxu1  ;;  %v1383_v10 = vpop.eup %1382  ;;  %969 = vst.msk [vmem:[%s1607_s6 + $0x48] sm:$0xff] %vm959_vm1, %v1381_v6  ;;  %v708_v13 = vadd.f32 %v1589_v36, %v707_v8  ;;  %1408 = vtanh.f32 %v716_v7 }
 0x11c   : > { %v1385_v12 = vpop.eup %1384  ;;  %1001 = vst.msk [vmem:[%s1607_s6 + $0x148] sm:$0xff] %vm959_vm1, %v1383_v10  ;;  %v836_v15 = vadd.f32 %v1589_v36, %v835_v9  ;;  %1410 = vtanh.f32 %v844_v11  ;;  %v1242_v18 = vpop.f32.mrb[20].mxu0 }
 0x11d   : > { %v1387_v14 = vpop.eup %1386  ;;  %974 = vst.msk [vmem:[%s1607_s6 + $0x70] sm:$0xff] %vm959_vm1, %v1385_v12  ;;  %v1274_v19 = vpop.f32.mrb[20].mxu1  ;;  %1412 = vtanh.f32 %v708_v13  ;;  %v729_v21 = vadd.f32 %v1242_v18, %v1589_v36 }
 0x11e   : > { %v1389_v16 = vpop.eup %1388  ;;  %1006 = vst.msk [vmem:[%s1607_s6 + $0x170] sm:$0xff] %vm959_vm1, %v1387_v14  ;;  %v857_v22 = vadd.f32 %v1274_v19, %v1589_v36  ;;  %v720_v23 = vpop.f32.mrb[21].mxu0  ;;  %1414 = vtanh.f32 %v836_v15 }
 0x11f   : > { %v1391_v17 = vpop.eup %1390  ;;  %972 = vst.msk [vmem:[%s1607_s6 + $0x60] sm:$0xff] %vm959_vm1, %v1389_v16  ;;  %v848_v24 = vpop.f32.mrb[21].mxu1  ;;  %v721_v26 = vadd.f32 %v1589_v36, %v720_v23  ;;  %1416 = vtanh.f32 %v729_v21 }
 0x120   : > { %v1393_v20 = vpop.eup %1392  ;;  %1004 = vst.msk [vmem:[%s1607_s6 + $0x160] sm:$0xff] %vm959_vm1, %v1391_v17  ;;  %v849_v27 = vadd.f32 %v1589_v36, %v848_v24  ;;  %v1243_v28 = vpop.f32.mrb[22].mxu0  ;;  %1418 = vtanh.f32 %v857_v22 }
 0x121   : > { %v1395_v25 = vpop.eup %1394  ;;  %975 = vst.msk [vmem:[%s1607_s6 + $0x78] sm:$0xff] %vm959_vm1, %v1393_v20  ;;  %v1275_v29 = vpop.f32.mrb[22].mxu1  ;;  %v732_v31 = vadd.f32 %v1243_v28, %v1589_v36  ;;  %1420 = vtanh.f32 %v721_v26 }
 0x122   : > { %v1397_v30 = vpop.eup %1396  ;;  %1007 = vst.msk [vmem:[%s1607_s6 + $0x178] sm:$0xff] %vm959_vm1, %v1395_v25  ;;  %v723_v32 = vpop.f32.mrb[23].mxu0  ;;  %v860_v35 = vadd.f32 %v1275_v29, %v1589_v36  ;;  %1422 = vtanh.f32 %v849_v27 }
 0x123   : > { %v851_v33 = vpop.f32.mrb[23].mxu1  ;;  %v1399_v34 = vpop.eup %1398  ;;  %973 = vst.msk [vmem:[%s1607_s6 + $0x68] sm:$0xff] %vm959_vm1, %v1397_v30  ;;  %v724_v38 = vadd.f32 %v1589_v36, %v723_v32  ;;  %1424 = vtanh.f32 %v732_v31 }
 0x124   : > { %v1401_v37 = vpop.eup %1400  ;;  %1005 = vst.msk [vmem:[%s1607_s6 + $0x168] sm:$0xff] %vm959_vm1, %v1399_v34  ;;  %v852_v40 = vadd.f32 %v1589_v36, %v851_v33  ;;  %1426 = vtanh.f32 %v860_v35  ;;  %v1246_v43 = vpop.f32.mrb[24].mxu0 }
 0x125   : > { %v1403_v39 = vpop.eup %1402  ;;  %978 = vst.msk [vmem:[%s1607_s6 + $0x90] sm:$0xff] %vm959_vm1, %v1401_v37  ;;  %v1278_v44 = vpop.f32.mrb[24].mxu1  ;;  %1428 = vtanh.f32 %v724_v38  ;;  %v745_v46 = vadd.f32 %v1246_v43, %v1589_v36 }
 0x126   : > { %v1405_v41 = vpop.eup %1404  ;;  %1010 = vst.msk [vmem:[%s1607_s6 + $0x190] sm:$0xff] %vm959_vm1, %v1403_v39  ;;  %v873_v47 = vadd.f32 %v1278_v44, %v1589_v36  ;;  %v736_v48 = vpop.f32.mrb[25].mxu0  ;;  %1430 = vtanh.f32 %v852_v40 }
 0x127   : > { %v1407_v42 = vpop.eup %1406  ;;  %976 = vst.msk [vmem:[%s1607_s6 + $0x80] sm:$0xff] %vm959_vm1, %v1405_v41  ;;  %v864_v49 = vpop.f32.mrb[25].mxu1  ;;  %v737_v51 = vadd.f32 %v1589_v36, %v736_v48  ;;  %1432 = vtanh.f32 %v745_v46 }
 0x128   : > { %v1409_v45 = vpop.eup %1408  ;;  %1008 = vst.msk [vmem:[%s1607_s6 + $0x180] sm:$0xff] %vm959_vm1, %v1407_v42  ;;  %v865_v52 = vadd.f32 %v1589_v36, %v864_v49  ;;  %v1247_v53 = vpop.f32.mrb[26].mxu0  ;;  %1434 = vtanh.f32 %v873_v47 }
 0x129   : > { %v1411_v50 = vpop.eup %1410  ;;  %979 = vst.msk [vmem:[%s1607_s6 + $0x98] sm:$0xff] %vm959_vm1, %v1409_v45  ;;  %v1279_v54 = vpop.f32.mrb[26].mxu1  ;;  %v748_v56 = vadd.f32 %v1247_v53, %v1589_v36  ;;  %1436 = vtanh.f32 %v737_v51 }
 0x12a   : > { %v1413_v55 = vpop.eup %1412  ;;  %1011 = vst.msk [vmem:[%s1607_s6 + $0x198] sm:$0xff] %vm959_vm1, %v1411_v50  ;;  %v739_v57 = vpop.f32.mrb[27].mxu0  ;;  %v876_v60 = vadd.f32 %v1279_v54, %v1589_v36  ;;  %1438 = vtanh.f32 %v865_v52 }
 0x12b   : > { %v867_v58 = vpop.f32.mrb[27].mxu1  ;;  %v1415_v59 = vpop.eup %1414  ;;  %977 = vst.msk [vmem:[%s1607_s6 + $0x88] sm:$0xff] %vm959_vm1, %v1413_v55  ;;  %v740_v62 = vadd.f32 %v1589_v36, %v739_v57  ;;  %1440 = vtanh.f32 %v748_v56 }
 0x12c   : > { %v1417_v61 = vpop.eup %1416  ;;  %1009 = vst.msk [vmem:[%s1607_s6 + $0x188] sm:$0xff] %vm959_vm1, %v1415_v59  ;;  %v868_v0 = vadd.f32 %v1589_v36, %v867_v58  ;;  %1442 = vtanh.f32 %v876_v60  ;;  %v1250_v3 = vpop.f32.mrb[28].mxu0 }
 0x12d   : > { %v1419_v63 = vpop.eup %1418  ;;  %982 = vst.msk [vmem:[%s1607_s6 + $0xb0] sm:$0xff] %vm959_vm1, %v1417_v61  ;;  %v1282_v4 = vpop.f32.mrb[28].mxu1  ;;  %1444 = vtanh.f32 %v740_v62  ;;  %v761_v6 = vadd.f32 %v1250_v3, %v1589_v36 }
 0x12e   : > { %v1421_v1 = vpop.eup %1420  ;;  %1014 = vst.msk [vmem:[%s1607_s6 + $0x1b0] sm:$0xff] %vm959_vm1, %v1419_v63  ;;  %v889_v7 = vadd.f32 %v1282_v4, %v1589_v36  ;;  %v752_v8 = vpop.f32.mrb[29].mxu0  ;;  %1446 = vtanh.f32 %v868_v0 }
 0x12f   : > { %v1423_v2 = vpop.eup %1422  ;;  %980 = vst.msk [vmem:[%s1607_s6 + $0xa0] sm:$0xff] %vm959_vm1, %v1421_v1  ;;  %v880_v9 = vpop.f32.mrb[29].mxu1  ;;  %v753_v11 = vadd.f32 %v1589_v36, %v752_v8  ;;  %1448 = vtanh.f32 %v761_v6 }
 0x130   : > { %v1425_v5 = vpop.eup %1424  ;;  %1012 = vst.msk [vmem:[%s1607_s6 + $0x1a0] sm:$0xff] %vm959_vm1, %v1423_v2  ;;  %v881_v12 = vadd.f32 %v1589_v36, %v880_v9  ;;  %v1251_v13 = vpop.f32.mrb[30].mxu0  ;;  %1450 = vtanh.f32 %v889_v7 }
 0x131   : > { %v1427_v10 = vpop.eup %1426  ;;  %983 = vst.msk [vmem:[%s1607_s6 + $0xb8] sm:$0xff] %vm959_vm1, %v1425_v5  ;;  %v1283_v14 = vpop.f32.mrb[30].mxu1  ;;  %v764_v16 = vadd.f32 %v1251_v13, %v1589_v36  ;;  %1452 = vtanh.f32 %v753_v11 }
 0x132   : > { %v1429_v15 = vpop.eup %1428  ;;  %1015 = vst.msk [vmem:[%s1607_s6 + $0x1b8] sm:$0xff] %vm959_vm1, %v1427_v10  ;;  %v755_v17 = vpop.f32.mrb[31].mxu0  ;;  %v892_v20 = vadd.f32 %v1283_v14, %v1589_v36  ;;  %1454 = vtanh.f32 %v881_v12 }
 0x133   : > { %v883_v18 = vpop.f32.mrb[31].mxu1  ;;  %v1431_v19 = vpop.eup %1430  ;;  %981 = vst.msk [vmem:[%s1607_s6 + $0xa8] sm:$0xff] %vm959_vm1, %v1429_v15  ;;  %v756_v22 = vadd.f32 %v1589_v36, %v755_v17  ;;  %1456 = vtanh.f32 %v764_v16 }
 0x134   : > { %v1433_v21 = vpop.eup %1432  ;;  %1013 = vst.msk [vmem:[%s1607_s6 + $0x1a8] sm:$0xff] %vm959_vm1, %v1431_v19  ;;  %v884_v24 = vadd.f32 %v1589_v36, %v883_v18  ;;  %1458 = vtanh.f32 %v892_v20 }
 0x135   : > { %v1435_v23 = vpop.eup %1434  ;;  %986 = vst.msk [vmem:[%s1607_s6 + $0xd0] sm:$0xff] %vm959_vm1, %v1433_v21  ;;  %1460 = vtanh.f32 %v756_v22 }
 0x136   : > { %v1437_v25 = vpop.eup %1436  ;;  %1018 = vst.msk [vmem:[%s1607_s6 + $0x1d0] sm:$0xff] %vm959_vm1, %v1435_v23  ;;  %1462 = vtanh.f32 %v884_v24 }
 0x137   : > { %v1439_v26 = vpop.eup %1438  ;;  %984 = vst.msk [vmem:[%s1607_s6 + $0xc0] sm:$0xff] %vm959_vm1, %v1437_v25 }
 0x138   : > { %v1441_v27 = vpop.eup %1440  ;;  %1016 = vst.msk [vmem:[%s1607_s6 + $0x1c0] sm:$0xff] %vm959_vm1, %v1439_v26 }
 0x139   : > { %v1443_v28 = vpop.eup %1442  ;;  %987 = vst.msk [vmem:[%s1607_s6 + $0xd8] sm:$0xff] %vm959_vm1, %v1441_v27 }
 0x13a   : > { %v1445_v36 = vpop.eup %1444  ;;  %1019 = vst.msk [vmem:[%s1607_s6 + $0x1d8] sm:$0xff] %vm959_vm1, %v1443_v28 }
 0x13b   : > { %v1447_v29 = vpop.eup %1446  ;;  %985 = vst.msk [vmem:[%s1607_s6 + $0xc8] sm:$0xff] %vm959_vm1, %v1445_v36 }
 0x13c   : > { %v1449_v30 = vpop.eup %1448  ;;  %1017 = vst.msk [vmem:[%s1607_s6 + $0x1c8] sm:$0xff] %vm959_vm1, %v1447_v29 }
 0x13d   : > { %v1451_v31 = vpop.eup %1450  ;;  %990 = vst.msk [vmem:[%s1607_s6 + $0xf0] sm:$0xff] %vm959_vm1, %v1449_v30 }
 0x13e   : > { %v1453_v32 = vpop.eup %1452  ;;  %1022 = vst.msk [vmem:[%s1607_s6 + $0x1f0] sm:$0xff] %vm959_vm1, %v1451_v31 }
 0x13f   : > { %v1455_v33 = vpop.eup %1454  ;;  %988 = vst.msk [vmem:[%s1607_s6 + $0xe0] sm:$0xff] %vm959_vm1, %v1453_v32 }
 0x140   : > { %v1457_v34 = vpop.eup %1456  ;;  %1020 = vst.msk [vmem:[%s1607_s6 + $0x1e0] sm:$0xff] %vm959_vm1, %v1455_v33 }
 0x141   : > { %v1459_v35 = vpop.eup %1458  ;;  %991 = vst.msk [vmem:[%s1607_s6 + $0xf8] sm:$0xff] %vm959_vm1, %v1457_v34 }
 0x142   : > { %v1461_v37 = vpop.eup %1460  ;;  %1023 = vst.msk [vmem:[%s1607_s6 + $0x1f8] sm:$0xff] %vm959_vm1, %v1459_v35 }
 0x143   : > { %v1463_v38 = vpop.eup %1462  ;;  %989 = vst.msk [vmem:[%s1607_s6 + $0xe8] sm:$0xff] %vm959_vm1, %v1461_v37 }
 0x144   : > { %1021 = vst.msk [vmem:[%s1607_s6 + $0x1e8] sm:$0xff] %vm959_vm1, %v1463_v38 }
 0x145 PF: > { %s15_s18 = sadd.s32 1, %s1470_s18  }
 0x146   : > { %p12_p4 = scmp.ge.s32.totalorder %s15_s18, 6  }
 0x148   :  { %14 = sbr.rel (!%p12_p4) target bundleno = 1 (0x1), region = 73 }

</bundles_post_ra>
